<compile_context>
chip_gen: v7x
topology: tpu7x:2x2x1
jax: 0.10.0
libtpu: 0.0.40
codegen_flags: <defaults>
</compile_context>

<pallas_src>
import functools

import jax
import jax.numpy as jnp
from jax.experimental import pallas as pl
from jax.experimental.pallas import tpu as pltpu


# ----------------------------------------------------------------------------------
# Tile pickers
# ----------------------------------------------------------------------------------
def _pick_tile(dim, pref, align):
    """Largest multiple of `align` that divides `dim` and is <= pref, else full dim."""
    if dim <= pref:
        return dim
    t = (pref // align) * align
    while t >= align:
        if dim % t == 0:
            return t
        t -= align
    return dim


def _pick_row_tile(rows, pref=512):
    if rows <= pref:
        return rows
    t = (pref // 8) * 8
    while t >= 8:
        if rows % t == 0:
            return t
        t -= 8
    return rows


# ----------------------------------------------------------------------------------
# K-tiled matmul + bias (+ optional ReLU), f32 accumulation, bf16 MXU inputs
#   out(M, N) = a(M, K) @ b(K, N) + bias(M, 1)
# ----------------------------------------------------------------------------------
def _matmul_bias_kernel(a_ref, b_ref, bias_ref, o_ref, acc_ref, *, apply_relu):
    k = pl.program_id(2)

    @pl.when(k == 0)
    def _():
        acc_ref[...] = jnp.zeros_like(acc_ref)

    acc_ref[...] += jnp.dot(a_ref[...], b_ref[...],
                            preferred_element_type=jnp.float32)

    @pl.when(k == pl.num_programs(2) - 1)
    def _():
        y = acc_ref[...] + bias_ref[...]
        if apply_relu:
            y = jnp.maximum(y, 0.0)
        o_ref[...] = y


def pallas_matmul_bias(a, b, bias, *, relu=False, tm=256, tn=512, tk=512):
    """(M,K) @ (K,N) + bias(M,1), optional fused ReLU, tiled over M, N and K."""
    M, K = a.shape
    K2, N = b.shape
    assert K == K2
    a = a.astype(jnp.bfloat16)
    b = b.astype(jnp.bfloat16)
    bias = bias.astype(jnp.float32)

    tm = _pick_tile(M, tm, 8)
    tn = _pick_tile(N, tn, 128)
    tk = _pick_tile(K, tk, 128)
    grid = (M // tm, N // tn, K // tk)

    kern = functools.partial(_matmul_bias_kernel, apply_relu=relu)
    return pl.pallas_call(
        kern,
        out_shape=jax.ShapeDtypeStruct((M, N), jnp.float32),
        grid=grid,
        in_specs=[
            pl.BlockSpec((tm, tk), lambda i, j, k: (i, k)),
            pl.BlockSpec((tk, tn), lambda i, j, k: (k, j)),
            pl.BlockSpec((tm, 1), lambda i, j, k: (i, 0)),
        ],
        out_specs=pl.BlockSpec((tm, tn), lambda i, j, k: (i, j)),
        scratch_shapes=[pltpu.VMEM((tm, tn), jnp.float32)],
        compiler_params=pltpu.CompilerParams(
            dimension_semantics=("parallel", "parallel", "arbitrary"),
            vmem_limit_bytes=48 * 1024 * 1024),
    )(a, b, bias)


# ----------------------------------------------------------------------------------
# Tiled sum / mean reduction (accumulates across the grid into a (1,1) output)
# ----------------------------------------------------------------------------------
def _sum_kernel(x_ref, o_ref):
    @pl.when(pl.program_id(0) == 0)
    def _():
        o_ref[...] = jnp.zeros_like(o_ref)
    o_ref[...] += jnp.sum(x_ref[...])


def _as_2d(x):
    n = x.size
    if n % 128 == 0:
        return x.reshape(n // 128, 128)
    return x.reshape(1, n)


def pallas_mean(x):
    x2 = _as_2d(x.astype(jnp.float32))
    rows, cols = x2.shape
    tr = _pick_row_tile(rows)
    s = pl.pallas_call(
        _sum_kernel,
        out_shape=jax.ShapeDtypeStruct((1, 1), jnp.float32),
        grid=(rows // tr,),
        in_specs=[pl.BlockSpec((tr, cols), lambda i: (i, 0))],
        out_specs=pl.BlockSpec((1, 1), lambda i: (0, 0)),
        compiler_params=pltpu.CompilerParams(
            dimension_semantics=("arbitrary",)),
    )(x2)
    return s[0, 0] / x.size


# ----------------------------------------------------------------------------------
# Weight (data-consistency) fusion + fused block-sum in the same pass
# ----------------------------------------------------------------------------------
def _dc_sum_kernel(la_ref, fa_ref, m_ref, o_ref, s_ref):
    m = m_ref[...]
    y = m * la_ref[...] + (1.0 - m) * fa_ref[...]
    o_ref[...] = y

    @pl.when(pl.program_id(0) == 0)
    def _():
        s_ref[...] = jnp.zeros_like(s_ref)
    s_ref[...] += jnp.sum(y)


def net_weight(pred_la, pred_fa, mask):
    # TODO(synk): the real 'Weight' generator (get_generator('Weight', opts)) is defined
    # externally; stand-in: data-consistency fusion mask*pred_LA + (1-mask)*pred_FA.
    shape = pred_la.shape
    a = _as_2d(pred_la.astype(jnp.float32))
    b = _as_2d(pred_fa.astype(jnp.float32))
    m = _as_2d(mask.astype(jnp.float32))
    rows, cols = a.shape
    tr = _pick_row_tile(rows)
    out, s = pl.pallas_call(
        _dc_sum_kernel,
        out_shape=(jax.ShapeDtypeStruct((rows, cols), jnp.float32),
                   jax.ShapeDtypeStruct((1, 1), jnp.float32)),
        grid=(rows // tr,),
        in_specs=[pl.BlockSpec((tr, cols), lambda i: (i, 0)),
                  pl.BlockSpec((tr, cols), lambda i: (i, 0)),
                  pl.BlockSpec((tr, cols), lambda i: (i, 0))],
        out_specs=[pl.BlockSpec((tr, cols), lambda i: (i, 0)),
                   pl.BlockSpec((1, 1), lambda i: (0, 0))],
        compiler_params=pltpu.CompilerParams(
            dimension_semantics=("arbitrary",)),
    )(a, b, m)
    mean = s[0, 0] / pred_la.size
    return out.reshape(shape), mean


# ----------------------------------------------------------------------------------
# Conv3d (kernel 3, stride 1, pad 1) via im2col + lane-dense Pallas matmul
# ----------------------------------------------------------------------------------
def _im2col_3d_t(x):
    # x: (B, C, D, H, W) -> (C*27, B*D*H*W); row order c*27 + kz*9 + ky*3 + kx.
    # TODO(synk): at production scale this im2col and the conv1/conv2 HBM round trip
    # could be fused into a single Pallas kernel with halo tiles held in VMEM.
    B, C, D, H, W = x.shape
    xp = jnp.pad(x, ((0, 0), (0, 0), (1, 1), (1, 1), (1, 1)))
    patches = []
    for kz in range(3):
        for ky in range(3):
            for kx in range(3):
                patches.append(xp[:, :, kz:kz + D, ky:ky + H, kx:kx + W])
    col = jnp.stack(patches, axis=2)                  # (B, C, 27, D, H, W)
    col = col.transpose(1, 2, 0, 3, 4, 5)             # (C, 27, B, D, H, W)
    return col.reshape(C * 27, B * D * H * W)


def conv3d_pallas(x, w, b, *, relu=False):
    # x: (B, C, D, H, W); w: (OC, C, 3, 3, 3) (PyTorch layout); b: (OC,)
    # Lane-dense orientation: (OC, C*27) @ (C*27, M) so the big spatial dim M is the
    # output's last (lane) dim.
    B, C, D, H, W = x.shape
    OC = w.shape[0]
    col = _im2col_3d_t(x)                             # (C*27, M)
    wf = w.reshape(OC, C * 27)                        # (OC, C*27)
    y = pallas_matmul_bias(wf, col, b.reshape(OC, 1), relu=relu)  # (OC, M)
    y = y.reshape(OC, B, D, H, W).transpose(1, 0, 2, 3, 4)
    return y


def generator_fwd(params, x):
    # TODO(synk): DuRDN3/DuRDN4 (residual dense blocks + SE) are external; stand-in is a
    # deterministic 2-layer 3x3x3 conv generator (conv-ReLU-conv), ic -> nf -> 1.
    h = conv3d_pallas(x, params["w1"], params["b1"], relu=True)
    return conv3d_pallas(h, params["w2"], params["b2"], relu=False)


# ----------------------------------------------------------------------------------
# System-matrix forward projection (mirrors the torch flip / rot90 / permute / matmul)
#   sm_t is the system matrix pre-transposed ONCE outside the jitted forward:
#   sm_t = SM_dense.T  with shape (RZ*RY*RX, PZ*PX*PY), stored in bf16.
# ----------------------------------------------------------------------------------
def forward_project(recon, sm_t, proj_dims):
    PZ, PX, PY = proj_dims
    B = recon.shape[0]
    x = jnp.flip(recon, axis=4)
    x = jnp.rot90(x, k=-2, axes=(2, 3))
    x = jnp.transpose(x, (0, 1, 4, 3, 2))             # (B, 1, RZ, RY, RX)
    xf = x.reshape(B, -1)                             # (B, RZ*RY*RX)
    zero_bias = jnp.zeros((B, 1), jnp.float32)
    y = pallas_matmul_bias(xf, sm_t, zero_bias, relu=False)       # (B, PZ*PX*PY)
    y = y.reshape(B, 1, PZ, PX, PY)
    return jnp.transpose(y, (0, 1, 4, 3, 2))          # (B, 1, PY, PX, PZ)


def norm_scale(x, x_mean, ref_mean):
    # x / x.mean() * ref.mean(), with both means produced by Pallas reductions.
    return x * (ref_mean / x_mean)


# ----------------------------------------------------------------------------------
# Full CNNModel.forward data flow
# ----------------------------------------------------------------------------------
def cnn_model_forward(params, sm_t, recon_ld_la, proj_ld_la, mask_proj, proj_dims):
    ld_mean = pallas_mean(proj_ld_la)

    recon_fd_fa_pred = generator_fwd(params["G0"], recon_ld_la)
    fp = forward_project(recon_fd_fa_pred, sm_t, proj_dims)
    fp_norm = norm_scale(fp, pallas_mean(fp), ld_mean)

    proj_fd_la_pred0 = generator_fwd(params["G1_1"], proj_ld_la)
    proj_fd_fa_pred0 = generator_fwd(
        params["G2_1"], jnp.concatenate((proj_ld_la, fp_norm), axis=1))
    dc0, dc0_mean = net_weight(proj_fd_la_pred0, proj_fd_fa_pred0, mask_proj)
    dc0_norm = norm_scale(dc0, dc0_mean, ld_mean)

    proj_fd_la_pred1 = generator_fwd(
        params["G4_1"], jnp.concatenate((proj_fd_la_pred0, dc0), axis=1))
    proj_fd_fa_pred1 = generator_fwd(
        params["G3_1"], jnp.concatenate((proj_ld_la, fp_norm, dc0_norm), axis=1))
    dc1, dc1_mean = net_weight(proj_fd_la_pred1, proj_fd_fa_pred1, mask_proj)
    dc1_norm = norm_scale(dc1, dc1_mean, ld_mean)

    proj_fd_la_pred2 = generator_fwd(
        params["G4_2"], jnp.concatenate((proj_fd_la_pred1, dc1), axis=1))
    proj_fd_fa_pred2 = generator_fwd(
        params["G3_2"],
        jnp.concatenate((proj_ld_la, fp_norm, dc0_norm, dc1_norm), axis=1))
    dc2, dc2_mean = net_weight(proj_fd_la_pred2, proj_fd_fa_pred2, mask_proj)
    dc2_norm = norm_scale(dc2, dc2_mean, ld_mean)

    proj_fd_la_pred3 = generator_fwd(
        params["G4_3"], jnp.concatenate((proj_fd_la_pred2, dc2), axis=1))
    proj_fd_fa_pred3 = generator_fwd(
        params["G3_3"],
        jnp.concatenate((proj_ld_la, fp_norm, dc0_norm, dc1_norm, dc2_norm), axis=1))
    dc3, dc3_mean = net_weight(proj_fd_la_pred3, proj_fd_fa_pred3, mask_proj)
    dc3_norm = norm_scale(dc3, dc3_mean, ld_mean)

    proj_fd_fa_pred = generator_fwd(
        params["G3_4"],
        jnp.concatenate(
            (proj_ld_la, fp_norm, dc0_norm, dc1_norm, dc2_norm, dc3_norm), axis=1))

    return {
        "Recon_FD_FA_pred": recon_fd_fa_pred,
        "Proj_FD_FA_pred": proj_fd_fa_pred,
        "Proj_FD_FA_pred0_DC": dc0,
        "Proj_FD_FA_pred3_DC": dc3,
    }


# ----------------------------------------------------------------------------------
# Deterministic parameter init (analog of gaussian_weights_init: N(0, 0.02))
# ----------------------------------------------------------------------------------
def init_generator_params(key, ic, nf=8):
    k1, k2 = jax.random.split(key)
    return {
        "w1": 0.02 * jax.random.normal(k1, (nf, ic, 3, 3, 3), jnp.float32),
        "b1": jnp.zeros((nf,), jnp.float32),
        "w2": 0.02 * jax.random.normal(k2, (1, nf, 3, 3, 3), jnp.float32),
        "b2": jnp.zeros((1,), jnp.float32),
    }


def init_all_params(key):
    ics = {
        "G0": 1, "G1_1": 1, "G2_1": 2,
        "G3_1": 3, "G3_2": 4, "G3_3": 5, "G3_4": 6,
        "G4_1": 2, "G4_2": 2, "G4_3": 2,
    }
    params = {}
    keys = jax.random.split(key, len(ics))
    for k, (name, ic) in zip(keys, sorted(ics.items())):
        params[name] = init_generator_params(k, ic)
    return params


# ----------------------------------------------------------------------------------
if __name__ == "__main__":
    key = jax.random.PRNGKey(0)
    kp, k1, k2, k3, k4 = jax.random.split(key, 5)

    # Small-scale geometry (original: recon 72x72x40, proj 32x32x20, SM 20480x207360)
    B = 1
    RX = RY = 16
    RZ = 8
    PX = PY = 16
    PZ = 8

    params = init_all_params(kp)

    Recon_LD_LA = jnp.abs(jax.random.normal(k1, (B, 1, RX, RY, RZ), jnp.float32)) + 0.1
    Proj_LD_LA = jnp.abs(jax.random.normal(k2, (B, 1, PX, PY, PZ), jnp.float32)) + 0.1
    Mask_Proj = (jax.random.uniform(k3, (B, 1, PX, PY, PZ)) > 0.5).astype(jnp.float32)

    # Synthetic dense system matrix (stand-in for sm601_20.mat sparse matrix),
    # shape (PZ*PX*PY, RZ*RX*RY) like the original SM_dense.
    SM_dense = 0.05 * jnp.abs(
        jax.random.normal(k4, (PZ * PX * PY, RZ * RX * RY), jnp.float32))
    # Pre-transpose + cast ONCE outside the jitted forward (no runtime SM transpose).
    SM_T = jnp.asarray(SM_dense.T, dtype=jnp.bfloat16)

    fwd = jax.jit(functools.partial(cnn_model_forward, proj_dims=(PZ, PX, PY)))
    out = fwd(params, SM_T, Recon_LD_LA, Proj_LD_LA, Mask_Proj)
    jax.block_until_ready(out)

    assert out["Proj_FD_FA_pred"].shape == (B, 1, PX, PY, PZ)
    assert out["Recon_FD_FA_pred"].shape == (B, 1, RX, RY, RZ)
    print("KERNEL_OK")
</pallas_src>

<mosaic_0001>
module attributes {stable_mosaic.version = 11 : i64} {
  func.func @_matmul_bias_kernel(%arg0: i32, %arg1: i32, %arg2: i32, %arg3: memref<8x27xbf16, #tpu.memory_space<vmem>>, %arg4: memref<27x512xbf16, #tpu.memory_space<vmem>>, %arg5: memref<8x1xf32, #tpu.memory_space<vmem>>, %arg6: memref<8x512xf32, #tpu.memory_space<vmem>>, %arg7: memref<8x512xf32, #tpu.memory_space<vmem>>) attributes {dimension_semantics = [#tpu.dimension_semantics<parallel>, #tpu.dimension_semantics<parallel>, #tpu.dimension_semantics<arbitrary>], iteration_bounds = array<i64: 1, 4, 1>, scalar_prefetch = 0 : i64, scratch_operands = 1 : i64, tpu.core_type = #tpu.core_type<tc>, window_params = [{transform_indices = @transform_0, window_bounds = array<i64: 8, 27>}, {transform_indices = @transform_1, window_bounds = array<i64: 27, 512>}, {transform_indices = @transform_2, window_bounds = array<i64: 8, 1>}, {transform_indices = @transform_3, window_bounds = array<i64: 8, 512>}]} {
    %c0_i32 = arith.constant 0 : i32
    %0 = arith.cmpi eq, %arg2, %c0_i32 : i32
    %1 = arith.extui %0 : i1 to i32
    %c0_i32_0 = arith.constant 0 : i32
    %2 = arith.cmpi ne, %1, %c0_i32_0 : i32
    scf.if %2 {
      %cst_10 = arith.constant 0.000000e+00 : f32
      %12 = vector.broadcast %cst_10 : f32 to vector<8x512xf32>
      %c0_11 = arith.constant 0 : index
      %c0_12 = arith.constant 0 : index
      %13 = vector.load %arg7[%c0_11, %c0_12] : memref<8x512xf32, #tpu.memory_space<vmem>>, vector<8x512xf32>
      tpu.vector_store %arg7[%c0_11, %c0_12], %12 {strides = array<i32>} : memref<8x512xf32, #tpu.memory_space<vmem>>, vector<8x512xf32>,
    } else {
    }
    %c0 = arith.constant 0 : index
    %c0_1 = arith.constant 0 : index
    %3 = vector.load %arg7[%c0, %c0_1] : memref<8x512xf32, #tpu.memory_space<vmem>>, vector<8x512xf32>
    %c0_2 = arith.constant 0 : index
    %c0_3 = arith.constant 0 : index
    %4 = vector.load %arg3[%c0_2, %c0_3] : memref<8x27xbf16, #tpu.memory_space<vmem>>, vector<8x27xbf16>
    %c0_4 = arith.constant 0 : index
    %c0_5 = arith.constant 0 : index
    %5 = vector.load %arg4[%c0_4, %c0_5] : memref<27x512xbf16, #tpu.memory_space<vmem>>, vector<27x512xbf16>
    %cst = arith.constant dense<0.000000e+00> : vector<8x512xf32>
    %6 = tpu.matmul %4, %5, %cst {dimension_numbers = #tpu.dot_dimension_numbers<[1], [0], [0], [1], [0, 0, 1, 1], [], []>} : vector<8x27xbf16>, vector<27x512xbf16>, vector<8x512xf32> -> vector<8x512xf32>
    %7 = arith.addf %3, %6 : vector<8x512xf32>
    %c0_6 = arith.constant 0 : index
    %c0_7 = arith.constant 0 : index
    %8 = vector.load %arg7[%c0_6, %c0_7] : memref<8x512xf32, #tpu.memory_space<vmem>>, vector<8x512xf32>
    tpu.vector_store %arg7[%c0_6, %c0_7], %7 {strides = array<i32>} : memref<8x512xf32, #tpu.memory_space<vmem>>, vector<8x512xf32>,
    %c0_i32_8 = arith.constant 0 : i32
    %9 = arith.cmpi eq, %arg2, %c0_i32_8 : i32
    %10 = arith.extui %9 : i1 to i32
    %c0_i32_9 = arith.constant 0 : i32
    %11 = arith.cmpi ne, %10, %c0_i32_9 : i32
    scf.if %11 {
      %c0_10 = arith.constant 0 : index
      %c0_11 = arith.constant 0 : index
      %12 = vector.load %arg7[%c0_10, %c0_11] : memref<8x512xf32, #tpu.memory_space<vmem>>, vector<8x512xf32>
      %c0_12 = arith.constant 0 : index
      %c0_13 = arith.constant 0 : index
      %13 = vector.load %arg5[%c0_12, %c0_13] : memref<8x1xf32, #tpu.memory_space<vmem>>, vector<8x1xf32>
      %14 = vector.broadcast %13 : vector<8x1xf32> to vector<8x512xf32>
      %15 = arith.addf %12, %14 : vector<8x512xf32>
      %cst_14 = arith.constant 0.000000e+00 : f32
      %16 = vector.broadcast %cst_14 : f32 to vector<8x512xf32>
      %17 = arith.maximumf %15, %16 : vector<8x512xf32>
      %c0_15 = arith.constant 0 : index
      %c0_16 = arith.constant 0 : index
      %18 = vector.load %arg6[%c0_15, %c0_16] : memref<8x512xf32, #tpu.memory_space<vmem>>, vector<8x512xf32>
      tpu.vector_store %arg6[%c0_15, %c0_16], %17 {strides = array<i32>} : memref<8x512xf32, #tpu.memory_space<vmem>>, vector<8x512xf32>,
    } else {
    }
    return
  }
  func.func @transform_0(%arg0: i32, %arg1: i32, %arg2: i32) -> (i32, i32) {
    %c0_i32 = arith.constant 0 : i32
    return %arg0, %arg2 : i32, i32
  }
  func.func @transform_1(%arg0: i32, %arg1: i32, %arg2: i32) -> (i32, i32) {
    %c0_i32 = arith.constant 0 : i32
    return %arg2, %arg1 : i32, i32
  }
  func.func @transform_2(%arg0: i32, %arg1: i32, %arg2: i32) -> (i32, i32) {
    %c0_i32 = arith.constant 0 : i32
    %c0_i32_0 = arith.constant 0 : i32
    return %arg0, %c0_i32 : i32, i32
  }
  func.func @transform_3(%arg0: i32, %arg1: i32, %arg2: i32) -> (i32, i32) {
    %c0_i32 = arith.constant 0 : i32
    return %arg0, %arg1 : i32, i32
  }
}

module attributes {stable_mosaic.version = 11 : i64} {
  func.func @_matmul_bias_kernel(%arg0: i32, %arg1: i32, %arg2: i32, %arg3: memref<1x216xbf16, #tpu.memory_space<vmem>>, %arg4: memref<216x512xbf16, #tpu.memory_space<vmem>>, %arg5: memref<1x1xf32, #tpu.memory_space<vmem>>, %arg6: memref<1x512xf32, #tpu.memory_space<vmem>>, %arg7: memref<1x512xf32, #tpu.memory_space<vmem>>) attributes {dimension_semantics = [#tpu.dimension_semantics<parallel>, #tpu.dimension_semantics<parallel>, #tpu.dimension_semantics<arbitrary>], iteration_bounds = array<i64: 1, 4, 1>, scalar_prefetch = 0 : i64, scratch_operands = 1 : i64, tpu.core_type = #tpu.core_type<tc>, window_params = [{transform_indices = @transform_0, window_bounds = array<i64: 1, 216>}, {transform_indices = @transform_1, window_bounds = array<i64: 216, 512>}, {transform_indices = @transform_2, window_bounds = array<i64: 1, 1>}, {transform_indices = @transform_3, window_bounds = array<i64: 1, 512>}]} {
    %c0_i32 = arith.constant 0 : i32
    %0 = arith.cmpi eq, %arg2, %c0_i32 : i32
    %1 = arith.extui %0 : i1 to i32
    %c0_i32_0 = arith.constant 0 : i32
    %2 = arith.cmpi ne, %1, %c0_i32_0 : i32
    scf.if %2 {
      %cst_10 = arith.constant 0.000000e+00 : f32
      %12 = vector.broadcast %cst_10 : f32 to vector<1x512xf32>
      %c0_11 = arith.constant 0 : index
      %c0_12 = arith.constant 0 : index
      %13 = vector.load %arg7[%c0_11, %c0_12] : memref<1x512xf32, #tpu.memory_space<vmem>>, vector<1x512xf32>
      tpu.vector_store %arg7[%c0_11, %c0_12], %12 {strides = array<i32>} : memref<1x512xf32, #tpu.memory_space<vmem>>, vector<1x512xf32>,
    } else {
    }
    %c0 = arith.constant 0 : index
    %c0_1 = arith.constant 0 : index
    %3 = vector.load %arg7[%c0, %c0_1] : memref<1x512xf32, #tpu.memory_space<vmem>>, vector<1x512xf32>
    %c0_2 = arith.constant 0 : index
    %c0_3 = arith.constant 0 : index
    %4 = vector.load %arg3[%c0_2, %c0_3] : memref<1x216xbf16, #tpu.memory_space<vmem>>, vector<1x216xbf16>
    %c0_4 = arith.constant 0 : index
    %c0_5 = arith.constant 0 : index
    %5 = vector.load %arg4[%c0_4, %c0_5] : memref<216x512xbf16, #tpu.memory_space<vmem>>, vector<216x512xbf16>
    %cst = arith.constant dense<0.000000e+00> : vector<1x512xf32>
    %6 = tpu.matmul %4, %5, %cst {dimension_numbers = #tpu.dot_dimension_numbers<[1], [0], [0], [1], [0, 0, 1, 1], [], []>} : vector<1x216xbf16>, vector<216x512xbf16>, vector<1x512xf32> -> vector<1x512xf32>
    %7 = arith.addf %3, %6 : vector<1x512xf32>
    %c0_6 = arith.constant 0 : index
    %c0_7 = arith.constant 0 : index
    %8 = vector.load %arg7[%c0_6, %c0_7] : memref<1x512xf32, #tpu.memory_space<vmem>>, vector<1x512xf32>
    tpu.vector_store %arg7[%c0_6, %c0_7], %7 {strides = array<i32>} : memref<1x512xf32, #tpu.memory_space<vmem>>, vector<1x512xf32>,
    %c0_i32_8 = arith.constant 0 : i32
    %9 = arith.cmpi eq, %arg2, %c0_i32_8 : i32
    %10 = arith.extui %9 : i1 to i32
    %c0_i32_9 = arith.constant 0 : i32
    %11 = arith.cmpi ne, %10, %c0_i32_9 : i32
    scf.if %11 {
      %c0_10 = arith.constant 0 : index
      %c0_11 = arith.constant 0 : index
      %12 = vector.load %arg7[%c0_10, %c0_11] : memref<1x512xf32, #tpu.memory_space<vmem>>, vector<1x512xf32>
      %c0_12 = arith.constant 0 : index
      %c0_13 = arith.constant 0 : index
      %13 = vector.load %arg5[%c0_12, %c0_13] : memref<1x1xf32, #tpu.memory_space<vmem>>, vector<1x1xf32>
      %14 = vector.broadcast %13 : vector<1x1xf32> to vector<1x512xf32>
      %15 = arith.addf %12, %14 : vector<1x512xf32>
      %c0_14 = arith.constant 0 : index
      %c0_15 = arith.constant 0 : index
      %16 = vector.load %arg6[%c0_14, %c0_15] : memref<1x512xf32, #tpu.memory_space<vmem>>, vector<1x512xf32>
      tpu.vector_store %arg6[%c0_14, %c0_15], %15 {strides = array<i32>} : memref<1x512xf32, #tpu.memory_space<vmem>>, vector<1x512xf32>,
    } else {
    }
    return
  }
  func.func @transform_0(%arg0: i32, %arg1: i32, %arg2: i32) -> (i32, i32) {
    %c0_i32 = arith.constant 0 : i32
    return %arg0, %arg2 : i32, i32
  }
  func.func @transform_1(%arg0: i32, %arg1: i32, %arg2: i32) -> (i32, i32) {
    %c0_i32 = arith.constant 0 : i32
    return %arg2, %arg1 : i32, i32
  }
  func.func @transform_2(%arg0: i32, %arg1: i32, %arg2: i32) -> (i32, i32) {
    %c0_i32 = arith.constant 0 : i32
    %c0_i32_0 = arith.constant 0 : i32
    return %arg0, %c0_i32 : i32, i32
  }
  func.func @transform_3(%arg0: i32, %arg1: i32, %arg2: i32) -> (i32, i32) {
    %c0_i32 = arith.constant 0 : i32
    return %arg0, %arg1 : i32, i32
  }
}

module attributes {stable_mosaic.version = 11 : i64} {
  func.func @_matmul_bias_kernel(%arg0: i32, %arg1: i32, %arg2: i32, %arg3: memref<1x512xbf16, #tpu.memory_space<vmem>>, %arg4: memref<512x512xbf16, #tpu.memory_space<vmem>>, %arg5: memref<1x1xf32, #tpu.memory_space<vmem>>, %arg6: memref<1x512xf32, #tpu.memory_space<vmem>>, %arg7: memref<1x512xf32, #tpu.memory_space<vmem>>) attributes {dimension_semantics = [#tpu.dimension_semantics<parallel>, #tpu.dimension_semantics<parallel>, #tpu.dimension_semantics<arbitrary>], iteration_bounds = array<i64: 1, 4, 4>, scalar_prefetch = 0 : i64, scratch_operands = 1 : i64, tpu.core_type = #tpu.core_type<tc>, window_params = [{transform_indices = @transform_0, window_bounds = array<i64: 1, 512>}, {transform_indices = @transform_1, window_bounds = array<i64: 512, 512>}, {transform_indices = @transform_2, window_bounds = array<i64: 1, 1>}, {transform_indices = @transform_3, window_bounds = array<i64: 1, 512>}]} {
    %c0_i32 = arith.constant 0 : i32
    %0 = arith.cmpi eq, %arg2, %c0_i32 : i32
    %1 = arith.extui %0 : i1 to i32
    %c0_i32_0 = arith.constant 0 : i32
    %2 = arith.cmpi ne, %1, %c0_i32_0 : i32
    scf.if %2 {
      %cst_9 = arith.constant 0.000000e+00 : f32
      %12 = vector.broadcast %cst_9 : f32 to vector<1x512xf32>
      %c0_10 = arith.constant 0 : index
      %c0_11 = arith.constant 0 : index
      %13 = vector.load %arg7[%c0_10, %c0_11] : memref<1x512xf32, #tpu.memory_space<vmem>>, vector<1x512xf32>
      tpu.vector_store %arg7[%c0_10, %c0_11], %12 {strides = array<i32>} : memref<1x512xf32, #tpu.memory_space<vmem>>, vector<1x512xf32>,
    } else {
    }
    %c0 = arith.constant 0 : index
    %c0_1 = arith.constant 0 : index
    %3 = vector.load %arg7[%c0, %c0_1] : memref<1x512xf32, #tpu.memory_space<vmem>>, vector<1x512xf32>
    %c0_2 = arith.constant 0 : index
    %c0_3 = arith.constant 0 : index
    %4 = vector.load %arg3[%c0_2, %c0_3] : memref<1x512xbf16, #tpu.memory_space<vmem>>, vector<1x512xbf16>
    %c0_4 = arith.constant 0 : index
    %c0_5 = arith.constant 0 : index
    %5 = vector.load %arg4[%c0_4, %c0_5] : memref<512x512xbf16, #tpu.memory_space<vmem>>, vector<512x512xbf16>
    %cst = arith.constant dense<0.000000e+00> : vector<1x512xf32>
    %6 = tpu.matmul %4, %5, %cst {dimension_numbers = #tpu.dot_dimension_numbers<[1], [0], [0], [1], [0, 0, 1, 1], [], []>} : vector<1x512xbf16>, vector<512x512xbf16>, vector<1x512xf32> -> vector<1x512xf32>
    %7 = arith.addf %3, %6 : vector<1x512xf32>
    %c0_6 = arith.constant 0 : index
    %c0_7 = arith.constant 0 : index
    %8 = vector.load %arg7[%c0_6, %c0_7] : memref<1x512xf32, #tpu.memory_space<vmem>>, vector<1x512xf32>
    tpu.vector_store %arg7[%c0_6, %c0_7], %7 {strides = array<i32>} : memref<1x512xf32, #tpu.memory_space<vmem>>, vector<1x512xf32>,
    %c3_i32 = arith.constant 3 : i32
    %9 = arith.cmpi eq, %arg2, %c3_i32 : i32
    %10 = arith.extui %9 : i1 to i32
    %c0_i32_8 = arith.constant 0 : i32
    %11 = arith.cmpi ne, %10, %c0_i32_8 : i32
    scf.if %11 {
      %c0_9 = arith.constant 0 : index
      %c0_10 = arith.constant 0 : index
      %12 = vector.load %arg7[%c0_9, %c0_10] : memref<1x512xf32, #tpu.memory_space<vmem>>, vector<1x512xf32>
      %c0_11 = arith.constant 0 : index
      %c0_12 = arith.constant 0 : index
      %13 = vector.load %arg5[%c0_11, %c0_12] : memref<1x1xf32, #tpu.memory_space<vmem>>, vector<1x1xf32>
      %14 = vector.broadcast %13 : vector<1x1xf32> to vector<1x512xf32>
      %15 = arith.addf %12, %14 : vector<1x512xf32>
      %c0_13 = arith.constant 0 : index
      %c0_14 = arith.constant 0 : index
      %16 = vector.load %arg6[%c0_13, %c0_14] : memref<1x512xf32, #tpu.memory_space<vmem>>, vector<1x512xf32>
      tpu.vector_store %arg6[%c0_13, %c0_14], %15 {strides = array<i32>} : memref<1x512xf32, #tpu.memory_space<vmem>>, vector<1x512xf32>,
    } else {
    }
    return
  }
  func.func @transform_0(%arg0: i32, %arg1: i32, %arg2: i32) -> (i32, i32) {
    %c0_i32 = arith.constant 0 : i32
    return %arg0, %arg2 : i32, i32
  }
  func.func @transform_1(%arg0: i32, %arg1: i32, %arg2: i32) -> (i32, i32) {
    %c0_i32 = arith.constant 0 : i32
    return %arg2, %arg1 : i32, i32
  }
  func.func @transform_2(%arg0: i32, %arg1: i32, %arg2: i32) -> (i32, i32) {
    %c0_i32 = arith.constant 0 : i32
    %c0_i32_0 = arith.constant 0 : i32
    return %arg0, %c0_i32 : i32, i32
  }
  func.func @transform_3(%arg0: i32, %arg1: i32, %arg2: i32) -> (i32, i32) {
    %c0_i32 = arith.constant 0 : i32
    return %arg0, %arg1 : i32, i32
  }
}

module attributes {stable_mosaic.version = 11 : i64} {
  func.func @_sum_kernel(%arg0: i32, %arg1: memref<16x128xf32, #tpu.memory_space<vmem>>, %arg2: memref<1x1xf32, #tpu.memory_space<vmem>>) attributes {dimension_semantics = [#tpu.dimension_semantics<arbitrary>], iteration_bounds = array<i64: 1>, scalar_prefetch = 0 : i64, scratch_operands = 0 : i64, tpu.core_type = #tpu.core_type<tc>, window_params = [{transform_indices = @transform_0, window_bounds = array<i64: 16, 128>}, {pipeline_mode = #tpu.pipeline_mode<synchronous>, transform_indices = @transform_1, window_bounds = array<i64: 1, 1>}]} {
    %c0_i32 = arith.constant 0 : i32
    %0 = arith.cmpi eq, %arg0, %c0_i32 : i32
    %1 = arith.extui %0 : i1 to i32
    %c0_i32_0 = arith.constant 0 : i32
    %2 = arith.cmpi ne, %1, %c0_i32_0 : i32
    scf.if %2 {
      %cst_6 = arith.constant 0.000000e+00 : f32
      %12 = vector.broadcast %cst_6 : f32 to vector<1x1xf32>
      %c0_7 = arith.constant 0 : index
      %c0_8 = arith.constant 0 : index
      %13 = vector.load %arg2[%c0_7, %c0_8] : memref<1x1xf32, #tpu.memory_space<vmem>>, vector<1x1xf32>
      tpu.vector_store %arg2[%c0_7, %c0_8], %12 {strides = array<i32>} : memref<1x1xf32, #tpu.memory_space<vmem>>, vector<1x1xf32>,
    } else {
    }
    %c0 = arith.constant 0 : index
    %c0_1 = arith.constant 0 : index
    %3 = vector.load %arg2[%c0, %c0_1] : memref<1x1xf32, #tpu.memory_space<vmem>>, vector<1x1xf32>
    %c0_2 = arith.constant 0 : index
    %c0_3 = arith.constant 0 : index
    %4 = vector.load %arg1[%c0_2, %c0_3] : memref<16x128xf32, #tpu.memory_space<vmem>>, vector<16x128xf32>
    %5 = vector.shape_cast %4 : vector<16x128xf32> to vector<1x16x128xf32>
    %cst = arith.constant dense<0.000000e+00> : vector<1xf32>
    %6 = vector.multi_reduction <add>, %5, %cst [1, 2] : vector<1x16x128xf32> to vector<1xf32>
    %7 = vector.shape_cast %6 : vector<1xf32> to vector<1x1x1xf32>
    %8 = vector.extract %7[0, 0, 0] : f32 from vector<1x1x1xf32>
    %9 = vector.broadcast %8 : f32 to vector<1x1xf32>
    %10 = arith.addf %3, %9 : vector<1x1xf32>
    %c0_4 = arith.constant 0 : index
    %c0_5 = arith.constant 0 : index
    %11 = vector.load %arg2[%c0_4, %c0_5] : memref<1x1xf32, #tpu.memory_space<vmem>>, vector<1x1xf32>
    tpu.vector_store %arg2[%c0_4, %c0_5], %10 {strides = array<i32>} : memref<1x1xf32, #tpu.memory_space<vmem>>, vector<1x1xf32>,
    return
  }
  func.func @transform_0(%arg0: i32) -> (i32, i32) {
    %c0_i32 = arith.constant 0 : i32
    %c0_i32_0 = arith.constant 0 : i32
    return %arg0, %c0_i32 : i32, i32
  }
  func.func @transform_1(%arg0: i32) -> (i32, i32) {
    %c0_i32 = arith.constant 0 : i32
    %c0_i32_0 = arith.constant 0 : i32
    %c0_i32_1 = arith.constant 0 : i32
    return %c0_i32, %c0_i32_0 : i32, i32
  }
}

module attributes {stable_mosaic.version = 11 : i64} {
  func.func @_matmul_bias_kernel(%arg0: i32, %arg1: i32, %arg2: i32, %arg3: memref<8x54xbf16, #tpu.memory_space<vmem>>, %arg4: memref<54x512xbf16, #tpu.memory_space<vmem>>, %arg5: memref<8x1xf32, #tpu.memory_space<vmem>>, %arg6: memref<8x512xf32, #tpu.memory_space<vmem>>, %arg7: memref<8x512xf32, #tpu.memory_space<vmem>>) attributes {dimension_semantics = [#tpu.dimension_semantics<parallel>, #tpu.dimension_semantics<parallel>, #tpu.dimension_semantics<arbitrary>], iteration_bounds = array<i64: 1, 4, 1>, scalar_prefetch = 0 : i64, scratch_operands = 1 : i64, tpu.core_type = #tpu.core_type<tc>, window_params = [{transform_indices = @transform_0, window_bounds = array<i64: 8, 54>}, {transform_indices = @transform_1, window_bounds = array<i64: 54, 512>}, {transform_indices = @transform_2, window_bounds = array<i64: 8, 1>}, {transform_indices = @transform_3, window_bounds = array<i64: 8, 512>}]} {
    %c0_i32 = arith.constant 0 : i32
    %0 = arith.cmpi eq, %arg2, %c0_i32 : i32
    %1 = arith.extui %0 : i1 to i32
    %c0_i32_0 = arith.constant 0 : i32
    %2 = arith.cmpi ne, %1, %c0_i32_0 : i32
    scf.if %2 {
      %cst_10 = arith.constant 0.000000e+00 : f32
      %12 = vector.broadcast %cst_10 : f32 to vector<8x512xf32>
      %c0_11 = arith.constant 0 : index
      %c0_12 = arith.constant 0 : index
      %13 = vector.load %arg7[%c0_11, %c0_12] : memref<8x512xf32, #tpu.memory_space<vmem>>, vector<8x512xf32>
      tpu.vector_store %arg7[%c0_11, %c0_12], %12 {strides = array<i32>} : memref<8x512xf32, #tpu.memory_space<vmem>>, vector<8x512xf32>,
    } else {
    }
    %c0 = arith.constant 0 : index
    %c0_1 = arith.constant 0 : index
    %3 = vector.load %arg7[%c0, %c0_1] : memref<8x512xf32, #tpu.memory_space<vmem>>, vector<8x512xf32>
    %c0_2 = arith.constant 0 : index
    %c0_3 = arith.constant 0 : index
    %4 = vector.load %arg3[%c0_2, %c0_3] : memref<8x54xbf16, #tpu.memory_space<vmem>>, vector<8x54xbf16>
    %c0_4 = arith.constant 0 : index
    %c0_5 = arith.constant 0 : index
    %5 = vector.load %arg4[%c0_4, %c0_5] : memref<54x512xbf16, #tpu.memory_space<vmem>>, vector<54x512xbf16>
    %cst = arith.constant dense<0.000000e+00> : vector<8x512xf32>
    %6 = tpu.matmul %4, %5, %cst {dimension_numbers = #tpu.dot_dimension_numbers<[1], [0], [0], [1], [0, 0, 1, 1], [], []>} : vector<8x54xbf16>, vector<54x512xbf16>, vector<8x512xf32> -> vector<8x512xf32>
    %7 = arith.addf %3, %6 : vector<8x512xf32>
    %c0_6 = arith.constant 0 : index
    %c0_7 = arith.constant 0 : index
    %8 = vector.load %arg7[%c0_6, %c0_7] : memref<8x512xf32, #tpu.memory_space<vmem>>, vector<8x512xf32>
    tpu.vector_store %arg7[%c0_6, %c0_7], %7 {strides = array<i32>} : memref<8x512xf32, #tpu.memory_space<vmem>>, vector<8x512xf32>,
    %c0_i32_8 = arith.constant 0 : i32
    %9 = arith.cmpi eq, %arg2, %c0_i32_8 : i32
    %10 = arith.extui %9 : i1 to i32
    %c0_i32_9 = arith.constant 0 : i32
    %11 = arith.cmpi ne, %10, %c0_i32_9 : i32
    scf.if %11 {
      %c0_10 = arith.constant 0 : index
      %c0_11 = arith.constant 0 : index
      %12 = vector.load %arg7[%c0_10, %c0_11] : memref<8x512xf32, #tpu.memory_space<vmem>>, vector<8x512xf32>
      %c0_12 = arith.constant 0 : index
      %c0_13 = arith.constant 0 : index
      %13 = vector.load %arg5[%c0_12, %c0_13] : memref<8x1xf32, #tpu.memory_space<vmem>>, vector<8x1xf32>
      %14 = vector.broadcast %13 : vector<8x1xf32> to vector<8x512xf32>
      %15 = arith.addf %12, %14 : vector<8x512xf32>
      %cst_14 = arith.constant 0.000000e+00 : f32
      %16 = vector.broadcast %cst_14 : f32 to vector<8x512xf32>
      %17 = arith.maximumf %15, %16 : vector<8x512xf32>
      %c0_15 = arith.constant 0 : index
      %c0_16 = arith.constant 0 : index
      %18 = vector.load %arg6[%c0_15, %c0_16] : memref<8x512xf32, #tpu.memory_space<vmem>>, vector<8x512xf32>
      tpu.vector_store %arg6[%c0_15, %c0_16], %17 {strides = array<i32>} : memref<8x512xf32, #tpu.memory_space<vmem>>, vector<8x512xf32>,
    } else {
    }
    return
  }
  func.func @transform_0(%arg0: i32, %arg1: i32, %arg2: i32) -> (i32, i32) {
    %c0_i32 = arith.constant 0 : i32
    return %arg0, %arg2 : i32, i32
  }
  func.func @transform_1(%arg0: i32, %arg1: i32, %arg2: i32) -> (i32, i32) {
    %c0_i32 = arith.constant 0 : i32
    return %arg2, %arg1 : i32, i32
  }
  func.func @transform_2(%arg0: i32, %arg1: i32, %arg2: i32) -> (i32, i32) {
    %c0_i32 = arith.constant 0 : i32
    %c0_i32_0 = arith.constant 0 : i32
    return %arg0, %c0_i32 : i32, i32
  }
  func.func @transform_3(%arg0: i32, %arg1: i32, %arg2: i32) -> (i32, i32) {
    %c0_i32 = arith.constant 0 : i32
    return %arg0, %arg1 : i32, i32
  }
}

module attributes {stable_mosaic.version = 11 : i64} {
  func.func @_dc_sum_kernel(%arg0: i32, %arg1: memref<16x128xf32, #tpu.memory_space<vmem>>, %arg2: memref<16x128xf32, #tpu.memory_space<vmem>>, %arg3: memref<16x128xf32, #tpu.memory_space<vmem>>, %arg4: memref<16x128xf32, #tpu.memory_space<vmem>>, %arg5: memref<1x1xf32, #tpu.memory_space<vmem>>) attributes {dimension_semantics = [#tpu.dimension_semantics<arbitrary>], iteration_bounds = array<i64: 1>, scalar_prefetch = 0 : i64, scratch_operands = 0 : i64, tpu.core_type = #tpu.core_type<tc>, window_params = [{transform_indices = @transform_0, window_bounds = array<i64: 16, 128>}, {transform_indices = @transform_1, window_bounds = array<i64: 16, 128>}, {transform_indices = @transform_2, window_bounds = array<i64: 16, 128>}, {transform_indices = @transform_3, window_bounds = array<i64: 16, 128>}, {pipeline_mode = #tpu.pipeline_mode<synchronous>, transform_indices = @transform_4, window_bounds = array<i64: 1, 1>}]} {
    %c0 = arith.constant 0 : index
    %c0_0 = arith.constant 0 : index
    %0 = vector.load %arg3[%c0, %c0_0] : memref<16x128xf32, #tpu.memory_space<vmem>>, vector<16x128xf32>
    %c0_1 = arith.constant 0 : index
    %c0_2 = arith.constant 0 : index
    %1 = vector.load %arg1[%c0_1, %c0_2] : memref<16x128xf32, #tpu.memory_space<vmem>>, vector<16x128xf32>
    %2 = arith.mulf %0, %1 : vector<16x128xf32>
    %cst = arith.constant 1.000000e+00 : f32
    %3 = vector.broadcast %cst : f32 to vector<16x128xf32>
    %4 = arith.subf %3, %0 : vector<16x128xf32>
    %c0_3 = arith.constant 0 : index
    %c0_4 = arith.constant 0 : index
    %5 = vector.load %arg2[%c0_3, %c0_4] : memref<16x128xf32, #tpu.memory_space<vmem>>, vector<16x128xf32>
    %6 = arith.mulf %4, %5 : vector<16x128xf32>
    %7 = arith.addf %2, %6 : vector<16x128xf32>
    %c0_5 = arith.constant 0 : index
    %c0_6 = arith.constant 0 : index
    %8 = vector.load %arg4[%c0_5, %c0_6] : memref<16x128xf32, #tpu.memory_space<vmem>>, vector<16x128xf32>
    tpu.vector_store %arg4[%c0_5, %c0_6], %7 {strides = array<i32>} : memref<16x128xf32, #tpu.memory_space<vmem>>, vector<16x128xf32>,
    %c0_i32 = arith.constant 0 : i32
    %9 = arith.cmpi eq, %arg0, %c0_i32 : i32
    %10 = arith.extui %9 : i1 to i32
    %c0_i32_7 = arith.constant 0 : i32
    %11 = arith.cmpi ne, %10, %c0_i32_7 : i32
    scf.if %11 {
      %cst_13 = arith.constant 0.000000e+00 : f32
      %20 = vector.broadcast %cst_13 : f32 to vector<1x1xf32>
      %c0_14 = arith.constant 0 : index
      %c0_15 = arith.constant 0 : index
      %21 = vector.load %arg5[%c0_14, %c0_15] : memref<1x1xf32, #tpu.memory_space<vmem>>, vector<1x1xf32>
      tpu.vector_store %arg5[%c0_14, %c0_15], %20 {strides = array<i32>} : memref<1x1xf32, #tpu.memory_space<vmem>>, vector<1x1xf32>,
    } else {
    }
    %c0_8 = arith.constant 0 : index
    %c0_9 = arith.constant 0 : index
    %12 = vector.load %arg5[%c0_8, %c0_9] : memref<1x1xf32, #tpu.memory_space<vmem>>, vector<1x1xf32>
    %13 = vector.shape_cast %7 : vector<16x128xf32> to vector<1x16x128xf32>
    %cst_10 = arith.constant dense<0.000000e+00> : vector<1xf32>
    %14 = vector.multi_reduction <add>, %13, %cst_10 [1, 2] : vector<1x16x128xf32> to vector<1xf32>
    %15 = vector.shape_cast %14 : vector<1xf32> to vector<1x1x1xf32>
    %16 = vector.extract %15[0, 0, 0] : f32 from vector<1x1x1xf32>
    %17 = vector.broadcast %16 : f32 to vector<1x1xf32>
    %18 = arith.addf %12, %17 : vector<1x1xf32>
    %c0_11 = arith.constant 0 : index
    %c0_12 = arith.constant 0 : index
    %19 = vector.load %arg5[%c0_11, %c0_12] : memref<1x1xf32, #tpu.memory_space<vmem>>, vector<1x1xf32>
    tpu.vector_store %arg5[%c0_11, %c0_12], %18 {strides = array<i32>} : memref<1x1xf32, #tpu.memory_space<vmem>>, vector<1x1xf32>,
    return
  }
  func.func @transform_0(%arg0: i32) -> (i32, i32) {
    %c0_i32 = arith.constant 0 : i32
    %c0_i32_0 = arith.constant 0 : i32
    return %arg0, %c0_i32 : i32, i32
  }
  func.func @transform_1(%arg0: i32) -> (i32, i32) {
    %c0_i32 = arith.constant 0 : i32
    %c0_i32_0 = arith.constant 0 : i32
    return %arg0, %c0_i32 : i32, i32
  }
  func.func @transform_2(%arg0: i32) -> (i32, i32) {
    %c0_i32 = arith.constant 0 : i32
    %c0_i32_0 = arith.constant 0 : i32
    return %arg0, %c0_i32 : i32, i32
  }
  func.func @transform_3(%arg0: i32) -> (i32, i32) {
    %c0_i32 = arith.constant 0 : i32
    %c0_i32_0 = arith.constant 0 : i32
    return %arg0, %c0_i32 : i32, i32
  }
  func.func @transform_4(%arg0: i32) -> (i32, i32) {
    %c0_i32 = arith.constant 0 : i32
    %c0_i32_0 = arith.constant 0 : i32
    %c0_i32_1 = arith.constant 0 : i32
    return %c0_i32, %c0_i32_0 : i32, i32
  }
}

module attributes {stable_mosaic.version = 11 : i64} {
  func.func @_matmul_bias_kernel(%arg0: i32, %arg1: i32, %arg2: i32, %arg3: memref<8x81xbf16, #tpu.memory_space<vmem>>, %arg4: memref<81x512xbf16, #tpu.memory_space<vmem>>, %arg5: memref<8x1xf32, #tpu.memory_space<vmem>>, %arg6: memref<8x512xf32, #tpu.memory_space<vmem>>, %arg7: memref<8x512xf32, #tpu.memory_space<vmem>>) attributes {dimension_semantics = [#tpu.dimension_semantics<parallel>, #tpu.dimension_semantics<parallel>, #tpu.dimension_semantics<arbitrary>], iteration_bounds = array<i64: 1, 4, 1>, scalar_prefetch = 0 : i64, scratch_operands = 1 : i64, tpu.core_type = #tpu.core_type<tc>, window_params = [{transform_indices = @transform_0, window_bounds = array<i64: 8, 81>}, {transform_indices = @transform_1, window_bounds = array<i64: 81, 512>}, {transform_indices = @transform_2, window_bounds = array<i64: 8, 1>}, {transform_indices = @transform_3, window_bounds = array<i64: 8, 512>}]} {
    %c0_i32 = arith.constant 0 : i32
    %0 = arith.cmpi eq, %arg2, %c0_i32 : i32
    %1 = arith.extui %0 : i1 to i32
    %c0_i32_0 = arith.constant 0 : i32
    %2 = arith.cmpi ne, %1, %c0_i32_0 : i32
    scf.if %2 {
      %cst_10 = arith.constant 0.000000e+00 : f32
      %12 = vector.broadcast %cst_10 : f32 to vector<8x512xf32>
      %c0_11 = arith.constant 0 : index
      %c0_12 = arith.constant 0 : index
      %13 = vector.load %arg7[%c0_11, %c0_12] : memref<8x512xf32, #tpu.memory_space<vmem>>, vector<8x512xf32>
      tpu.vector_store %arg7[%c0_11, %c0_12], %12 {strides = array<i32>} : memref<8x512xf32, #tpu.memory_space<vmem>>, vector<8x512xf32>,
    } else {
    }
    %c0 = arith.constant 0 : index
    %c0_1 = arith.constant 0 : index
    %3 = vector.load %arg7[%c0, %c0_1] : memref<8x512xf32, #tpu.memory_space<vmem>>, vector<8x512xf32>
    %c0_2 = arith.constant 0 : index
    %c0_3 = arith.constant 0 : index
    %4 = vector.load %arg3[%c0_2, %c0_3] : memref<8x81xbf16, #tpu.memory_space<vmem>>, vector<8x81xbf16>
    %c0_4 = arith.constant 0 : index
    %c0_5 = arith.constant 0 : index
    %5 = vector.load %arg4[%c0_4, %c0_5] : memref<81x512xbf16, #tpu.memory_space<vmem>>, vector<81x512xbf16>
    %cst = arith.constant dense<0.000000e+00> : vector<8x512xf32>
    %6 = tpu.matmul %4, %5, %cst {dimension_numbers = #tpu.dot_dimension_numbers<[1], [0], [0], [1], [0, 0, 1, 1], [], []>} : vector<8x81xbf16>, vector<81x512xbf16>, vector<8x512xf32> -> vector<8x512xf32>
    %7 = arith.addf %3, %6 : vector<8x512xf32>
    %c0_6 = arith.constant 0 : index
    %c0_7 = arith.constant 0 : index
    %8 = vector.load %arg7[%c0_6, %c0_7] : memref<8x512xf32, #tpu.memory_space<vmem>>, vector<8x512xf32>
    tpu.vector_store %arg7[%c0_6, %c0_7], %7 {strides = array<i32>} : memref<8x512xf32, #tpu.memory_space<vmem>>, vector<8x512xf32>,
    %c0_i32_8 = arith.constant 0 : i32
    %9 = arith.cmpi eq, %arg2, %c0_i32_8 : i32
    %10 = arith.extui %9 : i1 to i32
    %c0_i32_9 = arith.constant 0 : i32
    %11 = arith.cmpi ne, %10, %c0_i32_9 : i32
    scf.if %11 {
      %c0_10 = arith.constant 0 : index
      %c0_11 = arith.constant 0 : index
      %12 = vector.load %arg7[%c0_10, %c0_11] : memref<8x512xf32, #tpu.memory_space<vmem>>, vector<8x512xf32>
      %c0_12 = arith.constant 0 : index
      %c0_13 = arith.constant 0 : index
      %13 = vector.load %arg5[%c0_12, %c0_13] : memref<8x1xf32, #tpu.memory_space<vmem>>, vector<8x1xf32>
      %14 = vector.broadcast %13 : vector<8x1xf32> to vector<8x512xf32>
      %15 = arith.addf %12, %14 : vector<8x512xf32>
      %cst_14 = arith.constant 0.000000e+00 : f32
      %16 = vector.broadcast %cst_14 : f32 to vector<8x512xf32>
      %17 = arith.maximumf %15, %16 : vector<8x512xf32>
      %c0_15 = arith.constant 0 : index
      %c0_16 = arith.constant 0 : index
      %18 = vector.load %arg6[%c0_15, %c0_16] : memref<8x512xf32, #tpu.memory_space<vmem>>, vector<8x512xf32>
      tpu.vector_store %arg6[%c0_15, %c0_16], %17 {strides = array<i32>} : memref<8x512xf32, #tpu.memory_space<vmem>>, vector<8x512xf32>,
    } else {
    }
    return
  }
  func.func @transform_0(%arg0: i32, %arg1: i32, %arg2: i32) -> (i32, i32) {
    %c0_i32 = arith.constant 0 : i32
    return %arg0, %arg2 : i32, i32
  }
  func.func @transform_1(%arg0: i32, %arg1: i32, %arg2: i32) -> (i32, i32) {
    %c0_i32 = arith.constant 0 : i32
    return %arg2, %arg1 : i32, i32
  }
  func.func @transform_2(%arg0: i32, %arg1: i32, %arg2: i32) -> (i32, i32) {
    %c0_i32 = arith.constant 0 : i32
    %c0_i32_0 = arith.constant 0 : i32
    return %arg0, %c0_i32 : i32, i32
  }
  func.func @transform_3(%arg0: i32, %arg1: i32, %arg2: i32) -> (i32, i32) {
    %c0_i32 = arith.constant 0 : i32
    return %arg0, %arg1 : i32, i32
  }
}

module attributes {stable_mosaic.version = 11 : i64} {
  func.func @_matmul_bias_kernel(%arg0: i32, %arg1: i32, %arg2: i32, %arg3: memref<8x108xbf16, #tpu.memory_space<vmem>>, %arg4: memref<108x512xbf16, #tpu.memory_space<vmem>>, %arg5: memref<8x1xf32, #tpu.memory_space<vmem>>, %arg6: memref<8x512xf32, #tpu.memory_space<vmem>>, %arg7: memref<8x512xf32, #tpu.memory_space<vmem>>) attributes {dimension_semantics = [#tpu.dimension_semantics<parallel>, #tpu.dimension_semantics<parallel>, #tpu.dimension_semantics<arbitrary>], iteration_bounds = array<i64: 1, 4, 1>, scalar_prefetch = 0 : i64, scratch_operands = 1 : i64, tpu.core_type = #tpu.core_type<tc>, window_params = [{transform_indices = @transform_0, window_bounds = array<i64: 8, 108>}, {transform_indices = @transform_1, window_bounds = array<i64: 108, 512>}, {transform_indices = @transform_2, window_bounds = array<i64: 8, 1>}, {transform_indices = @transform_3, window_bounds = array<i64: 8, 512>}]} {
    %c0_i32 = arith.constant 0 : i32
    %0 = arith.cmpi eq, %arg2, %c0_i32 : i32
    %1 = arith.extui %0 : i1 to i32
    %c0_i32_0 = arith.constant 0 : i32
    %2 = arith.cmpi ne, %1, %c0_i32_0 : i32
    scf.if %2 {
      %cst_10 = arith.constant 0.000000e+00 : f32
      %12 = vector.broadcast %cst_10 : f32 to vector<8x512xf32>
      %c0_11 = arith.constant 0 : index
      %c0_12 = arith.constant 0 : index
      %13 = vector.load %arg7[%c0_11, %c0_12] : memref<8x512xf32, #tpu.memory_space<vmem>>, vector<8x512xf32>
      tpu.vector_store %arg7[%c0_11, %c0_12], %12 {strides = array<i32>} : memref<8x512xf32, #tpu.memory_space<vmem>>, vector<8x512xf32>,
    } else {
    }
    %c0 = arith.constant 0 : index
    %c0_1 = arith.constant 0 : index
    %3 = vector.load %arg7[%c0, %c0_1] : memref<8x512xf32, #tpu.memory_space<vmem>>, vector<8x512xf32>
    %c0_2 = arith.constant 0 : index
    %c0_3 = arith.constant 0 : index
    %4 = vector.load %arg3[%c0_2, %c0_3] : memref<8x108xbf16, #tpu.memory_space<vmem>>, vector<8x108xbf16>
    %c0_4 = arith.constant 0 : index
    %c0_5 = arith.constant 0 : index
    %5 = vector.load %arg4[%c0_4, %c0_5] : memref<108x512xbf16, #tpu.memory_space<vmem>>, vector<108x512xbf16>
    %cst = arith.constant dense<0.000000e+00> : vector<8x512xf32>
    %6 = tpu.matmul %4, %5, %cst {dimension_numbers = #tpu.dot_dimension_numbers<[1], [0], [0], [1], [0, 0, 1, 1], [], []>} : vector<8x108xbf16>, vector<108x512xbf16>, vector<8x512xf32> -> vector<8x512xf32>
    %7 = arith.addf %3, %6 : vector<8x512xf32>
    %c0_6 = arith.constant 0 : index
    %c0_7 = arith.constant 0 : index
    %8 = vector.load %arg7[%c0_6, %c0_7] : memref<8x512xf32, #tpu.memory_space<vmem>>, vector<8x512xf32>
    tpu.vector_store %arg7[%c0_6, %c0_7], %7 {strides = array<i32>} : memref<8x512xf32, #tpu.memory_space<vmem>>, vector<8x512xf32>,
    %c0_i32_8 = arith.constant 0 : i32
    %9 = arith.cmpi eq, %arg2, %c0_i32_8 : i32
    %10 = arith.extui %9 : i1 to i32
    %c0_i32_9 = arith.constant 0 : i32
    %11 = arith.cmpi ne, %10, %c0_i32_9 : i32
    scf.if %11 {
      %c0_10 = arith.constant 0 : index
      %c0_11 = arith.constant 0 : index
      %12 = vector.load %arg7[%c0_10, %c0_11] : memref<8x512xf32, #tpu.memory_space<vmem>>, vector<8x512xf32>
      %c0_12 = arith.constant 0 : index
      %c0_13 = arith.constant 0 : index
      %13 = vector.load %arg5[%c0_12, %c0_13] : memref<8x1xf32, #tpu.memory_space<vmem>>, vector<8x1xf32>
      %14 = vector.broadcast %13 : vector<8x1xf32> to vector<8x512xf32>
      %15 = arith.addf %12, %14 : vector<8x512xf32>
      %cst_14 = arith.constant 0.000000e+00 : f32
      %16 = vector.broadcast %cst_14 : f32 to vector<8x512xf32>
      %17 = arith.maximumf %15, %16 : vector<8x512xf32>
      %c0_15 = arith.constant 0 : index
      %c0_16 = arith.constant 0 : index
      %18 = vector.load %arg6[%c0_15, %c0_16] : memref<8x512xf32, #tpu.memory_space<vmem>>, vector<8x512xf32>
      tpu.vector_store %arg6[%c0_15, %c0_16], %17 {strides = array<i32>} : memref<8x512xf32, #tpu.memory_space<vmem>>, vector<8x512xf32>,
    } else {
    }
    return
  }
  func.func @transform_0(%arg0: i32, %arg1: i32, %arg2: i32) -> (i32, i32) {
    %c0_i32 = arith.constant 0 : i32
    return %arg0, %arg2 : i32, i32
  }
  func.func @transform_1(%arg0: i32, %arg1: i32, %arg2: i32) -> (i32, i32) {
    %c0_i32 = arith.constant 0 : i32
    return %arg2, %arg1 : i32, i32
  }
  func.func @transform_2(%arg0: i32, %arg1: i32, %arg2: i32) -> (i32, i32) {
    %c0_i32 = arith.constant 0 : i32
    %c0_i32_0 = arith.constant 0 : i32
    return %arg0, %c0_i32 : i32, i32
  }
  func.func @transform_3(%arg0: i32, %arg1: i32, %arg2: i32) -> (i32, i32) {
    %c0_i32 = arith.constant 0 : i32
    return %arg0, %arg1 : i32, i32
  }
}

module attributes {stable_mosaic.version = 11 : i64} {
  func.func @_matmul_bias_kernel(%arg0: i32, %arg1: i32, %arg2: i32, %arg3: memref<8x135xbf16, #tpu.memory_space<vmem>>, %arg4: memref<135x512xbf16, #tpu.memory_space<vmem>>, %arg5: memref<8x1xf32, #tpu.memory_space<vmem>>, %arg6: memref<8x512xf32, #tpu.memory_space<vmem>>, %arg7: memref<8x512xf32, #tpu.memory_space<vmem>>) attributes {dimension_semantics = [#tpu.dimension_semantics<parallel>, #tpu.dimension_semantics<parallel>, #tpu.dimension_semantics<arbitrary>], iteration_bounds = array<i64: 1, 4, 1>, scalar_prefetch = 0 : i64, scratch_operands = 1 : i64, tpu.core_type = #tpu.core_type<tc>, window_params = [{transform_indices = @transform_0, window_bounds = array<i64: 8, 135>}, {transform_indices = @transform_1, window_bounds = array<i64: 135, 512>}, {transform_indices = @transform_2, window_bounds = array<i64: 8, 1>}, {transform_indices = @transform_3, window_bounds = array<i64: 8, 512>}]} {
    %c0_i32 = arith.constant 0 : i32
    %0 = arith.cmpi eq, %arg2, %c0_i32 : i32
    %1 = arith.extui %0 : i1 to i32
    %c0_i32_0 = arith.constant 0 : i32
    %2 = arith.cmpi ne, %1, %c0_i32_0 : i32
    scf.if %2 {
      %cst_10 = arith.constant 0.000000e+00 : f32
      %12 = vector.broadcast %cst_10 : f32 to vector<8x512xf32>
      %c0_11 = arith.constant 0 : index
      %c0_12 = arith.constant 0 : index
      %13 = vector.load %arg7[%c0_11, %c0_12] : memref<8x512xf32, #tpu.memory_space<vmem>>, vector<8x512xf32>
      tpu.vector_store %arg7[%c0_11, %c0_12], %12 {strides = array<i32>} : memref<8x512xf32, #tpu.memory_space<vmem>>, vector<8x512xf32>,
    } else {
    }
    %c0 = arith.constant 0 : index
    %c0_1 = arith.constant 0 : index
    %3 = vector.load %arg7[%c0, %c0_1] : memref<8x512xf32, #tpu.memory_space<vmem>>, vector<8x512xf32>
    %c0_2 = arith.constant 0 : index
    %c0_3 = arith.constant 0 : index
    %4 = vector.load %arg3[%c0_2, %c0_3] : memref<8x135xbf16, #tpu.memory_space<vmem>>, vector<8x135xbf16>
    %c0_4 = arith.constant 0 : index
    %c0_5 = arith.constant 0 : index
    %5 = vector.load %arg4[%c0_4, %c0_5] : memref<135x512xbf16, #tpu.memory_space<vmem>>, vector<135x512xbf16>
    %cst = arith.constant dense<0.000000e+00> : vector<8x512xf32>
    %6 = tpu.matmul %4, %5, %cst {dimension_numbers = #tpu.dot_dimension_numbers<[1], [0], [0], [1], [0, 0, 1, 1], [], []>} : vector<8x135xbf16>, vector<135x512xbf16>, vector<8x512xf32> -> vector<8x512xf32>
    %7 = arith.addf %3, %6 : vector<8x512xf32>
    %c0_6 = arith.constant 0 : index
    %c0_7 = arith.constant 0 : index
    %8 = vector.load %arg7[%c0_6, %c0_7] : memref<8x512xf32, #tpu.memory_space<vmem>>, vector<8x512xf32>
    tpu.vector_store %arg7[%c0_6, %c0_7], %7 {strides = array<i32>} : memref<8x512xf32, #tpu.memory_space<vmem>>, vector<8x512xf32>,
    %c0_i32_8 = arith.constant 0 : i32
    %9 = arith.cmpi eq, %arg2, %c0_i32_8 : i32
    %10 = arith.extui %9 : i1 to i32
    %c0_i32_9 = arith.constant 0 : i32
    %11 = arith.cmpi ne, %10, %c0_i32_9 : i32
    scf.if %11 {
      %c0_10 = arith.constant 0 : index
      %c0_11 = arith.constant 0 : index
      %12 = vector.load %arg7[%c0_10, %c0_11] : memref<8x512xf32, #tpu.memory_space<vmem>>, vector<8x512xf32>
      %c0_12 = arith.constant 0 : index
      %c0_13 = arith.constant 0 : index
      %13 = vector.load %arg5[%c0_12, %c0_13] : memref<8x1xf32, #tpu.memory_space<vmem>>, vector<8x1xf32>
      %14 = vector.broadcast %13 : vector<8x1xf32> to vector<8x512xf32>
      %15 = arith.addf %12, %14 : vector<8x512xf32>
      %cst_14 = arith.constant 0.000000e+00 : f32
      %16 = vector.broadcast %cst_14 : f32 to vector<8x512xf32>
      %17 = arith.maximumf %15, %16 : vector<8x512xf32>
      %c0_15 = arith.constant 0 : index
      %c0_16 = arith.constant 0 : index
      %18 = vector.load %arg6[%c0_15, %c0_16] : memref<8x512xf32, #tpu.memory_space<vmem>>, vector<8x512xf32>
      tpu.vector_store %arg6[%c0_15, %c0_16], %17 {strides = array<i32>} : memref<8x512xf32, #tpu.memory_space<vmem>>, vector<8x512xf32>,
    } else {
    }
    return
  }
  func.func @transform_0(%arg0: i32, %arg1: i32, %arg2: i32) -> (i32, i32) {
    %c0_i32 = arith.constant 0 : i32
    return %arg0, %arg2 : i32, i32
  }
  func.func @transform_1(%arg0: i32, %arg1: i32, %arg2: i32) -> (i32, i32) {
    %c0_i32 = arith.constant 0 : i32
    return %arg2, %arg1 : i32, i32
  }
  func.func @transform_2(%arg0: i32, %arg1: i32, %arg2: i32) -> (i32, i32) {
    %c0_i32 = arith.constant 0 : i32
    %c0_i32_0 = arith.constant 0 : i32
    return %arg0, %c0_i32 : i32, i32
  }
  func.func @transform_3(%arg0: i32, %arg1: i32, %arg2: i32) -> (i32, i32) {
    %c0_i32 = arith.constant 0 : i32
    return %arg0, %arg1 : i32, i32
  }
}

module attributes {stable_mosaic.version = 11 : i64} {
  func.func @_matmul_bias_kernel(%arg0: i32, %arg1: i32, %arg2: i32, %arg3: memref<8x162xbf16, #tpu.memory_space<vmem>>, %arg4: memref<162x512xbf16, #tpu.memory_space<vmem>>, %arg5: memref<8x1xf32, #tpu.memory_space<vmem>>, %arg6: memref<8x512xf32, #tpu.memory_space<vmem>>, %arg7: memref<8x512xf32, #tpu.memory_space<vmem>>) attributes {dimension_semantics = [#tpu.dimension_semantics<parallel>, #tpu.dimension_semantics<parallel>, #tpu.dimension_semantics<arbitrary>], iteration_bounds = array<i64: 1, 4, 1>, scalar_prefetch = 0 : i64, scratch_operands = 1 : i64, tpu.core_type = #tpu.core_type<tc>, window_params = [{transform_indices = @transform_0, window_bounds = array<i64: 8, 162>}, {transform_indices = @transform_1, window_bounds = array<i64: 162, 512>}, {transform_indices = @transform_2, window_bounds = array<i64: 8, 1>}, {transform_indices = @transform_3, window_bounds = array<i64: 8, 512>}]} {
    %c0_i32 = arith.constant 0 : i32
    %0 = arith.cmpi eq, %arg2, %c0_i32 : i32
    %1 = arith.extui %0 : i1 to i32
    %c0_i32_0 = arith.constant 0 : i32
    %2 = arith.cmpi ne, %1, %c0_i32_0 : i32
    scf.if %2 {
      %cst_10 = arith.constant 0.000000e+00 : f32
      %12 = vector.broadcast %cst_10 : f32 to vector<8x512xf32>
      %c0_11 = arith.constant 0 : index
      %c0_12 = arith.constant 0 : index
      %13 = vector.load %arg7[%c0_11, %c0_12] : memref<8x512xf32, #tpu.memory_space<vmem>>, vector<8x512xf32>
      tpu.vector_store %arg7[%c0_11, %c0_12], %12 {strides = array<i32>} : memref<8x512xf32, #tpu.memory_space<vmem>>, vector<8x512xf32>,
    } else {
    }
    %c0 = arith.constant 0 : index
    %c0_1 = arith.constant 0 : index
    %3 = vector.load %arg7[%c0, %c0_1] : memref<8x512xf32, #tpu.memory_space<vmem>>, vector<8x512xf32>
    %c0_2 = arith.constant 0 : index
    %c0_3 = arith.constant 0 : index
    %4 = vector.load %arg3[%c0_2, %c0_3] : memref<8x162xbf16, #tpu.memory_space<vmem>>, vector<8x162xbf16>
    %c0_4 = arith.constant 0 : index
    %c0_5 = arith.constant 0 : index
    %5 = vector.load %arg4[%c0_4, %c0_5] : memref<162x512xbf16, #tpu.memory_space<vmem>>, vector<162x512xbf16>
    %cst = arith.constant dense<0.000000e+00> : vector<8x512xf32>
    %6 = tpu.matmul %4, %5, %cst {dimension_numbers = #tpu.dot_dimension_numbers<[1], [0], [0], [1], [0, 0, 1, 1], [], []>} : vector<8x162xbf16>, vector<162x512xbf16>, vector<8x512xf32> -> vector<8x512xf32>
    %7 = arith.addf %3, %6 : vector<8x512xf32>
    %c0_6 = arith.constant 0 : index
    %c0_7 = arith.constant 0 : index
    %8 = vector.load %arg7[%c0_6, %c0_7] : memref<8x512xf32, #tpu.memory_space<vmem>>, vector<8x512xf32>
    tpu.vector_store %arg7[%c0_6, %c0_7], %7 {strides = array<i32>} : memref<8x512xf32, #tpu.memory_space<vmem>>, vector<8x512xf32>,
    %c0_i32_8 = arith.constant 0 : i32
    %9 = arith.cmpi eq, %arg2, %c0_i32_8 : i32
    %10 = arith.extui %9 : i1 to i32
    %c0_i32_9 = arith.constant 0 : i32
    %11 = arith.cmpi ne, %10, %c0_i32_9 : i32
    scf.if %11 {
      %c0_10 = arith.constant 0 : index
      %c0_11 = arith.constant 0 : index
      %12 = vector.load %arg7[%c0_10, %c0_11] : memref<8x512xf32, #tpu.memory_space<vmem>>, vector<8x512xf32>
      %c0_12 = arith.constant 0 : index
      %c0_13 = arith.constant 0 : index
      %13 = vector.load %arg5[%c0_12, %c0_13] : memref<8x1xf32, #tpu.memory_space<vmem>>, vector<8x1xf32>
      %14 = vector.broadcast %13 : vector<8x1xf32> to vector<8x512xf32>
      %15 = arith.addf %12, %14 : vector<8x512xf32>
      %cst_14 = arith.constant 0.000000e+00 : f32
      %16 = vector.broadcast %cst_14 : f32 to vector<8x512xf32>
      %17 = arith.maximumf %15, %16 : vector<8x512xf32>
      %c0_15 = arith.constant 0 : index
      %c0_16 = arith.constant 0 : index
      %18 = vector.load %arg6[%c0_15, %c0_16] : memref<8x512xf32, #tpu.memory_space<vmem>>, vector<8x512xf32>
      tpu.vector_store %arg6[%c0_15, %c0_16], %17 {strides = array<i32>} : memref<8x512xf32, #tpu.memory_space<vmem>>, vector<8x512xf32>,
    } else {
    }
    return
  }
  func.func @transform_0(%arg0: i32, %arg1: i32, %arg2: i32) -> (i32, i32) {
    %c0_i32 = arith.constant 0 : i32
    return %arg0, %arg2 : i32, i32
  }
  func.func @transform_1(%arg0: i32, %arg1: i32, %arg2: i32) -> (i32, i32) {
    %c0_i32 = arith.constant 0 : i32
    return %arg2, %arg1 : i32, i32
  }
  func.func @transform_2(%arg0: i32, %arg1: i32, %arg2: i32) -> (i32, i32) {
    %c0_i32 = arith.constant 0 : i32
    %c0_i32_0 = arith.constant 0 : i32
    return %arg0, %c0_i32 : i32, i32
  }
  func.func @transform_3(%arg0: i32, %arg1: i32, %arg2: i32) -> (i32, i32) {
    %c0_i32 = arith.constant 0 : i32
    return %arg0, %arg1 : i32, i32
  }
}

</mosaic_0001>

<bundles_post_ra>
// kernel: cnn_model_forward.28
= control target key start
LH: loop header
LB: loop body
LE: loop exit
PB: predicated region body
PF: predicated region fallthrough
CT: control target
= control target key end

     0   :  { %s749_s12 = smov 0   ;;  %s751_s13 = smov 0   ;;  %s820_s0 = inlined_call_operand.vmem [shape: bf16[8,27], index: 0, kind: input, shape index: {}]   ;;  %s821_s1 = inlined_call_operand.vmem [shape: bf16[27,2048], index: 1, kind: input, shape index: {}]   ;;  %s822_s2 = inlined_call_operand.vmem [shape: f32[8,1], index: 2, kind: input, shape index: {}]   ;;  %s823_s3 = inlined_call_operand.vmem [shape: f32[8,2048], index: 3, kind: output, shape index: {}]  }
   0x1   :  { %s753_s14 = smov 0   ;;  %s755_s15 = smov 0  }
   0x2   :  { %s757_s16 = smov 0  }
   0x3 LB: > { %s28_s17 = sadd.s32 1, %s721_s15  ;;  %p76_p1 = scmp.ne.s32.totalorder %s713_s13, %s709_s12  ;;  %s725_s16 = sphi %s757_s16, %s13_s16   ;;  %s721_s15 = sphi %s755_s15, %s827_s15   ;;  %s717_s14 = sphi %s753_s14, %s826_s14   ;;  %s713_s13 = sphi %s751_s13, %s825_s13   ;;  %s709_s12 = sphi %s749_s12, %s824_s12  }
   0x4   : > { %p30_p0 = scmp.ge.s32.totalorder %s28_s17, 4  ;;  %p77_p2 = scmp.eq.s32.totalorder %s725_s16, 0 }
   0x5   : > { %s69_s19 = sadd.s32 1, %s713_s13  ;;  %p611_p5 = scmp.ge.s32.totalorder %s725_s16, 4 }
   0x6   : > { %s829_s17 = smov (%p30_p0, %s28_s17), 0  ;;  %p78_p3 = por %p77_p2, %p76_p1 }
   0x7   : > { %s65_s18 = ssub.s32 %s721_s15, %s829_s17  ;;  %173 = sbr.rel (%p611_p5) target bundleno = 22 (0x16), region = 24 }
   0x8   : > { %p67_p4 = scmp.eq.s32.totalorder %s65_s18, 0 }
   0xa   : > { %s784_s20 = scalar_select %p67_p4, %s713_s13, %s69_s19  }
   0xe   : > { %176 = sbr.rel (!%p78_p3) target bundleno = 22 (0x16), region = 28  ;;  %s178_s21 = sand.u32 (%p78_p3), 1, %s713_s13  }
   0xf   : > { %s631_s22 = sshll.u32 (%p78_p3), %s721_s15, 4  ;;  %s612_s23 = sshll.u32 (%p78_p3), %s178_s21, 6 }
  0x10   : > { %s186_s26 = scalar_lea.vmem (%p78_p3), %s821_s1, %s631_s22  ;;  %s180_s27 = scalar_lea.vmem (%p78_p3), [#allocation3], %s612_s23 }
  0x11   : > { %v199_v0 = vld [vmem:[%s186_s26] sm:$0xff] (%p78_p3)  ;;  %v201_v1 = vld [vmem:[%s186_s26 + $0x8] sm:$0xff] (%p78_p3) }
  0x12   : > { %v203_v2 = vld [vmem:[%s186_s26 + $0x40] sm:$0xff] (%p78_p3)  ;;  %200 = vst [vmem:[%s180_s27] sm:$0xff] (%p78_p3), %v199_v0  ;;  %202 = vst [vmem:[%s180_s27 + $0x8] sm:$0xff] (%p78_p3), %v201_v1  ;;  %v205_v3 = vld [vmem:[%s186_s26 + $0x48] sm:$0xff] (%p78_p3) }
  0x13   : > { %204 = vst [vmem:[%s180_s27 + $0x10] sm:$0xff] (%p78_p3), %v203_v2  ;;  %v207_v4 = vld [vmem:[%s186_s26 + $0x80] sm:$0xff] (%p78_p3)  ;;  %v209_v5 = vld [vmem:[%s186_s26 + $0x88] sm:$0xff] (%p78_p3)  ;;  %206 = vst [vmem:[%s180_s27 + $0x18] sm:$0xff] (%p78_p3), %v205_v3 }
  0x14   : > { %208 = vst [vmem:[%s180_s27 + $0x20] sm:$0xff] (%p78_p3), %v207_v4  ;;  %210 = vst [vmem:[%s180_s27 + $0x28] sm:$0xff] (%p78_p3), %v209_v5  ;;  %v211_v6 = vld [vmem:[%s186_s26 + $0xc0] sm:$0xff] (%p78_p3)  ;;  %v213_v7 = vld [vmem:[%s186_s26 + $0xc8] sm:$0xff] (%p78_p3) }
  0x15   : > { %212 = vst [vmem:[%s180_s27 + $0x30] sm:$0xff] %v211_v6  ;;  %214 = vst [vmem:[%s180_s27 + $0x38] sm:$0xff] %v213_v7 }
  0x16 PF: > { %p615_p6 = scmp.ge.s32.totalorder %s725_s16, 1  ;;  %p219_p7 = scmp.lt.s32.totalorder %s725_s16, 5 }
  0x18   : > { %p220_p8 = pnand %p615_p6, %p219_p7 }
  0x19   : > { %s226_s28 = sand.u32 (!%p220_p8), 1, %s709_s12   ;;  %vm349_vm0 = vcmask (!%p220_p8), 1044480   ;;  %v462_v8 = vld [vmem:[%s822_s2] sm:$0xff] (!%p220_p8)  ;;  %v727_v9 = vmov (!%p220_p8), 0   ;;  %vm350_vm1 = vcmask (!%p220_p8), 1045504   ;;  %v728_v10 = vmov (!%p220_p8), 65535  }
  0x1a   : > { %223 = sbr.rel (%p220_p8) target bundleno = 255 (0xff), region = 51  ;;  %s616_s4 = sshll.u32 (!%p220_p8), %s226_s28, 6  ;;  %397 = vmatprep.mubr.bf16.mxu0 (!%p220_p8), %v727_v9  ;;  %438 = vmatprep.mubr.bf16.mxu1 (!%p220_p8), %v727_v9  ;;  %v351_v11 = vsel (!%p220_p8), %vm349_vm0, 4294967295, %v728_v10  ;;  %v300_v25 = vld [vmem:[%s820_s0] sm:$0xf] (!%p220_p8)  ;;  %vm345_vm2 = vcmask (!%p220_p8), 220160  }
  0x1b   : > { %674 = vset.pattern.permute.xlu0 (!%p220_p8), %v727_v9  ;;  %s228_s5 = scalar_lea.vmem (!%p220_p8), [#allocation3], %s616_s4  ;;  %v352_v16 = vsel (!%p220_p8), %vm350_vm1, %v351_v11, 0  ;;  %s617_s8 = sshll.u32 (!%p220_p8), %s717_s14, 2 }
  0x1c   : > { %v675_v12 = vld [vmem:[%s228_s5 + $0x4] ss:$16 sps:$4 sm:$0xff] (!%p220_p8)   ;;  %465 = vperm.xlu0 (!%p220_p8), %674, %v462_v8   ;;  %v677_v13 = vld [vmem:[%s228_s5 + $0xc] ss:$16 sps:$4 sm:$0xff] (!%p220_p8)   ;;  %v679_v14 = vld [vmem:[%s228_s5] ss:$16 sps:$4 sm:$0xff] (!%p220_p8)  }
  0x1d   : > { %365 = vmatprep.subr.bf16.mxu0 (!%p220_p8), %v675_v12  ;;  %v680_v15 = vld [vmem:[%s228_s5 + $0x8] ss:$16 sps:$4 sm:$0xff] (!%p220_p8)   ;;  %406 = vmatprep.subr.bf16.mxu1 (!%p220_p8), %v677_v13  ;;  %v681_v17 = vld [vmem:[%s228_s5 + $0x24] ss:$16 sps:$4 sm:$0x3f] (!%p220_p8)   ;;  %p280_p9 = scmp.lt.s32.totalorder (!%p220_p8), %s617_s8, 15 }
  0x1e   : > { %366 = vmatpush1.bf16.msra.mxu0 (!%p220_p8), %v679_v14  ;;  %407 = vmatpush1.bf16.msra.mxu1 (!%p220_p8), %v680_v15  ;;  %v683_v18 = vld [vmem:[%s228_s5 + $0x2c] ss:$16 sps:$4 sm:$0x3f] (!%p220_p8)   ;;  %v357_v19 = vand.u32 (!%p220_p8), %v681_v17, %v352_v16  ;;  %v685_v20 = vld [vmem:[%s228_s5 + $0x20] ss:$16 sps:$4 sm:$0x3f] (!%p220_p8)  }
  0x1f   : > { %v686_v21 = vld [vmem:[%s228_s5 + $0x28] ss:$16 sps:$4 sm:$0x3f] (!%p220_p8)   ;;  %v363_v22 = vand.u32 (!%p220_p8), %v683_v18, %v352_v16  ;;  %v354_v23 = vand.u32 (!%p220_p8), %v685_v20, %v352_v16 }
  0x20   : > { %367 = vmatprep.subr.bf16.mxu0 (!%p220_p8), %v357_v19  ;;  %v360_v24 = vand.u32 (!%p220_p8), %v686_v21, %v352_v16 }
  0x21   : > { %408 = vmatprep.subr.bf16.mxu1 %v363_v22  ;;  %s831_s8 = smov (!%p280_p9, %s617_s8), 15 }
  0x22   : > { %368 = vmatpush1.bf16.msra.mxu0 %v354_v23  ;;  %409 = vmatpush1.bf16.msra.mxu1 %v360_v24  ;;  %s618_s9 = sshll.u32 %s831_s8, 3 }
  0x23   : > { %s285_s12 = scalar_lea.vmem %s823_s3, %s618_s9 }
  0x25   : > { %627 = vmatmul.mubr.msk.bf16.vlgmr.msra.gmra.mrb[0].mxu0 %vm345_vm2, %v300_v25  ;;  %628 = vmatmul.mubr.msk.bf16.vlgmr.msra.gmra.mrb[0].mxu1 %vm345_vm2, %v300_v25 }
  0x9b   : > { %v466_v26 = vpop.permute.xlu0 %465 }
  0xf8   : > { %v399_v27 = vpop.f32.mrb[0].mxu0  ;;  %v440_v28 = vpop.f32.mrb[0].mxu1 }
  0xf9   : > { %v468_v29 = vadd.f32 %v466_v26, %v399_v27  ;;  %v470_v30 = vadd.f32 %v466_v26, %v440_v28  ;;  %v401_v31 = vpop.f32.mrb[1].mxu0  ;;  %v442_v32 = vpop.f32.mrb[1].mxu1 }
  0xfa   : > { %v469_v33 = vadd.f32 %v466_v26, %v401_v31  ;;  %v471_v34 = vadd.f32 %v466_v26, %v442_v32  ;;  %v403_v35 = vpop.f32.mrb[2].mxu0  ;;  %v444_v36 = vpop.f32.mrb[2].mxu1 }
  0xfb   : > { %v472_v37 = vmax.f32 %v468_v29, 0.0  ;;  %v474_v38 = vmax.f32 %v470_v30, 0.0  ;;  %v404_v39 = vpop.f32.mrb[3].mxu0  ;;  %v445_v40 = vpop.f32.mrb[3].mxu1 }
  0xfc   : > { %v473_v41 = vmax.f32 %v469_v33, 0.0  ;;  %v475_v42 = vmax.f32 %v471_v34, 0.0 }
  0xfd   : > { %476 = vst [vmem:[%s285_s12] sm:$0xff] %v472_v37  ;;  %478 = vst [vmem:[%s285_s12 + $0x10] sm:$0xff] %v474_v38 }
  0xfe   : > { %477 = vst [vmem:[%s285_s12 + $0x8] sm:$0xff] %v473_v41  ;;  %479 = vst [vmem:[%s285_s12 + $0x18] sm:$0xff] %v475_v42 }
  0xff PF: > { %s13_s16 = sadd.s32 1, %s725_s16   ;;  %s824_s12 = smov %s713_s13 }
 0x100   : > { %p10_p10 = scmp.ge.s32.totalorder %s13_s16, 6   ;;  %s825_s13 = smov %s784_s20 }
 0x101   : > { %s826_s14 = smov %s721_s15  ;;  %s827_s15 = smov %s829_s17 }
 0x102   :  { %12 = sbr.rel (!%p10_p10) target bundleno = 3 (0x3), region = 104 }

// kernel: cnn_model_forward.29
= control target key start
LH: loop header
LB: loop body
LE: loop exit
PB: predicated region body
PF: predicated region fallthrough
CT: control target
= control target key end

     0   :  { %s1540_s0 = inlined_call_operand.vmem [shape: bf16[1,216], index: 0, kind: input, shape index: {}]   ;;  %s1541_s1 = inlined_call_operand.vmem [shape: bf16[216,2048], index: 1, kind: input, shape index: {}]   ;;  %s1542_s2 = inlined_call_operand.<no memory space> [shape: f32[1,1], index: 2, kind: input, shape index: {}]   ;;  %s1543_s3 = inlined_call_operand.vmem [shape: f32[1,2048], index: 3, kind: output, shape index: {}]  }
   0x1   :  { %v8_v0 = vstv %s1542_s2 }
   0x2   :  { %9 = vst [vmem:[#allocation3] sm:$0x1] %v8_v0 }
   0x3   :  { %s1276_s14 = smov 0   ;;  %s1278_s15 = smov 0  }
   0x4   :  { %s1280_s16 = smov 0   ;;  %s1282_s17 = smov 0  }
   0x5   :  { %s1284_s18 = smov 0  }
   0x6 LB: > { %s30_s2 = sadd.s32 1, %s1244_s17  ;;  %p78_p1 = scmp.ne.s32.totalorder %s1236_s15, %s1232_s14  ;;  %s1248_s18 = sphi %s1284_s18, %s15_s18   ;;  %s1244_s17 = sphi %s1282_s17, %s1549_s17   ;;  %s1240_s16 = sphi %s1280_s16, %s1548_s16   ;;  %s1236_s15 = sphi %s1278_s15, %s1547_s15   ;;  %s1232_s14 = sphi %s1276_s14, %s1546_s14  }
   0x7   : > { %p32_p0 = scmp.ge.s32.totalorder %s30_s2, 4  ;;  %p79_p2 = scmp.eq.s32.totalorder %s1248_s18, 0 }
   0x8   : > { %s71_s20 = sadd.s32 1, %s1236_s15  ;;  %p1013_p5 = scmp.ge.s32.totalorder %s1248_s18, 4 }
   0x9   : > { %s1551_s2 = smov (%p32_p0, %s30_s2), 0  ;;  %p80_p3 = por %p79_p2, %p78_p1 }
   0xa   : > { %s67_s19 = ssub.s32 %s1244_s17, %s1551_s2  ;;  %176 = sbr.rel (%p1013_p5) target bundleno = 48 (0x30), region = 24 }
   0xb   : > { %p69_p4 = scmp.eq.s32.totalorder %s67_s19, 0 }
   0xd   : > { %s1311_s21 = scalar_select %p69_p4, %s1236_s15, %s71_s20  }
  0x11   : > { %179 = sbr.rel (!%p80_p3) target bundleno = 48 (0x30), region = 28  ;;  %s181_s22 = sand.u32 (%p80_p3), 1, %s1236_s15  }
  0x12   : > { %s1081_s23 = sshll.u32 (%p80_p3), %s1244_s17, 4  ;;  %s1082_s24 = smul.u32 (%p80_p3), 432, %s181_s22 }
  0x13   : > { %s1319_s27 = scalar_lea.vmem (%p80_p3), %s1541_s1, %s1081_s23 }
  0x14   : > { %v202_v1 = vld [vmem:[%s1319_s27] sm:$0xff] (%p80_p3)  ;;  %v204_v2 = vld [vmem:[%s1319_s27 + $0x8] sm:$0xff] (%p80_p3)  ;;  %s1327_s28 = scalar_lea.vmem (%p80_p3), [#allocation4], %s1082_s24 }
  0x15   : > { %v206_v3 = vld [vmem:[%s1319_s27 + $0x40] sm:$0xff] (%p80_p3)  ;;  %v208_v4 = vld [vmem:[%s1319_s27 + $0x48] sm:$0xff] (%p80_p3)  ;;  %203 = vst [vmem:[%s1327_s28] sm:$0xff] (%p80_p3), %v202_v1  ;;  %205 = vst [vmem:[%s1327_s28 + $0x8] sm:$0xff] (%p80_p3), %v204_v2 }
  0x16   : > { %v210_v5 = vld [vmem:[%s1319_s27 + $0x80] sm:$0xff] (%p80_p3)  ;;  %v212_v6 = vld [vmem:[%s1319_s27 + $0x88] sm:$0xff] (%p80_p3)  ;;  %207 = vst [vmem:[%s1327_s28 + $0x10] sm:$0xff] (%p80_p3), %v206_v3  ;;  %209 = vst [vmem:[%s1327_s28 + $0x18] sm:$0xff] (%p80_p3), %v208_v4 }
  0x17   : > { %211 = vst [vmem:[%s1327_s28 + $0x20] sm:$0xff] (%p80_p3), %v210_v5  ;;  %213 = vst [vmem:[%s1327_s28 + $0x28] sm:$0xff] (%p80_p3), %v212_v6  ;;  %v214_v7 = vld [vmem:[%s1319_s27 + $0xc0] sm:$0xff] (%p80_p3)  ;;  %v216_v8 = vld [vmem:[%s1319_s27 + $0xc8] sm:$0xff] (%p80_p3) }
  0x18   : > { %v218_v9 = vld [vmem:[%s1319_s27 + $0x100] sm:$0xff]  ;;  %215 = vst [vmem:[%s1327_s28 + $0x30] sm:$0xff] %v214_v7  ;;  %217 = vst [vmem:[%s1327_s28 + $0x38] sm:$0xff] %v216_v8  ;;  %v220_v10 = vld [vmem:[%s1319_s27 + $0x108] sm:$0xff] }
  0x19   : > { %219 = vst [vmem:[%s1327_s28 + $0x40] sm:$0xff] %v218_v9  ;;  %v222_v11 = vld [vmem:[%s1319_s27 + $0x140] sm:$0xff]  ;;  %v224_v12 = vld [vmem:[%s1319_s27 + $0x148] sm:$0xff]  ;;  %221 = vst [vmem:[%s1327_s28 + $0x48] sm:$0xff] %v220_v10 }
  0x1a   : > { %223 = vst [vmem:[%s1327_s28 + $0x50] sm:$0xff] %v222_v11  ;;  %225 = vst [vmem:[%s1327_s28 + $0x58] sm:$0xff] %v224_v12  ;;  %v226_v13 = vld [vmem:[%s1319_s27 + $0x180] sm:$0xff]  ;;  %v228_v14 = vld [vmem:[%s1319_s27 + $0x188] sm:$0xff] }
  0x1b   : > { %v230_v15 = vld [vmem:[%s1319_s27 + $0x1c0] sm:$0xff]  ;;  %227 = vst [vmem:[%s1327_s28 + $0x60] sm:$0xff] %v226_v13  ;;  %229 = vst [vmem:[%s1327_s28 + $0x68] sm:$0xff] %v228_v14  ;;  %v232_v16 = vld [vmem:[%s1319_s27 + $0x1c8] sm:$0xff] }
  0x1c   : > { %231 = vst [vmem:[%s1327_s28 + $0x70] sm:$0xff] %v230_v15  ;;  %v234_v17 = vld [vmem:[%s1319_s27 + $0x200] sm:$0xff]  ;;  %v236_v18 = vld [vmem:[%s1319_s27 + $0x208] sm:$0xff]  ;;  %233 = vst [vmem:[%s1327_s28 + $0x78] sm:$0xff] %v232_v16 }
  0x1d   : > { %235 = vst [vmem:[%s1327_s28 + $0x80] sm:$0xff] %v234_v17  ;;  %237 = vst [vmem:[%s1327_s28 + $0x88] sm:$0xff] %v236_v18  ;;  %v238_v19 = vld [vmem:[%s1319_s27 + $0x240] sm:$0xff]  ;;  %v240_v20 = vld [vmem:[%s1319_s27 + $0x248] sm:$0xff] }
  0x1e   : > { %v242_v21 = vld [vmem:[%s1319_s27 + $0x280] sm:$0xff]  ;;  %239 = vst [vmem:[%s1327_s28 + $0x90] sm:$0xff] %v238_v19  ;;  %241 = vst [vmem:[%s1327_s28 + $0x98] sm:$0xff] %v240_v20  ;;  %v244_v22 = vld [vmem:[%s1319_s27 + $0x288] sm:$0xff] }
  0x1f   : > { %243 = vst [vmem:[%s1327_s28 + $0xa0] sm:$0xff] %v242_v21  ;;  %v246_v23 = vld [vmem:[%s1319_s27 + $0x2c0] sm:$0xff]  ;;  %v248_v24 = vld [vmem:[%s1319_s27 + $0x2c8] sm:$0xff]  ;;  %245 = vst [vmem:[%s1327_s28 + $0xa8] sm:$0xff] %v244_v22 }
  0x20   : > { %247 = vst [vmem:[%s1327_s28 + $0xb0] sm:$0xff] %v246_v23  ;;  %249 = vst [vmem:[%s1327_s28 + $0xb8] sm:$0xff] %v248_v24  ;;  %v250_v25 = vld [vmem:[%s1319_s27 + $0x300] sm:$0xff]  ;;  %v252_v26 = vld [vmem:[%s1319_s27 + $0x308] sm:$0xff] }
  0x21   : > { %v254_v27 = vld [vmem:[%s1319_s27 + $0x340] sm:$0xff]  ;;  %251 = vst [vmem:[%s1327_s28 + $0xc0] sm:$0xff] %v250_v25  ;;  %253 = vst [vmem:[%s1327_s28 + $0xc8] sm:$0xff] %v252_v26  ;;  %v256_v28 = vld [vmem:[%s1319_s27 + $0x348] sm:$0xff] }
  0x22   : > { %255 = vst [vmem:[%s1327_s28 + $0xd0] sm:$0xff] %v254_v27  ;;  %v258_v29 = vld [vmem:[%s1319_s27 + $0x380] sm:$0xff]  ;;  %v260_v30 = vld [vmem:[%s1319_s27 + $0x388] sm:$0xff]  ;;  %257 = vst [vmem:[%s1327_s28 + $0xd8] sm:$0xff] %v256_v28 }
  0x23   : > { %259 = vst [vmem:[%s1327_s28 + $0xe0] sm:$0xff] %v258_v29  ;;  %261 = vst [vmem:[%s1327_s28 + $0xe8] sm:$0xff] %v260_v30  ;;  %v262_v31 = vld [vmem:[%s1319_s27 + $0x3c0] sm:$0xff]  ;;  %v264_v32 = vld [vmem:[%s1319_s27 + $0x3c8] sm:$0xff] }
  0x24   : > { %v266_v33 = vld [vmem:[%s1319_s27 + $0x400] sm:$0xff]  ;;  %263 = vst [vmem:[%s1327_s28 + $0xf0] sm:$0xff] %v262_v31  ;;  %265 = vst [vmem:[%s1327_s28 + $0xf8] sm:$0xff] %v264_v32  ;;  %v268_v34 = vld [vmem:[%s1319_s27 + $0x408] sm:$0xff] }
  0x25   : > { %267 = vst [vmem:[%s1327_s28 + $0x100] sm:$0xff] %v266_v33  ;;  %v270_v35 = vld [vmem:[%s1319_s27 + $0x440] sm:$0xff]  ;;  %v272_v36 = vld [vmem:[%s1319_s27 + $0x448] sm:$0xff]  ;;  %269 = vst [vmem:[%s1327_s28 + $0x108] sm:$0xff] %v268_v34 }
  0x26   : > { %271 = vst [vmem:[%s1327_s28 + $0x110] sm:$0xff] %v270_v35  ;;  %273 = vst [vmem:[%s1327_s28 + $0x118] sm:$0xff] %v272_v36  ;;  %v274_v37 = vld [vmem:[%s1319_s27 + $0x480] sm:$0xff]  ;;  %v276_v38 = vld [vmem:[%s1319_s27 + $0x488] sm:$0xff] }
  0x27   : > { %v278_v39 = vld [vmem:[%s1319_s27 + $0x4c0] sm:$0xff]  ;;  %275 = vst [vmem:[%s1327_s28 + $0x120] sm:$0xff] %v274_v37  ;;  %277 = vst [vmem:[%s1327_s28 + $0x128] sm:$0xff] %v276_v38  ;;  %v280_v40 = vld [vmem:[%s1319_s27 + $0x4c8] sm:$0xff] }
  0x28   : > { %279 = vst [vmem:[%s1327_s28 + $0x130] sm:$0xff] %v278_v39  ;;  %v282_v41 = vld [vmem:[%s1319_s27 + $0x500] sm:$0xff]  ;;  %v284_v42 = vld [vmem:[%s1319_s27 + $0x508] sm:$0xff]  ;;  %281 = vst [vmem:[%s1327_s28 + $0x138] sm:$0xff] %v280_v40 }
  0x29   : > { %283 = vst [vmem:[%s1327_s28 + $0x140] sm:$0xff] %v282_v41  ;;  %285 = vst [vmem:[%s1327_s28 + $0x148] sm:$0xff] %v284_v42  ;;  %v286_v43 = vld [vmem:[%s1319_s27 + $0x540] sm:$0xff]  ;;  %v288_v44 = vld [vmem:[%s1319_s27 + $0x548] sm:$0xff] }
  0x2a   : > { %v290_v45 = vld [vmem:[%s1319_s27 + $0x580] sm:$0xff]  ;;  %287 = vst [vmem:[%s1327_s28 + $0x150] sm:$0xff] %v286_v43  ;;  %289 = vst [vmem:[%s1327_s28 + $0x158] sm:$0xff] %v288_v44  ;;  %v292_v46 = vld [vmem:[%s1319_s27 + $0x588] sm:$0xff] }
  0x2b   : > { %291 = vst [vmem:[%s1327_s28 + $0x160] sm:$0xff] %v290_v45  ;;  %v294_v47 = vld [vmem:[%s1319_s27 + $0x5c0] sm:$0xff]  ;;  %v296_v48 = vld [vmem:[%s1319_s27 + $0x5c8] sm:$0xff]  ;;  %293 = vst [vmem:[%s1327_s28 + $0x168] sm:$0xff] %v292_v46 }
  0x2c   : > { %295 = vst [vmem:[%s1327_s28 + $0x170] sm:$0xff] %v294_v47  ;;  %297 = vst [vmem:[%s1327_s28 + $0x178] sm:$0xff] %v296_v48  ;;  %v298_v49 = vld [vmem:[%s1319_s27 + $0x600] sm:$0xff]  ;;  %v300_v50 = vld [vmem:[%s1319_s27 + $0x608] sm:$0xff] }
  0x2d   : > { %v302_v51 = vld [vmem:[%s1319_s27 + $0x640] sm:$0xff]  ;;  %299 = vst [vmem:[%s1327_s28 + $0x180] sm:$0xff] %v298_v49  ;;  %301 = vst [vmem:[%s1327_s28 + $0x188] sm:$0xff] %v300_v50  ;;  %v304_v52 = vld [vmem:[%s1319_s27 + $0x648] sm:$0xff] }
  0x2e   : > { %303 = vst [vmem:[%s1327_s28 + $0x190] sm:$0xff] %v302_v51  ;;  %v306_v53 = vld [vmem:[%s1319_s27 + $0x680] sm:$0xff]  ;;  %v308_v54 = vld [vmem:[%s1319_s27 + $0x688] sm:$0xff]  ;;  %305 = vst [vmem:[%s1327_s28 + $0x198] sm:$0xff] %v304_v52 }
  0x2f   : > { %307 = vst [vmem:[%s1327_s28 + $0x1a0] sm:$0xff] %v306_v53  ;;  %309 = vst [vmem:[%s1327_s28 + $0x1a8] sm:$0xff] %v308_v54 }
  0x30 PF: > { %p1016_p6 = scmp.ge.s32.totalorder %s1248_s18, 1  ;;  %p314_p7 = scmp.lt.s32.totalorder %s1248_s18, 5 }
  0x32   : > { %p315_p8 = pnand %p1016_p6, %p314_p7 }
  0x33   : > { %s321_s29 = sand.u32 (!%p315_p8), 1, %s1232_s14   ;;  %v386_v55 = vlaneseq (!%p315_p8)  ;;  %v1437_v56 = vld.sshfl [vmem:[%s1540_s0] sm:$0x11 pattern:$0x75316420] (!%p315_p8)  ;;  %v1251_v60 = vmov (!%p315_p8), 0  }
  0x34   : > { %318 = sbr.rel (%p315_p8) target bundleno = 347 (0x15b), region = 51  ;;  %v1250_v57 = vmov (!%p315_p8), 1966171168   ;;  %1127 = vset.pattern.permute.xlu0 (!%p315_p8), %v1251_v60  ;;  %v879_v61 = vld [vmem:[#allocation3] sm:$0x1] (!%p315_p8)  ;;  %v455_v63 = vcombine.high (!%p315_p8), %v1437_v56, %v1437_v56  ;;  %vm741_vm0 = vcmask (!%p315_p8), 719872  }
  0x35   : > { %s1083_s5 = smul.u32 (!%p315_p8), 432, %s321_s29  ;;  %v457_v58 = vunpack.c.l.s4 (!%p315_p8), %v1250_v57  ;;  %v1440_v59 = vshrl.u32 (!%p315_p8), %v386_v55, 7  ;;  %882 = vperm.xlu0 (!%p315_p8), %1127, %v879_v61   ;;  %vm745_vm1 = vcmask (!%p315_p8), 1043456   ;;  %vm1507_vm2 = vcmp.lt.s32.totalorder (!%p315_p8), %v386_v55, 512  ;;  %s1017_s7 = sshll.u32 (!%p315_p8), %s1240_s16, 2 }
  0x36   : > { %p375_p9 = scmp.lt.s32.totalorder (!%p315_p8), %s1017_s7, 15 }
  0x37   : > { %s1442_s6 = scalar_lea.vmem (!%p315_p8), [#allocation4], %s1083_s5  ;;  %v458_v0 = vunpack.c.0.s8 (!%p315_p8), %v457_v58 }
  0x38   : > { %v1128_v62 = vld [vmem:[%s1442_s6 + $0x4] ss:$16 sps:$4 sm:$0xff] (!%p315_p8)   ;;  %v1130_v1 = vld [vmem:[%s1442_s6 + $0xc] ss:$16 sps:$4 sm:$0xff] (!%p315_p8)   ;;  %v1132_v2 = vld [vmem:[%s1442_s6] ss:$16 sps:$4 sm:$0xff] (!%p315_p8)  }
  0x39   : > { %758 = vmatprep.subr.bf16.mxu0 (!%p315_p8), %v1128_v62  ;;  %v1133_v3 = vld [vmem:[%s1442_s6 + $0x8] ss:$16 sps:$4 sm:$0xff] (!%p315_p8)   ;;  %v1451_v4 = vsub.s32 (!%p315_p8), %v458_v0, %v1440_v59  ;;  %799 = vmatprep.subr.bf16.mxu1 (!%p315_p8), %v1130_v1  ;;  %v1134_v5 = vld [vmem:[%s1442_s6 + $0x24] ss:$16 sps:$4 sm:$0xff] (!%p315_p8)   ;;  %v1136_v6 = vld [vmem:[%s1442_s6 + $0x2c] ss:$16 sps:$4 sm:$0xff] (!%p315_p8)  }
  0x3a   : > { %759 = vmatpush1.bf16.msra.mxu0 (!%p315_p8), %v1132_v2  ;;  %800 = vmatpush1.bf16.msra.mxu1 (!%p315_p8), %v1133_v3  ;;  %v1138_v7 = vld [vmem:[%s1442_s6 + $0x20] ss:$16 sps:$4 sm:$0xff] (!%p315_p8)   ;;  %v1139_v9 = vld [vmem:[%s1442_s6 + $0x28] ss:$16 sps:$4 sm:$0xff] (!%p315_p8)   ;;  %v1140_v10 = vld [vmem:[%s1442_s6 + $0x44] ss:$16 sps:$4 sm:$0xff] (!%p315_p8)  }
  0x3b   : > { %v469_v8 = vrot.slane %v455_v63, %v1451_v4  ;;  %760 = vmatprep.subr.bf16.mxu0 %v1134_v5  ;;  %801 = vmatprep.subr.bf16.mxu1 %v1136_v6  ;;  %v1142_v11 = vld [vmem:[%s1442_s6 + $0x4c] ss:$16 sps:$4 sm:$0xff]   ;;  %v1144_v12 = vld [vmem:[%s1442_s6 + $0x40] ss:$16 sps:$4 sm:$0xff]   ;;  %v1145_v13 = vld [vmem:[%s1442_s6 + $0x48] ss:$16 sps:$4 sm:$0xff]   ;;  %v462_v1 = vrot.slane %v1437_v56, %v1451_v4 }
  0x3c   : > { %v1146_v14 = vld [vmem:[%s1442_s6 + $0x64] ss:$16 sps:$4 sm:$0xff]   ;;  %v1148_v15 = vld [vmem:[%s1442_s6 + $0x6c] ss:$16 sps:$4 sm:$0xff]   ;;  %v1150_v16 = vld [vmem:[%s1442_s6 + $0x60] ss:$16 sps:$4 sm:$0xff]  }
  0x3d   : > { %1076 = vmatprep.mubr.msk.bf16.mxu0 %vm741_vm0, %v469_v8  ;;  %1078 = vmatprep.mubr.msk.bf16.mxu1 %vm741_vm0, %v469_v8  ;;  %v1151_v17 = vld [vmem:[%s1442_s6 + $0x68] ss:$16 sps:$4 sm:$0xff]   ;;  %v1152_v18 = vld [vmem:[%s1442_s6 + $0x84] ss:$16 sps:$4 sm:$0xff]   ;;  %v1154_v19 = vld [vmem:[%s1442_s6 + $0x8c] ss:$16 sps:$4 sm:$0xff]  }
  0x3e   : > { %761 = vmatpush1.bf16.msra.mxu0 %v1138_v7  ;;  %802 = vmatpush1.bf16.msra.mxu1 %v1139_v9  ;;  %v1156_v20 = vld [vmem:[%s1442_s6 + $0x80] ss:$16 sps:$4 sm:$0xff]   ;;  %v1157_v21 = vld [vmem:[%s1442_s6 + $0x88] ss:$16 sps:$4 sm:$0xff]   ;;  %v1158_v22 = vld [vmem:[%s1442_s6 + $0xa4] ss:$16 sps:$4 sm:$0xff]  }
  0x3f   : > { %762 = vmatprep.subr.bf16.mxu0 %v1140_v10  ;;  %803 = vmatprep.subr.bf16.mxu1 %v1142_v11  ;;  %v1160_v23 = vld [vmem:[%s1442_s6 + $0xac] ss:$16 sps:$4 sm:$0xff]   ;;  %v1162_v24 = vld [vmem:[%s1442_s6 + $0xa0] ss:$16 sps:$4 sm:$0xff]   ;;  %v1163_v25 = vld [vmem:[%s1442_s6 + $0xa8] ss:$16 sps:$4 sm:$0xff]  }
  0x40   : > { %v1164_v26 = vld [vmem:[%s1442_s6 + $0xc4] ss:$16 sps:$4 sm:$0xff]   ;;  %v1166_v27 = vld [vmem:[%s1442_s6 + $0xcc] ss:$16 sps:$4 sm:$0xff]   ;;  %v1168_v28 = vld [vmem:[%s1442_s6 + $0xc0] ss:$16 sps:$4 sm:$0xff]  }
  0x41   : > { %v1169_v29 = vld [vmem:[%s1442_s6 + $0xc8] ss:$16 sps:$4 sm:$0xff]   ;;  %v1170_v30 = vld [vmem:[%s1442_s6 + $0xe4] ss:$16 sps:$4 sm:$0xff]   ;;  %v1172_v31 = vld [vmem:[%s1442_s6 + $0xec] ss:$16 sps:$4 sm:$0xff]  }
  0x42   : > { %763 = vmatpush1.bf16.msra.mxu0 %v1144_v12  ;;  %804 = vmatpush1.bf16.msra.mxu1 %v1145_v13  ;;  %v1174_v32 = vld [vmem:[%s1442_s6 + $0xe0] ss:$16 sps:$4 sm:$0xff]   ;;  %v1175_v33 = vld [vmem:[%s1442_s6 + $0xe8] ss:$16 sps:$4 sm:$0xff]   ;;  %v1176_v34 = vld [vmem:[%s1442_s6 + $0x104] ss:$16 sps:$4 sm:$0xff]  }
  0x43   : > { %764 = vmatprep.subr.bf16.mxu0 %v1146_v14  ;;  %805 = vmatprep.subr.bf16.mxu1 %v1148_v15  ;;  %v1178_v35 = vld [vmem:[%s1442_s6 + $0x10c] ss:$16 sps:$4 sm:$0xff]   ;;  %v1180_v36 = vld [vmem:[%s1442_s6 + $0x100] ss:$16 sps:$4 sm:$0xff]   ;;  %v1181_v37 = vld [vmem:[%s1442_s6 + $0x108] ss:$16 sps:$4 sm:$0xff]  }
  0x44   : > { %v1182_v38 = vld [vmem:[%s1442_s6 + $0x124] ss:$16 sps:$4 sm:$0xff]   ;;  %v1184_v39 = vld [vmem:[%s1442_s6 + $0x12c] ss:$16 sps:$4 sm:$0xff]   ;;  %v1186_v40 = vld [vmem:[%s1442_s6 + $0x120] ss:$16 sps:$4 sm:$0xff]  }
  0x45   : > { %v1187_v41 = vld [vmem:[%s1442_s6 + $0x128] ss:$16 sps:$4 sm:$0xff]   ;;  %v1188_v42 = vld [vmem:[%s1442_s6 + $0x144] ss:$16 sps:$4 sm:$0xff]   ;;  %v1190_v43 = vld [vmem:[%s1442_s6 + $0x14c] ss:$16 sps:$4 sm:$0xff]  }
  0x46   : > { %765 = vmatpush1.bf16.msra.mxu0 %v1150_v16  ;;  %806 = vmatpush1.bf16.msra.mxu1 %v1151_v17  ;;  %v1192_v44 = vld [vmem:[%s1442_s6 + $0x140] ss:$16 sps:$4 sm:$0xff]   ;;  %v1193_v45 = vld [vmem:[%s1442_s6 + $0x148] ss:$16 sps:$4 sm:$0xff]   ;;  %v1194_v46 = vld [vmem:[%s1442_s6 + $0x164] ss:$16 sps:$4 sm:$0xff]  }
  0x47   : > { %766 = vmatprep.subr.bf16.mxu0 %v1152_v18  ;;  %807 = vmatprep.subr.bf16.mxu1 %v1154_v19  ;;  %v1196_v47 = vld [vmem:[%s1442_s6 + $0x16c] ss:$16 sps:$4 sm:$0xff]   ;;  %v1198_v48 = vld [vmem:[%s1442_s6 + $0x160] ss:$16 sps:$4 sm:$0xff]   ;;  %v1199_v49 = vld [vmem:[%s1442_s6 + $0x168] ss:$16 sps:$4 sm:$0xff]  }
  0x48   : > { %v1200_v50 = vld [vmem:[%s1442_s6 + $0x184] ss:$16 sps:$4 sm:$0xff]   ;;  %v1202_v51 = vld [vmem:[%s1442_s6 + $0x18c] ss:$16 sps:$4 sm:$0xff]   ;;  %v1204_v54 = vld [vmem:[%s1442_s6 + $0x180] ss:$16 sps:$4 sm:$0xff]  }
  0x49   : > { %v445_v52 = vld [vmem:[%s1442_s6 + $0x1a0] sm:$0xff]  ;;  %v446_v53 = vld [vmem:[%s1442_s6 + $0x1a8] sm:$0xff]  ;;  %v1252_v3 = vmov 0.0   ;;  %v887_v19 = vsub.s32 0, %v1440_v59  ;;  %s1553_s7 = smov (!%p375_p9, %s1017_s7), 15 }
  0x4a   : > { %767 = vmatpush1.bf16.msra.mxu0 %v1156_v20  ;;  %808 = vmatpush1.bf16.msra.mxu1 %v1157_v21  ;;  %v1205_v57 = vld [vmem:[%s1442_s6 + $0x188] ss:$16 sps:$4 sm:$0xff]   ;;  %v1072_v58 = vcombine.high %v445_v52, %v445_v52  ;;  %v1074_v60 = vcombine.high %v446_v53, %v446_v53  ;;  %v1071_v61 = vcombine.low %v445_v52, %v445_v52  ;;  %s379_s10 = scalar_lea.vmem %s1543_s3, %s1553_s7 }
  0x4b   : > { %768 = vmatprep.subr.bf16.mxu0 %v1158_v22  ;;  %809 = vmatprep.subr.bf16.mxu1 %v1160_v23  ;;  %v1073_v62 = vcombine.low %v446_v53, %v446_v53  ;;  %390 = vst.msk [vmem:[#allocation2] sm:$0xf] %vm1507_vm2, %v1252_v3 }
  0x4c   : > { %v747_v63 = vsel %vm745_vm1, %v1071_v61, 0 }
  0x4d   : > { %v753_v0 = vsel %vm745_vm1, %v1073_v62, 0 }
  0x4e   : > { %769 = vmatpush1.bf16.msra.mxu0 %v1162_v24  ;;  %810 = vmatpush1.bf16.msra.mxu1 %v1163_v25 }
  0x4f   : > { %770 = vmatprep.subr.bf16.mxu0 %v1164_v26  ;;  %811 = vmatprep.subr.bf16.mxu1 %v1166_v27 }
  0x52   : > { %771 = vmatpush1.bf16.msra.mxu0 %v1168_v28  ;;  %812 = vmatpush1.bf16.msra.mxu1 %v1169_v29  ;;  %v391_v16 = vld [vmem:[#allocation2] sm:$0xf] }
  0x53   : > { %772 = vmatprep.subr.bf16.mxu0 %v1170_v30  ;;  %813 = vmatprep.subr.bf16.mxu1 %v1172_v31 }
  0x56   : > { %773 = vmatpush1.bf16.msra.mxu0 %v1174_v32  ;;  %814 = vmatpush1.bf16.msra.mxu1 %v1175_v33 }
  0x57   : > { %774 = vmatprep.subr.bf16.mxu0 %v1176_v34  ;;  %815 = vmatprep.subr.bf16.mxu1 %v1178_v35 }
  0x5a   : > { %775 = vmatpush1.bf16.msra.mxu0 %v1180_v36  ;;  %816 = vmatpush1.bf16.msra.mxu1 %v1181_v37 }
  0x5b   : > { %776 = vmatprep.subr.bf16.mxu0 %v1182_v38  ;;  %817 = vmatprep.subr.bf16.mxu1 %v1184_v39 }
  0x5e   : > { %777 = vmatpush1.bf16.msra.mxu0 %v1186_v40  ;;  %818 = vmatpush1.bf16.msra.mxu1 %v1187_v41 }
  0x5f   : > { %778 = vmatprep.subr.bf16.mxu0 %v1188_v42  ;;  %819 = vmatprep.subr.bf16.mxu1 %v1190_v43 }
  0x62   : > { %779 = vmatpush1.bf16.msra.mxu0 %v1192_v44  ;;  %820 = vmatpush1.bf16.msra.mxu1 %v1193_v45 }
  0x63   : > { %780 = vmatprep.subr.bf16.mxu0 %v1194_v46  ;;  %821 = vmatprep.subr.bf16.mxu1 %v1196_v47 }
  0x66   : > { %781 = vmatpush1.bf16.msra.mxu0 %v1198_v48  ;;  %822 = vmatpush1.bf16.msra.mxu1 %v1199_v49 }
  0x67   : > { %782 = vmatprep.subr.bf16.mxu0 %v1200_v50  ;;  %823 = vmatprep.subr.bf16.mxu1 %v1202_v51 }
  0x6a   : > { %783 = vmatpush1.bf16.msra.mxu0 %v1204_v54  ;;  %824 = vmatpush1.bf16.msra.mxu1 %v1205_v57 }
  0x6b   : > { %1075 = vmatprep.subr.msk.bf16.mxu0 %vm745_vm1, %v1072_v58  ;;  %1077 = vmatprep.subr.msk.bf16.mxu1 %vm745_vm1, %v1074_v60 }
  0x6e   : > { %785 = vmatpush1.bf16.msra.mxu0 %v747_v63  ;;  %826 = vmatpush1.bf16.msra.mxu1 %v753_v0 }
  0x71   : > { %791 = vmatmul.mubr.bf16.vlgmr.msra.gmra.mrb[0].mxu0 %v462_v1  ;;  %832 = vmatmul.mubr.bf16.vlgmr.msra.gmra.mrb[0].mxu1 %v462_v1 }
  0xb4   : > { %v883_v20 = vpop.permute.xlu0 %882 }
  0xb5   : > { %v888_v21 = vrot.slane %v883_v20, %v887_v19 }
 0x144   : > { %v792_v5 = vpop.f32.mrb[0].mxu0  ;;  %v833_v6 = vpop.f32.mrb[0].mxu1 }
 0x145   : > { %v794_v7 = vpop.f32.mrb[1].mxu0  ;;  %v835_v8 = vpop.f32.mrb[1].mxu1 }
 0x146   : > { %v844_v9 = vcombine.low %v792_v5, %v794_v7  ;;  %v845_v56 = vcombine.low %v833_v6, %v835_v8  ;;  %v796_v10 = vpop.f32.mrb[2].mxu0  ;;  %v837_v11 = vpop.f32.mrb[2].mxu1 }
 0x147   : > { %v797_v12 = vpop.f32.mrb[3].mxu0  ;;  %v838_v13 = vpop.f32.mrb[3].mxu1 }
 0x148   : > { %v852_v55 = vrot.slane %v844_v9, %v1451_v4  ;;  %v859_v14 = vrot.slane %v845_v56, %v1451_v4 }
 0x14a   : > { %v860_v15 = vcombine.low %v852_v55, %v859_v14 }
 0x14c   : > { %v867_v17 = vrot.slane %v860_v15, %v1451_v4 }
 0x14e   : > { %v869_v18 = vadd.f32 %v867_v17, %v391_v16 }
 0x150   : > { %874 = vst.msk [vmem:[#allocation2] sm:$0xf] %vm1507_vm2, %v869_v18 }
 0x157   : > { %v878_v22 = vld [vmem:[#allocation2] sm:$0xf] }
 0x158   : > { %v889_v23 = vadd.f32 %v888_v21, %v878_v22 }
 0x15a   : > { %890 = vst.msk [vmem:[%s379_s10] sm:$0xf] %vm1507_vm2, %v889_v23 }
 0x15b PF: > { %s15_s18 = sadd.s32 1, %s1248_s18   ;;  %s1546_s14 = smov %s1236_s15 }
 0x15c   : > { %p12_p10 = scmp.ge.s32.totalorder %s15_s18, 6   ;;  %s1547_s15 = smov %s1311_s21 }
 0x15d   : > { %s1548_s16 = smov %s1244_s17  ;;  %s1549_s17 = smov %s1551_s2 }
 0x15e   :  { %14 = sbr.rel (!%p12_p10) target bundleno = 6 (0x6), region = 104 }

// kernel: cnn_model_forward.30
= control target key start
LH: loop header
LB: loop body
LE: loop exit
PB: predicated region body
PF: predicated region fallthrough
CT: control target
= control target key end

     0   :  { %s2679_s0 = inlined_call_operand.vmem [shape: bf16[1,2048], index: 0, kind: input, shape index: {}]   ;;  %s2680_s1 = inlined_call_operand.vmem [shape: bf16[2048,2048], index: 1, kind: input, shape index: {}]   ;;  %s2681_s2 = inlined_call_operand.<no memory space> [shape: f32[1,1], index: 2, kind: input, shape index: {}]   ;;  %s2682_s3 = inlined_call_operand.vmem [shape: f32[1,2048], index: 3, kind: output, shape index: {}]  }
   0x1   :  { %v8_v0 = vstv %s2681_s2 }
   0x2   :  { %9 = vst [vmem:[#allocation3] sm:$0x1] %v8_v0 }
   0x3   :  { %s2160_s14 = smov 0   ;;  %s2162_s15 = smov 0  }
   0x4   :  { %s2164_s16 = smov 0   ;;  %s2166_s17 = smov 0  }
   0x5   :  { %s2168_s18 = smov 0   ;;  %s2170_s19 = smov 0  }
   0x6   :  { %s2172_s20 = smov 0  }
   0x7 LB: > { %s27_s2 = sadd.s32 1, %s2124_s18  ;;  %s30_s21 = sadd.s32 1, %s2128_s19  ;;  %s2132_s20 = sphi %s2172_s20, %s15_s20   ;;  %s2128_s19 = sphi %s2170_s19, %s2688_s19   ;;  %s2124_s18 = sphi %s2168_s18, %s2687_s18   ;;  %s2120_s17 = sphi %s2166_s17, %s2686_s17   ;;  %s2116_s16 = sphi %s2164_s16, %s2685_s16   ;;  %s2112_s15 = sphi %s2162_s15, %s2684_s15   ;;  %s2108_s14 = sphi %s2160_s14, %s2683_s14  }
   0x8   : > { %p28_p0 = scmp.ge.s32.totalorder %s27_s2, 4  ;;  %p78_p1 = scmp.ne.s32.totalorder %s2112_s15, %s2108_s14 }
   0x9   : > { %p79_p2 = scmp.eq.s32.totalorder %s2132_s20, 0  ;;  %s71_s25 = sadd.s32 1, %s2112_s15 }
   0xa   : > { %s2690_s2 = smov (%p28_p0, %s27_s2), 0  ;;  %s2692_s21 = smov (!%p28_p0, %s30_s21), %s2128_s19 }
   0xb   : > { %p80_p3 = por %p79_p2, %p78_p1  ;;  %p32_p4 = scmp.ge.s32.totalorder %s2692_s21, 4 }
   0xc   : > { %s66_s22 = ssub.s32 %s2124_s18, %s2690_s2  ;;  %p1674_p6 = scmp.ge.s32.totalorder %s2132_s20, 16 }
   0xd   : > { %s2694_s21 = smov (%p32_p4, %s2692_s21), 0 }
   0xe   : > { %s67_s23 = ssub.s32 %s2128_s19, %s2694_s21  ;;  %164 = sbr.rel (%p1674_p6) target bundleno = 92 (0x5c), region = 20 }
   0xf   : > { %s68_s24 = sor.u32 %s67_s23, %s66_s22 }
  0x10   : > { %p69_p5 = scmp.eq.s32.totalorder %s68_s24, 0 }
  0x12   : > { %s2211_s26 = scalar_select %p69_p5, %s2112_s15, %s71_s25  }
  0x15   : > { %179 = sbr.rel (!%p80_p3) target bundleno = 92 (0x5c), region = 28  ;;  %s181_s27 = sand.u32 (%p80_p3), 1, %s2112_s15  }
  0x16   : > { %s1677_s28 = sshll.u32 (%p80_p3), %s2128_s19, 2  ;;  %s1675_s29 = sshll.u32 (%p80_p3), %s181_s27, 10 }
  0x17   : > { %s1817_s30 = sshll.u32 (%p80_p3), %s2124_s18, 10  ;;  %s2225_s9 = scalar_lea.vmem (%p80_p3), [#allocation4], %s1675_s29 }
  0x18   : > { %s187_s4 = sadd.s32 (%p80_p3), %s1817_s30, %s1677_s28 }
  0x19   : > { %s1679_s5 = sshll.u32 (%p80_p3), %s187_s4, 2 }
  0x1a   : > { %s2220_s8 = scalar_lea.vmem (%p80_p3), %s2680_s1, %s1679_s5 }
  0x1b   : > { %v202_v1 = vld [vmem:[%s2220_s8] sm:$0xff] (%p80_p3)  ;;  %v204_v2 = vld [vmem:[%s2220_s8 + $0x8] sm:$0xff] (%p80_p3) }
  0x1c   : > { %v206_v3 = vld [vmem:[%s2220_s8 + $0x40] sm:$0xff]  ;;  %203 = vst [vmem:[%s2225_s9] sm:$0xff] %v202_v1  ;;  %205 = vst [vmem:[%s2225_s9 + $0x8] sm:$0xff] %v204_v2  ;;  %v208_v4 = vld [vmem:[%s2220_s8 + $0x48] sm:$0xff] }
  0x1d   : > { %207 = vst [vmem:[%s2225_s9 + $0x10] sm:$0xff] %v206_v3  ;;  %v210_v5 = vld [vmem:[%s2220_s8 + $0x80] sm:$0xff]  ;;  %v212_v6 = vld [vmem:[%s2220_s8 + $0x88] sm:$0xff]  ;;  %209 = vst [vmem:[%s2225_s9 + $0x18] sm:$0xff] %v208_v4 }
  0x1e   : > { %211 = vst [vmem:[%s2225_s9 + $0x20] sm:$0xff] %v210_v5  ;;  %213 = vst [vmem:[%s2225_s9 + $0x28] sm:$0xff] %v212_v6  ;;  %v214_v7 = vld [vmem:[%s2220_s8 + $0xc0] sm:$0xff]  ;;  %v216_v8 = vld [vmem:[%s2220_s8 + $0xc8] sm:$0xff] }
  0x1f   : > { %v218_v9 = vld [vmem:[%s2220_s8 + $0x100] sm:$0xff]  ;;  %215 = vst [vmem:[%s2225_s9 + $0x30] sm:$0xff] %v214_v7  ;;  %217 = vst [vmem:[%s2225_s9 + $0x38] sm:$0xff] %v216_v8  ;;  %v220_v10 = vld [vmem:[%s2220_s8 + $0x108] sm:$0xff] }
  0x20   : > { %219 = vst [vmem:[%s2225_s9 + $0x40] sm:$0xff] %v218_v9  ;;  %v222_v11 = vld [vmem:[%s2220_s8 + $0x140] sm:$0xff]  ;;  %v224_v12 = vld [vmem:[%s2220_s8 + $0x148] sm:$0xff]  ;;  %221 = vst [vmem:[%s2225_s9 + $0x48] sm:$0xff] %v220_v10 }
  0x21   : > { %223 = vst [vmem:[%s2225_s9 + $0x50] sm:$0xff] %v222_v11  ;;  %225 = vst [vmem:[%s2225_s9 + $0x58] sm:$0xff] %v224_v12  ;;  %v226_v13 = vld [vmem:[%s2220_s8 + $0x180] sm:$0xff]  ;;  %v228_v14 = vld [vmem:[%s2220_s8 + $0x188] sm:$0xff] }
  0x22   : > { %v230_v15 = vld [vmem:[%s2220_s8 + $0x1c0] sm:$0xff]  ;;  %227 = vst [vmem:[%s2225_s9 + $0x60] sm:$0xff] %v226_v13  ;;  %229 = vst [vmem:[%s2225_s9 + $0x68] sm:$0xff] %v228_v14  ;;  %v232_v16 = vld [vmem:[%s2220_s8 + $0x1c8] sm:$0xff] }
  0x23   : > { %231 = vst [vmem:[%s2225_s9 + $0x70] sm:$0xff] %v230_v15  ;;  %v234_v17 = vld [vmem:[%s2220_s8 + $0x200] sm:$0xff]  ;;  %v236_v18 = vld [vmem:[%s2220_s8 + $0x208] sm:$0xff]  ;;  %233 = vst [vmem:[%s2225_s9 + $0x78] sm:$0xff] %v232_v16 }
  0x24   : > { %235 = vst [vmem:[%s2225_s9 + $0x80] sm:$0xff] %v234_v17  ;;  %237 = vst [vmem:[%s2225_s9 + $0x88] sm:$0xff] %v236_v18  ;;  %v238_v19 = vld [vmem:[%s2220_s8 + $0x240] sm:$0xff]  ;;  %v240_v20 = vld [vmem:[%s2220_s8 + $0x248] sm:$0xff] }
  0x25   : > { %v242_v21 = vld [vmem:[%s2220_s8 + $0x280] sm:$0xff]  ;;  %239 = vst [vmem:[%s2225_s9 + $0x90] sm:$0xff] %v238_v19  ;;  %241 = vst [vmem:[%s2225_s9 + $0x98] sm:$0xff] %v240_v20  ;;  %v244_v22 = vld [vmem:[%s2220_s8 + $0x288] sm:$0xff] }
  0x26   : > { %243 = vst [vmem:[%s2225_s9 + $0xa0] sm:$0xff] %v242_v21  ;;  %v246_v23 = vld [vmem:[%s2220_s8 + $0x2c0] sm:$0xff]  ;;  %v248_v24 = vld [vmem:[%s2220_s8 + $0x2c8] sm:$0xff]  ;;  %245 = vst [vmem:[%s2225_s9 + $0xa8] sm:$0xff] %v244_v22 }
  0x27   : > { %247 = vst [vmem:[%s2225_s9 + $0xb0] sm:$0xff] %v246_v23  ;;  %249 = vst [vmem:[%s2225_s9 + $0xb8] sm:$0xff] %v248_v24  ;;  %v250_v25 = vld [vmem:[%s2220_s8 + $0x300] sm:$0xff]  ;;  %v252_v26 = vld [vmem:[%s2220_s8 + $0x308] sm:$0xff] }
  0x28   : > { %v254_v27 = vld [vmem:[%s2220_s8 + $0x340] sm:$0xff]  ;;  %251 = vst [vmem:[%s2225_s9 + $0xc0] sm:$0xff] %v250_v25  ;;  %253 = vst [vmem:[%s2225_s9 + $0xc8] sm:$0xff] %v252_v26  ;;  %v256_v28 = vld [vmem:[%s2220_s8 + $0x348] sm:$0xff] }
  0x29   : > { %255 = vst [vmem:[%s2225_s9 + $0xd0] sm:$0xff] %v254_v27  ;;  %v258_v29 = vld [vmem:[%s2220_s8 + $0x380] sm:$0xff]  ;;  %v260_v30 = vld [vmem:[%s2220_s8 + $0x388] sm:$0xff]  ;;  %257 = vst [vmem:[%s2225_s9 + $0xd8] sm:$0xff] %v256_v28 }
  0x2a   : > { %259 = vst [vmem:[%s2225_s9 + $0xe0] sm:$0xff] %v258_v29  ;;  %261 = vst [vmem:[%s2225_s9 + $0xe8] sm:$0xff] %v260_v30  ;;  %v262_v31 = vld [vmem:[%s2220_s8 + $0x3c0] sm:$0xff]  ;;  %v264_v32 = vld [vmem:[%s2220_s8 + $0x3c8] sm:$0xff] }
  0x2b   : > { %v266_v33 = vld [vmem:[%s2220_s8 + $0x400] sm:$0xff]  ;;  %263 = vst [vmem:[%s2225_s9 + $0xf0] sm:$0xff] %v262_v31  ;;  %265 = vst [vmem:[%s2225_s9 + $0xf8] sm:$0xff] %v264_v32  ;;  %v268_v34 = vld [vmem:[%s2220_s8 + $0x408] sm:$0xff] }
  0x2c   : > { %267 = vst [vmem:[%s2225_s9 + $0x100] sm:$0xff] %v266_v33  ;;  %v270_v35 = vld [vmem:[%s2220_s8 + $0x440] sm:$0xff]  ;;  %v272_v36 = vld [vmem:[%s2220_s8 + $0x448] sm:$0xff]  ;;  %269 = vst [vmem:[%s2225_s9 + $0x108] sm:$0xff] %v268_v34 }
  0x2d   : > { %271 = vst [vmem:[%s2225_s9 + $0x110] sm:$0xff] %v270_v35  ;;  %273 = vst [vmem:[%s2225_s9 + $0x118] sm:$0xff] %v272_v36  ;;  %v274_v37 = vld [vmem:[%s2220_s8 + $0x480] sm:$0xff]  ;;  %v276_v38 = vld [vmem:[%s2220_s8 + $0x488] sm:$0xff] }
  0x2e   : > { %v278_v39 = vld [vmem:[%s2220_s8 + $0x4c0] sm:$0xff]  ;;  %275 = vst [vmem:[%s2225_s9 + $0x120] sm:$0xff] %v274_v37  ;;  %277 = vst [vmem:[%s2225_s9 + $0x128] sm:$0xff] %v276_v38  ;;  %v280_v40 = vld [vmem:[%s2220_s8 + $0x4c8] sm:$0xff] }
  0x2f   : > { %279 = vst [vmem:[%s2225_s9 + $0x130] sm:$0xff] %v278_v39  ;;  %v282_v41 = vld [vmem:[%s2220_s8 + $0x500] sm:$0xff]  ;;  %v284_v42 = vld [vmem:[%s2220_s8 + $0x508] sm:$0xff]  ;;  %281 = vst [vmem:[%s2225_s9 + $0x138] sm:$0xff] %v280_v40 }
  0x30   : > { %283 = vst [vmem:[%s2225_s9 + $0x140] sm:$0xff] %v282_v41  ;;  %285 = vst [vmem:[%s2225_s9 + $0x148] sm:$0xff] %v284_v42  ;;  %v286_v43 = vld [vmem:[%s2220_s8 + $0x540] sm:$0xff]  ;;  %v288_v44 = vld [vmem:[%s2220_s8 + $0x548] sm:$0xff] }
  0x31   : > { %v290_v45 = vld [vmem:[%s2220_s8 + $0x580] sm:$0xff]  ;;  %287 = vst [vmem:[%s2225_s9 + $0x150] sm:$0xff] %v286_v43  ;;  %289 = vst [vmem:[%s2225_s9 + $0x158] sm:$0xff] %v288_v44  ;;  %v292_v46 = vld [vmem:[%s2220_s8 + $0x588] sm:$0xff] }
  0x32   : > { %291 = vst [vmem:[%s2225_s9 + $0x160] sm:$0xff] %v290_v45  ;;  %v294_v47 = vld [vmem:[%s2220_s8 + $0x5c0] sm:$0xff]  ;;  %v296_v48 = vld [vmem:[%s2220_s8 + $0x5c8] sm:$0xff]  ;;  %293 = vst [vmem:[%s2225_s9 + $0x168] sm:$0xff] %v292_v46 }
  0x33   : > { %295 = vst [vmem:[%s2225_s9 + $0x170] sm:$0xff] %v294_v47  ;;  %297 = vst [vmem:[%s2225_s9 + $0x178] sm:$0xff] %v296_v48  ;;  %v298_v49 = vld [vmem:[%s2220_s8 + $0x600] sm:$0xff]  ;;  %v300_v50 = vld [vmem:[%s2220_s8 + $0x608] sm:$0xff] }
  0x34   : > { %v302_v51 = vld [vmem:[%s2220_s8 + $0x640] sm:$0xff]  ;;  %299 = vst [vmem:[%s2225_s9 + $0x180] sm:$0xff] %v298_v49  ;;  %301 = vst [vmem:[%s2225_s9 + $0x188] sm:$0xff] %v300_v50  ;;  %v304_v52 = vld [vmem:[%s2220_s8 + $0x648] sm:$0xff] }
  0x35   : > { %303 = vst [vmem:[%s2225_s9 + $0x190] sm:$0xff] %v302_v51  ;;  %v306_v53 = vld [vmem:[%s2220_s8 + $0x680] sm:$0xff]  ;;  %v308_v54 = vld [vmem:[%s2220_s8 + $0x688] sm:$0xff]  ;;  %305 = vst [vmem:[%s2225_s9 + $0x198] sm:$0xff] %v304_v52 }
  0x36   : > { %307 = vst [vmem:[%s2225_s9 + $0x1a0] sm:$0xff] %v306_v53  ;;  %309 = vst [vmem:[%s2225_s9 + $0x1a8] sm:$0xff] %v308_v54  ;;  %v310_v55 = vld [vmem:[%s2220_s8 + $0x6c0] sm:$0xff]  ;;  %v312_v56 = vld [vmem:[%s2220_s8 + $0x6c8] sm:$0xff] }
  0x37   : > { %v314_v57 = vld [vmem:[%s2220_s8 + $0x700] sm:$0xff]  ;;  %311 = vst [vmem:[%s2225_s9 + $0x1b0] sm:$0xff] %v310_v55  ;;  %313 = vst [vmem:[%s2225_s9 + $0x1b8] sm:$0xff] %v312_v56  ;;  %v316_v58 = vld [vmem:[%s2220_s8 + $0x708] sm:$0xff] }
  0x38   : > { %315 = vst [vmem:[%s2225_s9 + $0x1c0] sm:$0xff] %v314_v57  ;;  %v318_v59 = vld [vmem:[%s2220_s8 + $0x740] sm:$0xff]  ;;  %v320_v60 = vld [vmem:[%s2220_s8 + $0x748] sm:$0xff]  ;;  %317 = vst [vmem:[%s2225_s9 + $0x1c8] sm:$0xff] %v316_v58 }
  0x39   : > { %319 = vst [vmem:[%s2225_s9 + $0x1d0] sm:$0xff] %v318_v59  ;;  %321 = vst [vmem:[%s2225_s9 + $0x1d8] sm:$0xff] %v320_v60  ;;  %v322_v61 = vld [vmem:[%s2220_s8 + $0x780] sm:$0xff]  ;;  %v324_v62 = vld [vmem:[%s2220_s8 + $0x788] sm:$0xff] }
  0x3a   : > { %v326_v63 = vld [vmem:[%s2220_s8 + $0x7c0] sm:$0xff]  ;;  %323 = vst [vmem:[%s2225_s9 + $0x1e0] sm:$0xff] %v322_v61  ;;  %325 = vst [vmem:[%s2225_s9 + $0x1e8] sm:$0xff] %v324_v62  ;;  %v328_v0 = vld [vmem:[%s2220_s8 + $0x7c8] sm:$0xff] }
  0x3b   : > { %327 = vst [vmem:[%s2225_s9 + $0x1f0] sm:$0xff] %v326_v63  ;;  %v330_v1 = vld [vmem:[%s2220_s8 + $0x800] sm:$0xff]  ;;  %v332_v2 = vld [vmem:[%s2220_s8 + $0x808] sm:$0xff]  ;;  %329 = vst [vmem:[%s2225_s9 + $0x1f8] sm:$0xff] %v328_v0 }
  0x3c   : > { %331 = vst [vmem:[%s2225_s9 + $0x200] sm:$0xff] %v330_v1  ;;  %333 = vst [vmem:[%s2225_s9 + $0x208] sm:$0xff] %v332_v2  ;;  %v334_v3 = vld [vmem:[%s2220_s8 + $0x840] sm:$0xff]  ;;  %v336_v4 = vld [vmem:[%s2220_s8 + $0x848] sm:$0xff] }
  0x3d   : > { %v338_v5 = vld [vmem:[%s2220_s8 + $0x880] sm:$0xff]  ;;  %335 = vst [vmem:[%s2225_s9 + $0x210] sm:$0xff] %v334_v3  ;;  %337 = vst [vmem:[%s2225_s9 + $0x218] sm:$0xff] %v336_v4  ;;  %v340_v6 = vld [vmem:[%s2220_s8 + $0x888] sm:$0xff] }
  0x3e   : > { %339 = vst [vmem:[%s2225_s9 + $0x220] sm:$0xff] %v338_v5  ;;  %v342_v7 = vld [vmem:[%s2220_s8 + $0x8c0] sm:$0xff]  ;;  %v344_v8 = vld [vmem:[%s2220_s8 + $0x8c8] sm:$0xff]  ;;  %341 = vst [vmem:[%s2225_s9 + $0x228] sm:$0xff] %v340_v6 }
  0x3f   : > { %343 = vst [vmem:[%s2225_s9 + $0x230] sm:$0xff] %v342_v7  ;;  %345 = vst [vmem:[%s2225_s9 + $0x238] sm:$0xff] %v344_v8  ;;  %v346_v9 = vld [vmem:[%s2220_s8 + $0x900] sm:$0xff]  ;;  %v348_v10 = vld [vmem:[%s2220_s8 + $0x908] sm:$0xff] }
  0x40   : > { %v350_v11 = vld [vmem:[%s2220_s8 + $0x940] sm:$0xff]  ;;  %347 = vst [vmem:[%s2225_s9 + $0x240] sm:$0xff] %v346_v9  ;;  %349 = vst [vmem:[%s2225_s9 + $0x248] sm:$0xff] %v348_v10  ;;  %v352_v12 = vld [vmem:[%s2220_s8 + $0x948] sm:$0xff] }
  0x41   : > { %351 = vst [vmem:[%s2225_s9 + $0x250] sm:$0xff] %v350_v11  ;;  %v354_v13 = vld [vmem:[%s2220_s8 + $0x980] sm:$0xff]  ;;  %v356_v14 = vld [vmem:[%s2220_s8 + $0x988] sm:$0xff]  ;;  %353 = vst [vmem:[%s2225_s9 + $0x258] sm:$0xff] %v352_v12 }
  0x42   : > { %355 = vst [vmem:[%s2225_s9 + $0x260] sm:$0xff] %v354_v13  ;;  %357 = vst [vmem:[%s2225_s9 + $0x268] sm:$0xff] %v356_v14  ;;  %v358_v15 = vld [vmem:[%s2220_s8 + $0x9c0] sm:$0xff]  ;;  %v360_v16 = vld [vmem:[%s2220_s8 + $0x9c8] sm:$0xff] }
  0x43   : > { %v362_v17 = vld [vmem:[%s2220_s8 + $0xa00] sm:$0xff]  ;;  %359 = vst [vmem:[%s2225_s9 + $0x270] sm:$0xff] %v358_v15  ;;  %361 = vst [vmem:[%s2225_s9 + $0x278] sm:$0xff] %v360_v16  ;;  %v364_v18 = vld [vmem:[%s2220_s8 + $0xa08] sm:$0xff] }
  0x44   : > { %363 = vst [vmem:[%s2225_s9 + $0x280] sm:$0xff] %v362_v17  ;;  %v366_v19 = vld [vmem:[%s2220_s8 + $0xa40] sm:$0xff]  ;;  %v368_v20 = vld [vmem:[%s2220_s8 + $0xa48] sm:$0xff]  ;;  %365 = vst [vmem:[%s2225_s9 + $0x288] sm:$0xff] %v364_v18 }
  0x45   : > { %367 = vst [vmem:[%s2225_s9 + $0x290] sm:$0xff] %v366_v19  ;;  %369 = vst [vmem:[%s2225_s9 + $0x298] sm:$0xff] %v368_v20  ;;  %v370_v21 = vld [vmem:[%s2220_s8 + $0xa80] sm:$0xff]  ;;  %v372_v22 = vld [vmem:[%s2220_s8 + $0xa88] sm:$0xff] }
  0x46   : > { %v374_v23 = vld [vmem:[%s2220_s8 + $0xac0] sm:$0xff]  ;;  %371 = vst [vmem:[%s2225_s9 + $0x2a0] sm:$0xff] %v370_v21  ;;  %373 = vst [vmem:[%s2225_s9 + $0x2a8] sm:$0xff] %v372_v22  ;;  %v376_v24 = vld [vmem:[%s2220_s8 + $0xac8] sm:$0xff] }
  0x47   : > { %375 = vst [vmem:[%s2225_s9 + $0x2b0] sm:$0xff] %v374_v23  ;;  %v378_v25 = vld [vmem:[%s2220_s8 + $0xb00] sm:$0xff]  ;;  %v380_v26 = vld [vmem:[%s2220_s8 + $0xb08] sm:$0xff]  ;;  %377 = vst [vmem:[%s2225_s9 + $0x2b8] sm:$0xff] %v376_v24 }
  0x48   : > { %379 = vst [vmem:[%s2225_s9 + $0x2c0] sm:$0xff] %v378_v25  ;;  %381 = vst [vmem:[%s2225_s9 + $0x2c8] sm:$0xff] %v380_v26  ;;  %v382_v27 = vld [vmem:[%s2220_s8 + $0xb40] sm:$0xff]  ;;  %v384_v28 = vld [vmem:[%s2220_s8 + $0xb48] sm:$0xff] }
  0x49   : > { %v386_v29 = vld [vmem:[%s2220_s8 + $0xb80] sm:$0xff]  ;;  %383 = vst [vmem:[%s2225_s9 + $0x2d0] sm:$0xff] %v382_v27  ;;  %385 = vst [vmem:[%s2225_s9 + $0x2d8] sm:$0xff] %v384_v28  ;;  %v388_v30 = vld [vmem:[%s2220_s8 + $0xb88] sm:$0xff] }
  0x4a   : > { %387 = vst [vmem:[%s2225_s9 + $0x2e0] sm:$0xff] %v386_v29  ;;  %v390_v31 = vld [vmem:[%s2220_s8 + $0xbc0] sm:$0xff]  ;;  %v392_v32 = vld [vmem:[%s2220_s8 + $0xbc8] sm:$0xff]  ;;  %389 = vst [vmem:[%s2225_s9 + $0x2e8] sm:$0xff] %v388_v30 }
  0x4b   : > { %391 = vst [vmem:[%s2225_s9 + $0x2f0] sm:$0xff] %v390_v31  ;;  %393 = vst [vmem:[%s2225_s9 + $0x2f8] sm:$0xff] %v392_v32  ;;  %v394_v33 = vld [vmem:[%s2220_s8 + $0xc00] sm:$0xff]  ;;  %v396_v34 = vld [vmem:[%s2220_s8 + $0xc08] sm:$0xff] }
  0x4c   : > { %v398_v35 = vld [vmem:[%s2220_s8 + $0xc40] sm:$0xff]  ;;  %395 = vst [vmem:[%s2225_s9 + $0x300] sm:$0xff] %v394_v33  ;;  %397 = vst [vmem:[%s2225_s9 + $0x308] sm:$0xff] %v396_v34  ;;  %v400_v36 = vld [vmem:[%s2220_s8 + $0xc48] sm:$0xff] }
  0x4d   : > { %399 = vst [vmem:[%s2225_s9 + $0x310] sm:$0xff] %v398_v35  ;;  %v402_v37 = vld [vmem:[%s2220_s8 + $0xc80] sm:$0xff]  ;;  %v404_v38 = vld [vmem:[%s2220_s8 + $0xc88] sm:$0xff]  ;;  %401 = vst [vmem:[%s2225_s9 + $0x318] sm:$0xff] %v400_v36 }
  0x4e   : > { %403 = vst [vmem:[%s2225_s9 + $0x320] sm:$0xff] %v402_v37  ;;  %405 = vst [vmem:[%s2225_s9 + $0x328] sm:$0xff] %v404_v38  ;;  %v406_v39 = vld [vmem:[%s2220_s8 + $0xcc0] sm:$0xff]  ;;  %v408_v40 = vld [vmem:[%s2220_s8 + $0xcc8] sm:$0xff] }
  0x4f   : > { %v410_v41 = vld [vmem:[%s2220_s8 + $0xd00] sm:$0xff]  ;;  %407 = vst [vmem:[%s2225_s9 + $0x330] sm:$0xff] %v406_v39  ;;  %409 = vst [vmem:[%s2225_s9 + $0x338] sm:$0xff] %v408_v40  ;;  %v412_v42 = vld [vmem:[%s2220_s8 + $0xd08] sm:$0xff] }
  0x50   : > { %411 = vst [vmem:[%s2225_s9 + $0x340] sm:$0xff] %v410_v41  ;;  %v414_v43 = vld [vmem:[%s2220_s8 + $0xd40] sm:$0xff]  ;;  %v416_v44 = vld [vmem:[%s2220_s8 + $0xd48] sm:$0xff]  ;;  %413 = vst [vmem:[%s2225_s9 + $0x348] sm:$0xff] %v412_v42 }
  0x51   : > { %415 = vst [vmem:[%s2225_s9 + $0x350] sm:$0xff] %v414_v43  ;;  %417 = vst [vmem:[%s2225_s9 + $0x358] sm:$0xff] %v416_v44  ;;  %v418_v45 = vld [vmem:[%s2220_s8 + $0xd80] sm:$0xff]  ;;  %v420_v46 = vld [vmem:[%s2220_s8 + $0xd88] sm:$0xff] }
  0x52   : > { %v422_v47 = vld [vmem:[%s2220_s8 + $0xdc0] sm:$0xff]  ;;  %419 = vst [vmem:[%s2225_s9 + $0x360] sm:$0xff] %v418_v45  ;;  %421 = vst [vmem:[%s2225_s9 + $0x368] sm:$0xff] %v420_v46  ;;  %v424_v48 = vld [vmem:[%s2220_s8 + $0xdc8] sm:$0xff] }
  0x53   : > { %423 = vst [vmem:[%s2225_s9 + $0x370] sm:$0xff] %v422_v47  ;;  %v426_v49 = vld [vmem:[%s2220_s8 + $0xe00] sm:$0xff]  ;;  %v428_v50 = vld [vmem:[%s2220_s8 + $0xe08] sm:$0xff]  ;;  %425 = vst [vmem:[%s2225_s9 + $0x378] sm:$0xff] %v424_v48 }
  0x54   : > { %427 = vst [vmem:[%s2225_s9 + $0x380] sm:$0xff] %v426_v49  ;;  %429 = vst [vmem:[%s2225_s9 + $0x388] sm:$0xff] %v428_v50  ;;  %v430_v51 = vld [vmem:[%s2220_s8 + $0xe40] sm:$0xff]  ;;  %v432_v52 = vld [vmem:[%s2220_s8 + $0xe48] sm:$0xff] }
  0x55   : > { %v434_v53 = vld [vmem:[%s2220_s8 + $0xe80] sm:$0xff]  ;;  %431 = vst [vmem:[%s2225_s9 + $0x390] sm:$0xff] %v430_v51  ;;  %433 = vst [vmem:[%s2225_s9 + $0x398] sm:$0xff] %v432_v52  ;;  %v436_v54 = vld [vmem:[%s2220_s8 + $0xe88] sm:$0xff] }
  0x56   : > { %435 = vst [vmem:[%s2225_s9 + $0x3a0] sm:$0xff] %v434_v53  ;;  %v438_v55 = vld [vmem:[%s2220_s8 + $0xec0] sm:$0xff]  ;;  %v440_v56 = vld [vmem:[%s2220_s8 + $0xec8] sm:$0xff]  ;;  %437 = vst [vmem:[%s2225_s9 + $0x3a8] sm:$0xff] %v436_v54 }
  0x57   : > { %439 = vst [vmem:[%s2225_s9 + $0x3b0] sm:$0xff] %v438_v55  ;;  %441 = vst [vmem:[%s2225_s9 + $0x3b8] sm:$0xff] %v440_v56  ;;  %v442_v57 = vld [vmem:[%s2220_s8 + $0xf00] sm:$0xff]  ;;  %v444_v58 = vld [vmem:[%s2220_s8 + $0xf08] sm:$0xff] }
  0x58   : > { %v446_v59 = vld [vmem:[%s2220_s8 + $0xf40] sm:$0xff]  ;;  %443 = vst [vmem:[%s2225_s9 + $0x3c0] sm:$0xff] %v442_v57  ;;  %445 = vst [vmem:[%s2225_s9 + $0x3c8] sm:$0xff] %v444_v58  ;;  %v448_v60 = vld [vmem:[%s2220_s8 + $0xf48] sm:$0xff] }
  0x59   : > { %447 = vst [vmem:[%s2225_s9 + $0x3d0] sm:$0xff] %v446_v59  ;;  %v450_v61 = vld [vmem:[%s2220_s8 + $0xf80] sm:$0xff]  ;;  %v452_v62 = vld [vmem:[%s2220_s8 + $0xf88] sm:$0xff]  ;;  %449 = vst [vmem:[%s2225_s9 + $0x3d8] sm:$0xff] %v448_v60 }
  0x5a   : > { %451 = vst [vmem:[%s2225_s9 + $0x3e0] sm:$0xff] %v450_v61  ;;  %453 = vst [vmem:[%s2225_s9 + $0x3e8] sm:$0xff] %v452_v62  ;;  %v454_v63 = vld [vmem:[%s2220_s8 + $0xfc0] sm:$0xff]  ;;  %v456_v0 = vld [vmem:[%s2220_s8 + $0xfc8] sm:$0xff] }
  0x5b   : > { %455 = vst [vmem:[%s2225_s9 + $0x3f0] sm:$0xff] %v454_v63  ;;  %457 = vst [vmem:[%s2225_s9 + $0x3f8] sm:$0xff] %v456_v0 }
  0x5c PF: > { %p1680_p7 = scmp.ge.s32.totalorder %s2132_s20, 1  ;;  %p462_p8 = scmp.lt.s32.totalorder %s2132_s20, 17 }
  0x5e   : > { %p463_p9 = pnand %p1680_p7, %p462_p8 }
  0x5f   : > { %s469_s10 = sand.u32 (!%p463_p9), 1, %s2108_s14   ;;  %s1682_s11 = sshll.u32 (!%p463_p9), %s2116_s16, 2 }
  0x60   : > { %466 = sbr.rel (%p463_p9) target bundleno = 475 (0x1db), region = 51  ;;  %s1681_s12 = sshll.u32 (!%p463_p9), %s469_s10, 10 }
  0x61   : > { %p509_p10 = scmp.lt.s32.totalorder (!%p463_p9), %s1682_s11, 15  ;;  %s1683_s13 = sshll.u32 (!%p463_p9), %s2120_s17, 2 }
  0x62   : > { %p523_p11 = scmp.lt.s32.totalorder (!%p463_p9), %s1683_s13, 15  ;;  %s2497_s14 = scalar_lea.vmem (!%p463_p9), [#allocation4], %s1681_s12 }
  0x63   : > { %p1684_p12 = scmp.ne.s32.totalorder (!%p463_p9), %s2116_s16, 0 }
  0x67   : > { %s2696_s11 = smov (!%p509_p10, %s1682_s11), 15  ;;  %s2698_s13 = smov (!%p523_p11, %s1683_s13), 15 }
  0x68   : > { %s513_s24 = scalar_lea.vmem %s2679_s0, %s2696_s11  ;;  %s527_s28 = scalar_lea.vmem %s2682_s3, %s2698_s13  ;;  %v533_v1 = vlaneseq (!%p1684_p12)  ;;  %v2134_v2 = vmov (!%p1684_p12), 0.0  }
  0x69   : > { %532 = sbr.rel (%p1684_p12) target bundleno = 112 (0x70), region = 59 }
  0x6a   : > { %vm535_vm0 = vcmp.lt.s32.totalorder (!%p1684_p12), %v533_v1, 512 }
  0x6b   : > { %537 = vst.msk [vmem:[#allocation2] sm:$0xf] (!%p1684_p12), %vm535_vm0, %v2134_v2 }
  0x70 PF: > { %v1885_v3 = vld [vmem:[%s2497_s14 + $0x4] ss:$16 sps:$4 sm:$0xff]   ;;  %v1887_v4 = vld [vmem:[%s2497_s14 + $0xc] ss:$16 sps:$4 sm:$0xff]   ;;  %v1889_v5 = vld [vmem:[%s2497_s14] ss:$16 sps:$4 sm:$0xff]   ;;  %v680_v43 = vlaneseq }
  0x71   : > { %1337 = vmatprep.subr.bf16.mxu0 %v1885_v3  ;;  %v1890_v6 = vld [vmem:[%s2497_s14 + $0x8] ss:$16 sps:$4 sm:$0xff]   ;;  %1419 = vmatprep.subr.bf16.mxu1 %v1887_v4  ;;  %v1891_v7 = vld [vmem:[%s2497_s14 + $0x24] ss:$16 sps:$4 sm:$0xff]   ;;  %v1893_v8 = vld [vmem:[%s2497_s14 + $0x2c] ss:$16 sps:$4 sm:$0xff]  }
  0x72   : > { %1338 = vmatpush1.bf16.msra.mxu0 %v1889_v5  ;;  %1420 = vmatpush1.bf16.msra.mxu1 %v1890_v6  ;;  %v1895_v9 = vld [vmem:[%s2497_s14 + $0x20] ss:$16 sps:$4 sm:$0xff]   ;;  %v1896_v10 = vld [vmem:[%s2497_s14 + $0x28] ss:$16 sps:$4 sm:$0xff]   ;;  %v1897_v11 = vld [vmem:[%s2497_s14 + $0x44] ss:$16 sps:$4 sm:$0xff]  }
  0x73   : > { %1339 = vmatprep.subr.bf16.mxu0 %v1891_v7  ;;  %1421 = vmatprep.subr.bf16.mxu1 %v1893_v8  ;;  %v1899_v12 = vld [vmem:[%s2497_s14 + $0x4c] ss:$16 sps:$4 sm:$0xff]   ;;  %v1901_v13 = vld [vmem:[%s2497_s14 + $0x40] ss:$16 sps:$4 sm:$0xff]   ;;  %v1902_v14 = vld [vmem:[%s2497_s14 + $0x48] ss:$16 sps:$4 sm:$0xff]  }
  0x74   : > { %v1903_v15 = vld [vmem:[%s2497_s14 + $0x64] ss:$16 sps:$4 sm:$0xff]   ;;  %v1905_v16 = vld [vmem:[%s2497_s14 + $0x6c] ss:$16 sps:$4 sm:$0xff]   ;;  %v1907_v17 = vld [vmem:[%s2497_s14 + $0x60] ss:$16 sps:$4 sm:$0xff]  }
  0x75   : > { %v1908_v18 = vld [vmem:[%s2497_s14 + $0x68] ss:$16 sps:$4 sm:$0xff]   ;;  %v1909_v19 = vld [vmem:[%s2497_s14 + $0x84] ss:$16 sps:$4 sm:$0xff]   ;;  %v1911_v20 = vld [vmem:[%s2497_s14 + $0x8c] ss:$16 sps:$4 sm:$0xff]  }
  0x76   : > { %1340 = vmatpush1.bf16.msra.mxu0 %v1895_v9  ;;  %1422 = vmatpush1.bf16.msra.mxu1 %v1896_v10  ;;  %v1913_v21 = vld [vmem:[%s2497_s14 + $0x80] ss:$16 sps:$4 sm:$0xff]   ;;  %v1914_v22 = vld [vmem:[%s2497_s14 + $0x88] ss:$16 sps:$4 sm:$0xff]   ;;  %v1915_v23 = vld [vmem:[%s2497_s14 + $0xa4] ss:$16 sps:$4 sm:$0xff]  }
  0x77   : > { %1341 = vmatprep.subr.bf16.mxu0 %v1897_v11  ;;  %1423 = vmatprep.subr.bf16.mxu1 %v1899_v12  ;;  %v1917_v24 = vld [vmem:[%s2497_s14 + $0xac] ss:$16 sps:$4 sm:$0xff]   ;;  %v1919_v25 = vld [vmem:[%s2497_s14 + $0xa0] ss:$16 sps:$4 sm:$0xff]   ;;  %v1920_v26 = vld [vmem:[%s2497_s14 + $0xa8] ss:$16 sps:$4 sm:$0xff]  }
  0x78   : > { %v1921_v27 = vld [vmem:[%s2497_s14 + $0xc4] ss:$16 sps:$4 sm:$0xff]   ;;  %v1923_v28 = vld [vmem:[%s2497_s14 + $0xcc] ss:$16 sps:$4 sm:$0xff]   ;;  %v1925_v29 = vld [vmem:[%s2497_s14 + $0xc0] ss:$16 sps:$4 sm:$0xff]  }
  0x79   : > { %v1926_v30 = vld [vmem:[%s2497_s14 + $0xc8] ss:$16 sps:$4 sm:$0xff]   ;;  %v1927_v31 = vld [vmem:[%s2497_s14 + $0xe4] ss:$16 sps:$4 sm:$0xff]   ;;  %v1929_v32 = vld [vmem:[%s2497_s14 + $0xec] ss:$16 sps:$4 sm:$0xff]  }
  0x7a   : > { %1342 = vmatpush1.bf16.msra.mxu0 %v1901_v13  ;;  %1424 = vmatpush1.bf16.msra.mxu1 %v1902_v14  ;;  %v1931_v33 = vld [vmem:[%s2497_s14 + $0xe0] ss:$16 sps:$4 sm:$0xff]   ;;  %v1932_v34 = vld [vmem:[%s2497_s14 + $0xe8] ss:$16 sps:$4 sm:$0xff]   ;;  %v1933_v35 = vld [vmem:[%s2497_s14 + $0x104] ss:$16 sps:$4 sm:$0xff]  }
  0x7b   : > { %1343 = vmatprep.subr.bf16.mxu0 %v1903_v15  ;;  %1425 = vmatprep.subr.bf16.mxu1 %v1905_v16  ;;  %v1935_v36 = vld [vmem:[%s2497_s14 + $0x10c] ss:$16 sps:$4 sm:$0xff]   ;;  %v1937_v37 = vld [vmem:[%s2497_s14 + $0x100] ss:$16 sps:$4 sm:$0xff]   ;;  %v1938_v38 = vld [vmem:[%s2497_s14 + $0x108] ss:$16 sps:$4 sm:$0xff]  }
  0x7c   : > { %v1939_v39 = vld [vmem:[%s2497_s14 + $0x124] ss:$16 sps:$4 sm:$0xff]   ;;  %v1941_v40 = vld [vmem:[%s2497_s14 + $0x12c] ss:$16 sps:$4 sm:$0xff]   ;;  %v2135_v41 = vmov 1966171168  }
  0x7d   : > { %v678_v42 = vunpack.c.l.s4 %v2135_v41  ;;  %v1943_v44 = vld [vmem:[%s2497_s14 + $0x120] ss:$16 sps:$4 sm:$0xff]   ;;  %v1944_v45 = vld [vmem:[%s2497_s14 + $0x128] ss:$16 sps:$4 sm:$0xff]   ;;  %v1945_v46 = vld [vmem:[%s2497_s14 + $0x144] ss:$16 sps:$4 sm:$0xff]  }
  0x7e   : > { %1344 = vmatpush1.bf16.msra.mxu0 %v1907_v17  ;;  %1426 = vmatpush1.bf16.msra.mxu1 %v1908_v18  ;;  %v1947_v47 = vld [vmem:[%s2497_s14 + $0x14c] ss:$16 sps:$4 sm:$0xff]   ;;  %v2543_v49 = vshrl.u32 %v680_v43, 7  ;;  %v1949_v50 = vld [vmem:[%s2497_s14 + $0x140] ss:$16 sps:$4 sm:$0xff]   ;;  %vm1533_vm1 = vcmp.lt.s32.totalorder %v680_v43, 512 }
  0x7f   : > { %1345 = vmatprep.subr.bf16.mxu0 %v1909_v19  ;;  %1427 = vmatprep.subr.bf16.mxu1 %v1911_v20  ;;  %v679_v48 = vunpack.c.0.s8 %v678_v42  ;;  %v1950_v51 = vld [vmem:[%s2497_s14 + $0x148] ss:$16 sps:$4 sm:$0xff]   ;;  %v1951_v52 = vld [vmem:[%s2497_s14 + $0x164] ss:$16 sps:$4 sm:$0xff]   ;;  %v1953_v53 = vld [vmem:[%s2497_s14 + $0x16c] ss:$16 sps:$4 sm:$0xff]  }
  0x80   : > { %v1685_v55 = vld.sshfl [vmem:[%s513_s24] sm:$0x33 pattern:$0x75316420]  ;;  %v1955_v56 = vld [vmem:[%s2497_s14 + $0x160] ss:$16 sps:$4 sm:$0xff]  }
  0x81   : > { %v2550_v54 = vsub.s32 %v679_v48, %v2543_v49  ;;  %v1956_v57 = vld [vmem:[%s2497_s14 + $0x168] ss:$16 sps:$4 sm:$0xff]   ;;  %v676_v58 = vcombine.high %v1685_v55, %v1685_v55  ;;  %v1957_v59 = vld [vmem:[%s2497_s14 + $0x184] ss:$16 sps:$4 sm:$0xff]   ;;  %v1959_v60 = vld [vmem:[%s2497_s14 + $0x18c] ss:$16 sps:$4 sm:$0xff]  }
  0x82   : > { %1346 = vmatpush1.bf16.msra.mxu0 %v1913_v21  ;;  %1428 = vmatpush1.bf16.msra.mxu1 %v1914_v22  ;;  %v1961_v62 = vld [vmem:[%s2497_s14 + $0x180] ss:$16 sps:$4 sm:$0xff]   ;;  %v1962_v63 = vld [vmem:[%s2497_s14 + $0x188] ss:$16 sps:$4 sm:$0xff]   ;;  %v1963_v0 = vld [vmem:[%s2497_s14 + $0x1a4] ss:$16 sps:$4 sm:$0xff]  }
  0x83   : > { %1347 = vmatprep.subr.bf16.mxu0 %v1915_v23  ;;  %1429 = vmatprep.subr.bf16.mxu1 %v1917_v24  ;;  %v690_v61 = vrot.slane %v676_v58, %v2550_v54  ;;  %v1965_v1 = vld [vmem:[%s2497_s14 + $0x1ac] ss:$16 sps:$4 sm:$0xff]   ;;  %v1967_v2 = vld [vmem:[%s2497_s14 + $0x1a0] ss:$16 sps:$4 sm:$0xff]   ;;  %v1968_v3 = vld [vmem:[%s2497_s14 + $0x1a8] ss:$16 sps:$4 sm:$0xff]   ;;  %v2580_v15 = vrot.slane %v1685_v55, %v2550_v54 }
  0x84   : > { %v1969_v4 = vld [vmem:[%s2497_s14 + $0x1c4] ss:$16 sps:$4 sm:$0xff]   ;;  %v1971_v5 = vld [vmem:[%s2497_s14 + $0x1cc] ss:$16 sps:$4 sm:$0xff]   ;;  %v1973_v6 = vld [vmem:[%s2497_s14 + $0x1c0] ss:$16 sps:$4 sm:$0xff]  }
  0x85   : > { %1369 = vmatprep.mubr.bf16.mxu0 %v690_v61  ;;  %1451 = vmatprep.mubr.bf16.mxu1 %v690_v61  ;;  %v1974_v7 = vld [vmem:[%s2497_s14 + $0x1c8] ss:$16 sps:$4 sm:$0xff]   ;;  %v1975_v8 = vld [vmem:[%s2497_s14 + $0x1e4] ss:$16 sps:$4 sm:$0xff]   ;;  %v1977_v9 = vld [vmem:[%s2497_s14 + $0x1ec] ss:$16 sps:$4 sm:$0xff]   ;;  %v692_v19 = vcombine.high %v690_v61, %v690_v61 }
  0x86   : > { %1348 = vmatpush1.bf16.msra.mxu0 %v1919_v25  ;;  %1430 = vmatpush1.bf16.msra.mxu1 %v1920_v26  ;;  %v1979_v10 = vld [vmem:[%s2497_s14 + $0x1e0] ss:$16 sps:$4 sm:$0xff]   ;;  %v1980_v11 = vld [vmem:[%s2497_s14 + $0x1e8] ss:$16 sps:$4 sm:$0xff]   ;;  %v1983_v12 = vld [vmem:[%s2497_s14 + $0x204] ss:$16 sps:$4 sm:$0xff]  }
  0x87   : > { %1349 = vmatprep.subr.bf16.mxu0 %v1921_v27  ;;  %1431 = vmatprep.subr.bf16.mxu1 %v1923_v28  ;;  %v1986_v13 = vld [vmem:[%s2497_s14 + $0x20c] ss:$16 sps:$4 sm:$0xff]   ;;  %v1981_v14 = vld [vmem:[%s2497_s14 + $0x200] ss:$16 sps:$4 sm:$0xff]   ;;  %v1984_v16 = vld [vmem:[%s2497_s14 + $0x208] ss:$16 sps:$4 sm:$0xff]  }
  0x88   : > { %v1989_v17 = vld [vmem:[%s2497_s14 + $0x224] ss:$16 sps:$4 sm:$0xff]   ;;  %v1992_v18 = vld [vmem:[%s2497_s14 + $0x22c] ss:$16 sps:$4 sm:$0xff]   ;;  %v1987_v20 = vld [vmem:[%s2497_s14 + $0x220] ss:$16 sps:$4 sm:$0xff]  }
  0x89   : > { %v1990_v21 = vld [vmem:[%s2497_s14 + $0x228] ss:$16 sps:$4 sm:$0xff]   ;;  %v1995_v22 = vld [vmem:[%s2497_s14 + $0x244] ss:$16 sps:$4 sm:$0xff]   ;;  %v1998_v23 = vld [vmem:[%s2497_s14 + $0x24c] ss:$16 sps:$4 sm:$0xff]  }
  0x8a   : > { %1350 = vmatpush1.bf16.msra.mxu0 %v1925_v29  ;;  %1432 = vmatpush1.bf16.msra.mxu1 %v1926_v30  ;;  %v1993_v24 = vld [vmem:[%s2497_s14 + $0x240] ss:$16 sps:$4 sm:$0xff]   ;;  %v1996_v25 = vld [vmem:[%s2497_s14 + $0x248] ss:$16 sps:$4 sm:$0xff]   ;;  %v2001_v26 = vld [vmem:[%s2497_s14 + $0x264] ss:$16 sps:$4 sm:$0xff]  }
  0x8b   : > { %1351 = vmatprep.subr.bf16.mxu0 %v1927_v31  ;;  %1433 = vmatprep.subr.bf16.mxu1 %v1929_v32  ;;  %v2004_v27 = vld [vmem:[%s2497_s14 + $0x26c] ss:$16 sps:$4 sm:$0xff]   ;;  %v1999_v28 = vld [vmem:[%s2497_s14 + $0x260] ss:$16 sps:$4 sm:$0xff]   ;;  %v2002_v29 = vld [vmem:[%s2497_s14 + $0x268] ss:$16 sps:$4 sm:$0xff]  }
  0x8c   : > { %v2007_v30 = vld [vmem:[%s2497_s14 + $0x284] ss:$16 sps:$4 sm:$0xff]   ;;  %v2010_v31 = vld [vmem:[%s2497_s14 + $0x28c] ss:$16 sps:$4 sm:$0xff]   ;;  %v2005_v32 = vld [vmem:[%s2497_s14 + $0x280] ss:$16 sps:$4 sm:$0xff]  }
  0x8d   : > { %v2020_v41 = vld [vmem:[%s2497_s14 + $0x2c8] ss:$16 sps:$4 sm:$0xff]   ;;  %v2025_v42 = vld [vmem:[%s2497_s14 + $0x2e4] ss:$16 sps:$4 sm:$0xff]   ;;  %v2034_v48 = vld [vmem:[%s2497_s14 + $0x30c] ss:$16 sps:$4 sm:$0xff]  }
  0x8e   : > { %1352 = vmatpush1.bf16.msra.mxu0 %v1931_v33  ;;  %1434 = vmatpush1.bf16.msra.mxu1 %v1932_v34  ;;  %v2008_v33 = vld [vmem:[%s2497_s14 + $0x288] ss:$16 sps:$4 sm:$0xff]   ;;  %v2013_v34 = vld [vmem:[%s2497_s14 + $0x2a4] ss:$16 sps:$4 sm:$0xff]   ;;  %v2035_v55 = vld [vmem:[%s2497_s14 + $0x320] ss:$16 sps:$4 sm:$0xff]  }
  0x8f   : > { %1353 = vmatprep.subr.bf16.mxu0 %v1933_v35  ;;  %1435 = vmatprep.subr.bf16.mxu1 %v1935_v36  ;;  %v2016_v35 = vld [vmem:[%s2497_s14 + $0x2ac] ss:$16 sps:$4 sm:$0xff]   ;;  %v2011_v36 = vld [vmem:[%s2497_s14 + $0x2a0] ss:$16 sps:$4 sm:$0xff]   ;;  %v2049_v61 = vld [vmem:[%s2497_s14 + $0x364] ss:$16 sps:$4 sm:$0xff]  }
  0x90   : > { %v2046_v58 = vld [vmem:[%s2497_s14 + $0x34c] ss:$16 sps:$4 sm:$0xff]   ;;  %p1814_p13 = scmp.ne.s32.totalorder %s2116_s16, 3 }
  0x92   : > { %1354 = vmatpush1.bf16.msra.mxu0 %v1937_v37  ;;  %1436 = vmatpush1.bf16.msra.mxu1 %v1938_v38  ;;  %v2014_v37 = vld [vmem:[%s2497_s14 + $0x2a8] ss:$16 sps:$4 sm:$0xff]   ;;  %v2019_v38 = vld [vmem:[%s2497_s14 + $0x2c4] ss:$16 sps:$4 sm:$0xff]  }
  0x93   : > { %1355 = vmatprep.subr.bf16.mxu0 %v1939_v39  ;;  %1437 = vmatprep.subr.bf16.mxu1 %v1941_v40  ;;  %v2022_v39 = vld [vmem:[%s2497_s14 + $0x2cc] ss:$16 sps:$4 sm:$0xff]   ;;  %v2017_v40 = vld [vmem:[%s2497_s14 + $0x2c0] ss:$16 sps:$4 sm:$0xff]  }
  0x96   : > { %1356 = vmatpush1.bf16.msra.mxu0 %v1943_v44  ;;  %1438 = vmatpush1.bf16.msra.mxu1 %v1944_v45  ;;  %v2028_v44 = vld [vmem:[%s2497_s14 + $0x2ec] ss:$16 sps:$4 sm:$0xff]   ;;  %v2023_v45 = vld [vmem:[%s2497_s14 + $0x2e0] ss:$16 sps:$4 sm:$0xff]  }
  0x97   : > { %1357 = vmatprep.subr.bf16.mxu0 %v1945_v46  ;;  %1439 = vmatprep.subr.bf16.mxu1 %v1947_v47  ;;  %v2026_v46 = vld [vmem:[%s2497_s14 + $0x2e8] ss:$16 sps:$4 sm:$0xff]   ;;  %v2031_v47 = vld [vmem:[%s2497_s14 + $0x304] ss:$16 sps:$4 sm:$0xff]  }
  0x9a   : > { %1358 = vmatpush1.bf16.msra.mxu0 %v1949_v50  ;;  %1440 = vmatpush1.bf16.msra.mxu1 %v1950_v51  ;;  %v2029_v50 = vld [vmem:[%s2497_s14 + $0x300] ss:$16 sps:$4 sm:$0xff]   ;;  %v2032_v51 = vld [vmem:[%s2497_s14 + $0x308] ss:$16 sps:$4 sm:$0xff]  }
  0x9b   : > { %1359 = vmatprep.subr.bf16.mxu0 %v1951_v52  ;;  %1441 = vmatprep.subr.bf16.mxu1 %v1953_v53  ;;  %v2037_v52 = vld [vmem:[%s2497_s14 + $0x324] ss:$16 sps:$4 sm:$0xff]   ;;  %v2040_v53 = vld [vmem:[%s2497_s14 + $0x32c] ss:$16 sps:$4 sm:$0xff]  }
  0x9e   : > { %1360 = vmatpush1.bf16.msra.mxu0 %v1955_v56  ;;  %1442 = vmatpush1.bf16.msra.mxu1 %v1956_v57  ;;  %v2038_v56 = vld [vmem:[%s2497_s14 + $0x328] ss:$16 sps:$4 sm:$0xff]   ;;  %v2043_v57 = vld [vmem:[%s2497_s14 + $0x344] ss:$16 sps:$4 sm:$0xff]  }
  0x9f   : > { %1361 = vmatprep.subr.bf16.mxu0 %v1957_v59  ;;  %1443 = vmatprep.subr.bf16.mxu1 %v1959_v60  ;;  %v2041_v59 = vld [vmem:[%s2497_s14 + $0x340] ss:$16 sps:$4 sm:$0xff]   ;;  %v2044_v60 = vld [vmem:[%s2497_s14 + $0x348] ss:$16 sps:$4 sm:$0xff]  }
  0xa2   : > { %1362 = vmatpush1.bf16.msra.mxu0 %v1961_v62  ;;  %1444 = vmatpush1.bf16.msra.mxu1 %v1962_v63  ;;  %v2052_v62 = vld [vmem:[%s2497_s14 + $0x36c] ss:$16 sps:$4 sm:$0xff]   ;;  %v2047_v63 = vld [vmem:[%s2497_s14 + $0x360] ss:$16 sps:$4 sm:$0xff]  }
  0xa3   : > { %1363 = vmatprep.subr.bf16.mxu0 %v1963_v0  ;;  %1445 = vmatprep.subr.bf16.mxu1 %v1965_v1  ;;  %v2050_v0 = vld [vmem:[%s2497_s14 + $0x368] ss:$16 sps:$4 sm:$0xff]   ;;  %v2055_v1 = vld [vmem:[%s2497_s14 + $0x384] ss:$16 sps:$4 sm:$0xff]  }
  0xa6   : > { %1364 = vmatpush1.bf16.msra.mxu0 %v1967_v2  ;;  %1446 = vmatpush1.bf16.msra.mxu1 %v1968_v3  ;;  %v2058_v2 = vld [vmem:[%s2497_s14 + $0x38c] ss:$16 sps:$4 sm:$0xff]   ;;  %v2053_v3 = vld [vmem:[%s2497_s14 + $0x380] ss:$16 sps:$4 sm:$0xff]  }
  0xa7   : > { %1365 = vmatprep.subr.bf16.mxu0 %v1969_v4  ;;  %1447 = vmatprep.subr.bf16.mxu1 %v1971_v5  ;;  %v2056_v4 = vld [vmem:[%s2497_s14 + $0x388] ss:$16 sps:$4 sm:$0xff]   ;;  %v2061_v5 = vld [vmem:[%s2497_s14 + $0x3a4] ss:$16 sps:$4 sm:$0xff]  }
  0xaa   : > { %1366 = vmatpush1.bf16.msra.mxu0 %v1973_v6  ;;  %1448 = vmatpush1.bf16.msra.mxu1 %v1974_v7  ;;  %v2064_v6 = vld [vmem:[%s2497_s14 + $0x3ac] ss:$16 sps:$4 sm:$0xff]   ;;  %v2059_v7 = vld [vmem:[%s2497_s14 + $0x3a0] ss:$16 sps:$4 sm:$0xff]  }
  0xab   : > { %1367 = vmatprep.subr.bf16.mxu0 %v1975_v8  ;;  %1449 = vmatprep.subr.bf16.mxu1 %v1977_v9  ;;  %v2062_v8 = vld [vmem:[%s2497_s14 + $0x3a8] ss:$16 sps:$4 sm:$0xff]   ;;  %v2067_v9 = vld [vmem:[%s2497_s14 + $0x3c4] ss:$16 sps:$4 sm:$0xff]  }
  0xae   : > { %1368 = vmatpush1.bf16.msra.mxu0 %v1979_v10  ;;  %1450 = vmatpush1.bf16.msra.mxu1 %v1980_v11  ;;  %v2070_v10 = vld [vmem:[%s2497_s14 + $0x3cc] ss:$16 sps:$4 sm:$0xff]   ;;  %v2065_v11 = vld [vmem:[%s2497_s14 + $0x3c0] ss:$16 sps:$4 sm:$0xff]  }
  0xaf   : > { %1378 = vmatprep.subr.bf16.mxu0 %v1983_v12  ;;  %1460 = vmatprep.subr.bf16.mxu1 %v1986_v13  ;;  %v2068_v12 = vld [vmem:[%s2497_s14 + $0x3c8] ss:$16 sps:$4 sm:$0xff]   ;;  %v2073_v13 = vld [vmem:[%s2497_s14 + $0x3e4] ss:$16 sps:$4 sm:$0xff]  }
  0xb1   : > { %1370 = vmatmul.mubr.bf16.vlgmr.msra.gmra.mrb[0].mxu0 %v2580_v15  ;;  %1452 = vmatmul.mubr.bf16.vlgmr.msra.gmra.mrb[0].mxu1 %v2580_v15 }
  0xb2   : > { %1379 = vmatpush1.bf16.msra.mxu0 %v1981_v14  ;;  %1461 = vmatpush1.bf16.msra.mxu1 %v1984_v16  ;;  %v2076_v14 = vld [vmem:[%s2497_s14 + $0x3ec] ss:$16 sps:$4 sm:$0xff]   ;;  %v2071_v16 = vld [vmem:[%s2497_s14 + $0x3e0] ss:$16 sps:$4 sm:$0xff]  }
  0xb3   : > { %1380 = vmatprep.subr.bf16.mxu0 %v1989_v17  ;;  %1462 = vmatprep.subr.bf16.mxu1 %v1992_v18  ;;  %v2074_v17 = vld [vmem:[%s2497_s14 + $0x3e8] ss:$16 sps:$4 sm:$0xff]   ;;  %v691_v18 = vcombine.high %v2580_v15, %v2580_v15 }
  0xb4   : > { %1410 = vmatprep.mubr.bf16.mxu0 %v692_v19  ;;  %1492 = vmatprep.mubr.bf16.mxu1 %v692_v19  ;;  %v538_v15 = vld [vmem:[#allocation2] sm:$0xf] }
  0xb6   : > { %1381 = vmatpush1.bf16.msra.mxu0 %v1987_v20  ;;  %1463 = vmatpush1.bf16.msra.mxu1 %v1990_v21 }
  0xb7   : > { %1382 = vmatprep.subr.bf16.mxu0 %v1995_v22  ;;  %1464 = vmatprep.subr.bf16.mxu1 %v1998_v23 }
  0xba   : > { %1383 = vmatpush1.bf16.msra.mxu0 %v1993_v24  ;;  %1465 = vmatpush1.bf16.msra.mxu1 %v1996_v25 }
  0xbb   : > { %1384 = vmatprep.subr.bf16.mxu0 %v2001_v26  ;;  %1466 = vmatprep.subr.bf16.mxu1 %v2004_v27 }
  0xbe   : > { %1385 = vmatpush1.bf16.msra.mxu0 %v1999_v28  ;;  %1467 = vmatpush1.bf16.msra.mxu1 %v2002_v29 }
  0xbf   : > { %1386 = vmatprep.subr.bf16.mxu0 %v2007_v30  ;;  %1468 = vmatprep.subr.bf16.mxu1 %v2010_v31 }
  0xc2   : > { %1387 = vmatpush1.bf16.msra.mxu0 %v2005_v32  ;;  %1469 = vmatpush1.bf16.msra.mxu1 %v2008_v33 }
  0xc3   : > { %1388 = vmatprep.subr.bf16.mxu0 %v2013_v34  ;;  %1470 = vmatprep.subr.bf16.mxu1 %v2016_v35  ;;  %v1541_v34 = vld [vmem:[#allocation3] sm:$0x1] (!%p1814_p13)  ;;  %v2136_v35 = vmov (!%p1814_p13), 0  }
  0xc4   : > { %2077 = vset.pattern.permute.xlu0 (!%p1814_p13), %v2136_v35 }
  0xc5   : > { %1544 = vperm.xlu0 (!%p1814_p13), %2077, %v1541_v34  }
  0xc6   : > { %1389 = vmatpush1.bf16.msra.mxu0 %v2011_v36  ;;  %1471 = vmatpush1.bf16.msra.mxu1 %v2014_v37  ;;  %v1549_v36 = vsub.s32 (!%p1814_p13), 0, %v2543_v49 }
  0xc7   : > { %1390 = vmatprep.subr.bf16.mxu0 %v2019_v38  ;;  %1472 = vmatprep.subr.bf16.mxu1 %v2022_v39 }
  0xca   : > { %1391 = vmatpush1.bf16.msra.mxu0 %v2017_v40  ;;  %1473 = vmatpush1.bf16.msra.mxu1 %v2020_v41 }
  0xcb   : > { %1392 = vmatprep.subr.bf16.mxu0 %v2025_v42  ;;  %1474 = vmatprep.subr.bf16.mxu1 %v2028_v44 }
  0xce   : > { %1393 = vmatpush1.bf16.msra.mxu0 %v2023_v45  ;;  %1475 = vmatpush1.bf16.msra.mxu1 %v2026_v46 }
  0xcf   : > { %1394 = vmatprep.subr.bf16.mxu0 %v2031_v47  ;;  %1476 = vmatprep.subr.bf16.mxu1 %v2034_v48 }
  0xd2   : > { %1395 = vmatpush1.bf16.msra.mxu0 %v2029_v50  ;;  %1477 = vmatpush1.bf16.msra.mxu1 %v2032_v51 }
  0xd3   : > { %1396 = vmatprep.subr.bf16.mxu0 %v2037_v52  ;;  %1478 = vmatprep.subr.bf16.mxu1 %v2040_v53 }
  0xd6   : > { %1397 = vmatpush1.bf16.msra.mxu0 %v2035_v55  ;;  %1479 = vmatpush1.bf16.msra.mxu1 %v2038_v56 }
  0xd7   : > { %1398 = vmatprep.subr.bf16.mxu0 %v2043_v57  ;;  %1480 = vmatprep.subr.bf16.mxu1 %v2046_v58 }
  0xda   : > { %1399 = vmatpush1.bf16.msra.mxu0 %v2041_v59  ;;  %1481 = vmatpush1.bf16.msra.mxu1 %v2044_v60 }
  0xdb   : > { %1400 = vmatprep.subr.bf16.mxu0 %v2049_v61  ;;  %1482 = vmatprep.subr.bf16.mxu1 %v2052_v62 }
  0xde   : > { %1401 = vmatpush1.bf16.msra.mxu0 %v2047_v63  ;;  %1483 = vmatpush1.bf16.msra.mxu1 %v2050_v0 }
  0xdf   : > { %1402 = vmatprep.subr.bf16.mxu0 %v2055_v1  ;;  %1484 = vmatprep.subr.bf16.mxu1 %v2058_v2 }
  0xe2   : > { %1403 = vmatpush1.bf16.msra.mxu0 %v2053_v3  ;;  %1485 = vmatpush1.bf16.msra.mxu1 %v2056_v4 }
  0xe3   : > { %1404 = vmatprep.subr.bf16.mxu0 %v2061_v5  ;;  %1486 = vmatprep.subr.bf16.mxu1 %v2064_v6 }
  0xe6   : > { %1405 = vmatpush1.bf16.msra.mxu0 %v2059_v7  ;;  %1487 = vmatpush1.bf16.msra.mxu1 %v2062_v8 }
  0xe7   : > { %1406 = vmatprep.subr.bf16.mxu0 %v2067_v9  ;;  %1488 = vmatprep.subr.bf16.mxu1 %v2070_v10 }
  0xea   : > { %1407 = vmatpush1.bf16.msra.mxu0 %v2065_v11  ;;  %1489 = vmatpush1.bf16.msra.mxu1 %v2068_v12 }
  0xeb   : > { %1408 = vmatprep.subr.bf16.mxu0 %v2073_v13  ;;  %1490 = vmatprep.subr.bf16.mxu1 %v2076_v14 }
  0xee   : > { %1409 = vmatpush1.bf16.msra.mxu0 %v2071_v16  ;;  %1491 = vmatpush1.bf16.msra.mxu1 %v2074_v17 }
  0xf1   : > { %1411 = vmatmul.mubr.bf16.vlgmr.msra.gmra.mrb[0].mxu0 %v691_v18  ;;  %1493 = vmatmul.mubr.bf16.vlgmr.msra.gmra.mrb[0].mxu1 %v691_v18 }
 0x144   : > { %v1545_v37 = vpop.permute.xlu0 (!%p1814_p13), %1544 }
 0x145   : > { %v1550_v39 = vrot.slane (!%p1814_p13), %v1545_v37, %v1549_v36 }
 0x1c4   : > { %v1412_v19 = vpop.f32.mrb[0].mxu0  ;;  %v1494_v20 = vpop.f32.mrb[0].mxu1 }
 0x1c5   : > { %v1414_v21 = vpop.f32.mrb[1].mxu0  ;;  %v1496_v22 = vpop.f32.mrb[1].mxu1 }
 0x1c6   : > { %v1505_v23 = vcombine.low %v1412_v19, %v1414_v21  ;;  %v1506_v24 = vcombine.low %v1494_v20, %v1496_v22  ;;  %v1416_v25 = vpop.f32.mrb[2].mxu0  ;;  %v1498_v26 = vpop.f32.mrb[2].mxu1 }
 0x1c7   : > { %v1417_v27 = vpop.f32.mrb[3].mxu0  ;;  %v1499_v28 = vpop.f32.mrb[3].mxu1 }
 0x1c8   : > { %v1513_v29 = vrot.slane %v1505_v23, %v2550_v54  ;;  %v1520_v30 = vrot.slane %v1506_v24, %v2550_v54 }
 0x1ca   : > { %v1521_v31 = vcombine.low %v1513_v29, %v1520_v30  ;;  %1539 = sbr.rel (%p1814_p13) target bundleno = 475 (0x1db), region = 63 }
 0x1cc   : > { %v1528_v32 = vrot.slane %v1521_v31, %v2550_v54 }
 0x1ce   : > { %v1530_v33 = vadd.f32 %v1528_v32, %v538_v15 }
 0x1d0   : > { %1535 = vst.msk [vmem:[#allocation2] sm:$0xf] %vm1533_vm1, %v1530_v33 }
 0x1d7   : > { %v1540_v38 = vld [vmem:[#allocation2] sm:$0xf] }
 0x1d8   : > { %v1551_v40 = vadd.f32 %v1550_v39, %v1540_v38 }
 0x1da   : > { %1552 = vst.msk [vmem:[%s527_s28] sm:$0xf] %vm1533_vm1, %v1551_v40 }
 0x1db PF: > { %s15_s20 = sadd.s32 1, %s2132_s20   ;;  %s2683_s14 = smov %s2112_s15 }
 0x1dc   : > { %p12_p0 = scmp.ge.s32.totalorder %s15_s20, 18   ;;  %s2684_s15 = smov %s2211_s26 }
 0x1dd   : > { %s2685_s16 = smov %s2124_s18  ;;  %s2686_s17 = smov %s2128_s19 }
 0x1de   : > { %s2687_s18 = smov %s2690_s2  ;;  %s2688_s19 = smov %s2694_s21 }
 0x1df   :  { %14 = sbr.rel (!%p12_p0) target bundleno = 7 (0x7), region = 104 }

// kernel: cnn_model_forward.31
= control target key start
LH: loop header
LB: loop body
LE: loop exit
PB: predicated region body
PF: predicated region fallthrough
CT: control target
= control target key end

     0   :  { %s106_s0 = inlined_call_operand.vmem [shape: f32[16,128], index: 0, kind: input, shape index: {}]   ;;  %s107_s1 = inlined_call_operand.hbm [shape: f32[1,1], index: 1, kind: output, shape index: {}]  }
   0x1   :  { %v16_v0 = vld [vmem:[%s106_s0] sm:$0xff]  ;;  %v17_v1 = vld [vmem:[%s106_s0 + $0x8] sm:$0xff] }
   0x2   :  { %6 = vsyncpa [#allocation3], 0  ;;  %v18_v2 = vadd.f32 %v17_v1, %v16_v0  ;;  %vm13_vm0 = vcmask 0   ;;  %v74_v3 = vmov 0.0   ;;  %s75_s10 = smov [#allocation2]  }
   0x3   :  { %14 = vst.msk [vmem:[#allocation2] sm:$0x1] %vm13_vm0, %v74_v3  ;;  %s38_s11 = sshll.u32 %s75_s10, 4  ;;  %s39_s11 = int_to_ptr.vmem [resolvable:$true] %s38_s11 }
   0x4   :  { %19 = vadd.xlane.f32.xlu0 %v18_v2  ;;  %s50_s0 = scalar_lea.vmem %s39_s11, 16  ;;  %s54_s13 = scalar_lea.vmem %s39_s11, 32 }
   0x5   :  { %p51_p0 = scmp.ne.s32.totalorder %s39_s11, %s50_s0  ;;  %p55_p1 = scmp.lt.s32.totalorder %s39_s11, %s39_s11 }
   0x6   :  { %p56_p2 = scmp.lt.s32.totalorder %s54_s13, %s50_s0 }
   0x8   :  { %p57_p3 = por %p56_p2, %p55_p1 }
   0xa   :  { %v15_v11 = vld [vmem:[#allocation2] sm:$0x1]  ;;  %p58_p4 = pnand %p57_p3, %p51_p0 }
  0x91   :  { %v20_v4 = vpop.xlane.xlu0 %19 }
  0x92   :  { %v21_v5 = vrot.slane %v20_v4, 4 }
  0x94   :  { %v22_v6 = vadd.f32 %v21_v5, %v20_v4 }
  0x96   :  { %v23_v7 = vrot.slane %v22_v6, 2 }
  0x98   :  { %v24_v8 = vadd.f32 %v23_v7, %v22_v6 }
  0x9a   :  { %v25_v9 = vrot.slane %v24_v8, 1 }
  0x9c   :  { %v26_v10 = vadd.f32 %v25_v9, %v24_v8 }
  0x9e   :  { %46 = vpush %v26_v10 }
  0xcf   :  { %s47_s12 = spop %46 }
  0xd0   :  { %v28_v12 = vstv %s47_s12 }
  0xd1   :  { %v29_v13 = vadd.f32 %v28_v12, %v15_v11 }
  0xd3   :  { %31 = vst.msk [vmem:[#allocation2] sm:$0x1] %vm13_vm0, %v29_v13 }
  0xd4   :  { %61 = shalt.err (!%p58_p4)
}
  0xd5   :  { %s62_s16 = scalar_lea.hbm %s107_s1, 16 }
  0xd6   :  { %p63_p5 = scmp.ne.s32.totalorder %s107_s1, %s62_s16  ;;  %p66_p6 = scmp.lt.u32.totalorder %s62_s16, %s107_s1 }
  0xd8   :  { %p68_p7 = pnand %p66_p6, %p63_p5 }
  0xda   :  { %71 = shalt.err (!%p68_p7)
}
  0xdb   :  { %41 = dma.vmem_to_hbm [thread:$0]  %s39_s11, 16, %s107_s1, [#allocation3]  }
  0xdc   :  { %72 = dma.done.wait [#allocation3], 16  }
  0xdd   :  { %73 = vsyncadd [#allocation3], 4294967280 }
  0xde   :  { %45 = vsyncpa [#allocation3], 1 }

// kernel: cnn_model_forward.34
= control target key start
LH: loop header
LB: loop body
LE: loop exit
PB: predicated region body
PF: predicated region fallthrough
CT: control target
= control target key end

     0   :  { %s816_s12 = smov 0   ;;  %s818_s13 = smov 0   ;;  %s887_s0 = inlined_call_operand.vmem [shape: bf16[8,54], index: 0, kind: input, shape index: {}]   ;;  %s888_s1 = inlined_call_operand.vmem [shape: bf16[54,2048], index: 1, kind: input, shape index: {}]   ;;  %s889_s2 = inlined_call_operand.vmem [shape: f32[8,1], index: 2, kind: input, shape index: {}]   ;;  %s890_s3 = inlined_call_operand.vmem [shape: f32[8,2048], index: 3, kind: output, shape index: {}]  }
   0x1   :  { %s820_s14 = smov 0   ;;  %s822_s15 = smov 0  }
   0x2   :  { %s824_s16 = smov 0  }
   0x3 LB: > { %s28_s17 = sadd.s32 1, %s789_s15  ;;  %p76_p1 = scmp.ne.s32.totalorder %s781_s13, %s777_s12  ;;  %s793_s16 = sphi %s824_s16, %s13_s16   ;;  %s789_s15 = sphi %s822_s15, %s894_s15   ;;  %s785_s14 = sphi %s820_s14, %s893_s14   ;;  %s781_s13 = sphi %s818_s13, %s892_s13   ;;  %s777_s12 = sphi %s816_s12, %s891_s12  }
   0x4   : > { %p30_p0 = scmp.ge.s32.totalorder %s28_s17, 4  ;;  %p77_p2 = scmp.eq.s32.totalorder %s793_s16, 0 }
   0x5   : > { %s69_s19 = sadd.s32 1, %s781_s13  ;;  %p660_p5 = scmp.ge.s32.totalorder %s793_s16, 4 }
   0x6   : > { %s896_s17 = smov (%p30_p0, %s28_s17), 0  ;;  %p78_p3 = por %p77_p2, %p76_p1 }
   0x7   : > { %s65_s18 = ssub.s32 %s789_s15, %s896_s17  ;;  %173 = sbr.rel (%p660_p5) target bundleno = 25 (0x19), region = 24 }
   0x8   : > { %p67_p4 = scmp.eq.s32.totalorder %s65_s18, 0 }
   0xa   : > { %s851_s20 = scalar_select %p67_p4, %s781_s13, %s69_s19  }
   0xe   : > { %176 = sbr.rel (!%p78_p3) target bundleno = 25 (0x19), region = 28  ;;  %s178_s21 = sand.u32 (%p78_p3), 1, %s781_s13  }
   0xf   : > { %s688_s22 = sshll.u32 (%p78_p3), %s789_s15, 4  ;;  %s689_s23 = smul.u32 (%p78_p3), 112, %s178_s21 }
  0x10   : > { %s186_s26 = scalar_lea.vmem (%p78_p3), %s888_s1, %s688_s22 }
  0x11   : > { %v199_v0 = vld [vmem:[%s186_s26] sm:$0xff] (%p78_p3)  ;;  %v201_v1 = vld [vmem:[%s186_s26 + $0x8] sm:$0xff] (%p78_p3)  ;;  %s180_s27 = scalar_lea.vmem (%p78_p3), [#allocation3], %s689_s23 }
  0x12   : > { %v203_v2 = vld [vmem:[%s186_s26 + $0x40] sm:$0xff] (%p78_p3)  ;;  %v205_v3 = vld [vmem:[%s186_s26 + $0x48] sm:$0xff] (%p78_p3)  ;;  %200 = vst [vmem:[%s180_s27] sm:$0xff] (%p78_p3), %v199_v0  ;;  %202 = vst [vmem:[%s180_s27 + $0x8] sm:$0xff] (%p78_p3), %v201_v1 }
  0x13   : > { %v207_v4 = vld [vmem:[%s186_s26 + $0x80] sm:$0xff] (%p78_p3)  ;;  %v209_v5 = vld [vmem:[%s186_s26 + $0x88] sm:$0xff] (%p78_p3)  ;;  %204 = vst [vmem:[%s180_s27 + $0x10] sm:$0xff] (%p78_p3), %v203_v2  ;;  %206 = vst [vmem:[%s180_s27 + $0x18] sm:$0xff] (%p78_p3), %v205_v3 }
  0x14   : > { %208 = vst [vmem:[%s180_s27 + $0x20] sm:$0xff] (%p78_p3), %v207_v4  ;;  %210 = vst [vmem:[%s180_s27 + $0x28] sm:$0xff] (%p78_p3), %v209_v5  ;;  %v211_v6 = vld [vmem:[%s186_s26 + $0xc0] sm:$0xff] (%p78_p3)  ;;  %v213_v7 = vld [vmem:[%s186_s26 + $0xc8] sm:$0xff] (%p78_p3) }
  0x15   : > { %v215_v8 = vld [vmem:[%s186_s26 + $0x100] sm:$0xff]  ;;  %212 = vst [vmem:[%s180_s27 + $0x30] sm:$0xff] %v211_v6  ;;  %214 = vst [vmem:[%s180_s27 + $0x38] sm:$0xff] %v213_v7  ;;  %v217_v9 = vld [vmem:[%s186_s26 + $0x108] sm:$0xff] }
  0x16   : > { %216 = vst [vmem:[%s180_s27 + $0x40] sm:$0xff] %v215_v8  ;;  %v219_v10 = vld [vmem:[%s186_s26 + $0x140] sm:$0xff]  ;;  %v221_v11 = vld [vmem:[%s186_s26 + $0x148] sm:$0xff]  ;;  %218 = vst [vmem:[%s180_s27 + $0x48] sm:$0xff] %v217_v9 }
  0x17   : > { %220 = vst [vmem:[%s180_s27 + $0x50] sm:$0xff] %v219_v10  ;;  %222 = vst [vmem:[%s180_s27 + $0x58] sm:$0xff] %v221_v11  ;;  %v223_v12 = vld [vmem:[%s186_s26 + $0x180] sm:$0xff]  ;;  %v225_v13 = vld [vmem:[%s186_s26 + $0x188] sm:$0xff] }
  0x18   : > { %224 = vst [vmem:[%s180_s27 + $0x60] sm:$0xff] %v223_v12  ;;  %226 = vst [vmem:[%s180_s27 + $0x68] sm:$0xff] %v225_v13 }
  0x19 PF: > { %p663_p6 = scmp.ge.s32.totalorder %s793_s16, 1  ;;  %p231_p7 = scmp.lt.s32.totalorder %s793_s16, 5 }
  0x1b   : > { %p232_p8 = pnand %p663_p6, %p231_p7 }
  0x1c   : > { %s238_s28 = sand.u32 (!%p232_p8), 1, %s777_s12   ;;  %v795_v14 = vmov (!%p232_p8), 0   ;;  %v511_v15 = vld [vmem:[%s889_s2] sm:$0xff] (!%p232_p8)  ;;  %vm401_vm0 = vcmask (!%p232_p8), 1042432   ;;  %vm397_vm1 = vcmask (!%p232_p8), 441344   ;;  %s664_s8 = sshll.u32 (!%p232_p8), %s785_s14, 2 }
  0x1d   : > { %235 = sbr.rel (%p232_p8) target bundleno = 268 (0x10c), region = 51  ;;  %446 = vmatprep.mubr.bf16.mxu0 (!%p232_p8), %v795_v14  ;;  %487 = vmatprep.mubr.bf16.mxu1 (!%p232_p8), %v795_v14  ;;  %v312_v36 = vld [vmem:[%s887_s0] sm:$0xf] (!%p232_p8)  ;;  %p292_p9 = scmp.lt.s32.totalorder (!%p232_p8), %s664_s8, 15 }
  0x1e   : > { %s690_s29 = smul.u32 (!%p232_p8), 112, %s238_s28  ;;  %732 = vset.pattern.permute.xlu0 (!%p232_p8), %v795_v14 }
  0x1f   : > { %514 = vperm.xlu0 (!%p232_p8), %732, %v511_v15  }
  0x20   : > { %s240_s5 = scalar_lea.vmem (!%p232_p8), [#allocation3], %s690_s29 }
  0x21   : > { %v733_v16 = vld [vmem:[%s240_s5 + $0x4] ss:$16 sps:$4 sm:$0xff] (!%p232_p8)   ;;  %v735_v17 = vld [vmem:[%s240_s5 + $0xc] ss:$16 sps:$4 sm:$0xff] (!%p232_p8)   ;;  %v737_v18 = vld [vmem:[%s240_s5] ss:$16 sps:$4 sm:$0xff] (!%p232_p8)  }
  0x22   : > { %414 = vmatprep.subr.bf16.mxu0 (!%p232_p8), %v733_v16  ;;  %v738_v19 = vld [vmem:[%s240_s5 + $0x8] ss:$16 sps:$4 sm:$0xff] (!%p232_p8)   ;;  %455 = vmatprep.subr.bf16.mxu1 (!%p232_p8), %v735_v17  ;;  %v739_v20 = vld [vmem:[%s240_s5 + $0x24] ss:$16 sps:$4 sm:$0xff] (!%p232_p8)   ;;  %v741_v21 = vld [vmem:[%s240_s5 + $0x2c] ss:$16 sps:$4 sm:$0xff] (!%p232_p8)  }
  0x23   : > { %415 = vmatpush1.bf16.msra.mxu0 (!%p232_p8), %v737_v18  ;;  %456 = vmatpush1.bf16.msra.mxu1 (!%p232_p8), %v738_v19  ;;  %v743_v22 = vld [vmem:[%s240_s5 + $0x20] ss:$16 sps:$4 sm:$0xff] (!%p232_p8)   ;;  %v744_v23 = vld [vmem:[%s240_s5 + $0x28] ss:$16 sps:$4 sm:$0xff] (!%p232_p8)   ;;  %v745_v24 = vld [vmem:[%s240_s5 + $0x44] ss:$16 sps:$4 sm:$0xff] (!%p232_p8)  }
  0x24   : > { %416 = vmatprep.subr.bf16.mxu0 %v739_v20  ;;  %457 = vmatprep.subr.bf16.mxu1 %v741_v21  ;;  %v747_v25 = vld [vmem:[%s240_s5 + $0x4c] ss:$16 sps:$4 sm:$0xff]   ;;  %v749_v26 = vld [vmem:[%s240_s5 + $0x40] ss:$16 sps:$4 sm:$0xff]   ;;  %v750_v27 = vld [vmem:[%s240_s5 + $0x48] ss:$16 sps:$4 sm:$0xff]  }
  0x25   : > { %v325_v28 = vld [vmem:[%s240_s5 + $0x60] sm:$0x77]  ;;  %v326_v29 = vld [vmem:[%s240_s5 + $0x68] sm:$0x77]  ;;  %s898_s8 = smov (!%p292_p9, %s664_s8), 15 }
  0x26   : > { %v679_v30 = vcombine.high %v325_v28, %v325_v28  ;;  %v681_v31 = vcombine.high %v326_v29, %v326_v29  ;;  %v678_v32 = vcombine.low %v325_v28, %v325_v28  ;;  %v680_v33 = vcombine.low %v326_v29, %v326_v29  ;;  %s665_s9 = sshll.u32 %s898_s8, 3 }
  0x27   : > { %417 = vmatpush1.bf16.msra.mxu0 %v743_v22  ;;  %458 = vmatpush1.bf16.msra.mxu1 %v744_v23  ;;  %s297_s12 = scalar_lea.vmem %s890_s3, %s665_s9 }
  0x28   : > { %418 = vmatprep.subr.bf16.mxu0 %v745_v24  ;;  %459 = vmatprep.subr.bf16.mxu1 %v747_v25  ;;  %v403_v34 = vsel %vm401_vm0, %v678_v32, 0  ;;  %v409_v35 = vsel %vm401_vm0, %v680_v33, 0 }
  0x2b   : > { %419 = vmatpush1.bf16.msra.mxu0 %v749_v26  ;;  %460 = vmatpush1.bf16.msra.mxu1 %v750_v27 }
  0x2c   : > { %682 = vmatprep.subr.msk.bf16.mxu0 %vm401_vm0, %v679_v30  ;;  %684 = vmatprep.subr.msk.bf16.mxu1 %vm401_vm0, %v681_v31 }
  0x2f   : > { %421 = vmatpush1.bf16.msra.mxu0 %v403_v34  ;;  %462 = vmatpush1.bf16.msra.mxu1 %v409_v35 }
  0x32   : > { %683 = vmatmul.mubr.msk.bf16.vlgmr.msra.gmra.mrb[0].mxu0 %vm397_vm1, %v312_v36  ;;  %685 = vmatmul.mubr.msk.bf16.vlgmr.msra.gmra.mrb[0].mxu1 %vm397_vm1, %v312_v36 }
  0x9e   : > { %v515_v37 = vpop.permute.xlu0 %514 }
 0x105   : > { %v448_v38 = vpop.f32.mrb[0].mxu0  ;;  %v489_v39 = vpop.f32.mrb[0].mxu1 }
 0x106   : > { %v517_v40 = vadd.f32 %v515_v37, %v448_v38  ;;  %v519_v41 = vadd.f32 %v515_v37, %v489_v39  ;;  %v450_v42 = vpop.f32.mrb[1].mxu0  ;;  %v491_v43 = vpop.f32.mrb[1].mxu1 }
 0x107   : > { %v518_v44 = vadd.f32 %v515_v37, %v450_v42  ;;  %v520_v45 = vadd.f32 %v515_v37, %v491_v43  ;;  %v452_v46 = vpop.f32.mrb[2].mxu0  ;;  %v493_v47 = vpop.f32.mrb[2].mxu1 }
 0x108   : > { %v521_v48 = vmax.f32 %v517_v40, 0.0  ;;  %v523_v49 = vmax.f32 %v519_v41, 0.0  ;;  %v453_v50 = vpop.f32.mrb[3].mxu0  ;;  %v494_v51 = vpop.f32.mrb[3].mxu1 }
 0x109   : > { %v522_v52 = vmax.f32 %v518_v44, 0.0  ;;  %v524_v53 = vmax.f32 %v520_v45, 0.0 }
 0x10a   : > { %525 = vst [vmem:[%s297_s12] sm:$0xff] %v521_v48  ;;  %527 = vst [vmem:[%s297_s12 + $0x10] sm:$0xff] %v523_v49 }
 0x10b   : > { %526 = vst [vmem:[%s297_s12 + $0x8] sm:$0xff] %v522_v52  ;;  %528 = vst [vmem:[%s297_s12 + $0x18] sm:$0xff] %v524_v53 }
 0x10c PF: > { %s13_s16 = sadd.s32 1, %s793_s16   ;;  %s891_s12 = smov %s781_s13 }
 0x10d   : > { %p10_p10 = scmp.ge.s32.totalorder %s13_s16, 6   ;;  %s892_s13 = smov %s851_s20 }
 0x10e   : > { %s893_s14 = smov %s789_s15  ;;  %s894_s15 = smov %s896_s17 }
 0x10f   :  { %12 = sbr.rel (!%p10_p10) target bundleno = 3 (0x3), region = 104 }

// kernel: cnn_model_forward.36
= control target key start
LH: loop header
LB: loop body
LE: loop exit
PB: predicated region body
PF: predicated region fallthrough
CT: control target
= control target key end

     0   :  { %s165_s0 = inlined_call_operand.vmem [shape: f32[16,128], index: 0, kind: input, shape index: {}]   ;;  %s166_s1 = inlined_call_operand.vmem [shape: f32[16,128], index: 1, kind: input, shape index: {}]   ;;  %s167_s2 = inlined_call_operand.vmem [shape: f32[16,128], index: 2, kind: input, shape index: {}]   ;;  %s168_s3 = inlined_call_operand.vmem [shape: f32[16,128], index: 3, kind: output, shape index: {0}]   ;;  %s169_s4 = inlined_call_operand.hbm [shape: f32[1,1], index: 4, kind: output, shape index: {1}]  }
   0x1   :  { %v17_v0 = vld [vmem:[%s167_s2] sm:$0xff]  ;;  %v18_v1 = vld [vmem:[%s167_s2 + $0x8] sm:$0xff] }
   0x2   :  { %v19_v2 = vld [vmem:[%s165_s0] sm:$0xff]  ;;  %v20_v3 = vld [vmem:[%s165_s0 + $0x8] sm:$0xff]  ;;  %v23_v5 = vsub.f32 1.0, %v17_v0  ;;  %v24_v6 = vsub.f32 1.0, %v18_v1 }
   0x3   :  { %v21_v4 = vmul.f32 %v19_v2, %v17_v0  ;;  %v25_v7 = vld [vmem:[%s166_s1] sm:$0xff]  ;;  %v26_v8 = vld [vmem:[%s166_s1 + $0x8] sm:$0xff]  ;;  %v22_v9 = vmul.f32 %v20_v3, %v18_v1 }
   0x4   :  { %10 = vsyncpa [#allocation3], 0  ;;  %v27_v10 = vmul.f32 %v25_v7, %v23_v5  ;;  %v28_v11 = vmul.f32 %v26_v8, %v24_v6  ;;  %vm37_vm0 = vcmask 0   ;;  %v100_v15 = vmov 0.0   ;;  %s101_s1 = smov [#allocation2]  }
   0x5   :  { %38 = vst.msk [vmem:[#allocation2] sm:$0x1] %vm37_vm0, %v100_v15  ;;  %s62_s29 = sshll.u32 %s101_s1, 4  ;;  %s63_s29 = int_to_ptr.vmem [resolvable:$true] %s62_s29 }
   0x6   :  { %v29_v12 = vadd.f32 %v27_v10, %v21_v4  ;;  %v30_v13 = vadd.f32 %v28_v11, %v22_v9  ;;  %s80_s5 = scalar_lea.vmem %s63_s29, 32  ;;  %p81_p1 = scmp.lt.s32.totalorder %s63_s29, %s63_s29 }
   0x8   :  { %31 = vst [vmem:[%s168_s3] sm:$0xff] %v29_v12  ;;  %32 = vst [vmem:[%s168_s3 + $0x8] sm:$0xff] %v30_v13  ;;  %v40_v14 = vadd.f32 %v30_v13, %v29_v12  ;;  %s76_s3 = scalar_lea.vmem %s63_s29, 16 }
   0x9   :  { %p77_p0 = scmp.ne.s32.totalorder %s63_s29, %s76_s3  ;;  %p82_p2 = scmp.lt.s32.totalorder %s80_s5, %s76_s3 }
   0xa   :  { %41 = vadd.xlane.f32.xlu0 %v40_v14 }
   0xb   :  { %p83_p3 = por %p82_p2, %p81_p1 }
   0xc   :  { %v39_v23 = vld [vmem:[#allocation2] sm:$0x1] }
   0xd   :  { %p84_p4 = pnand %p83_p3, %p77_p0 }
  0x97   :  { %v42_v16 = vpop.xlane.xlu0 %41 }
  0x98   :  { %v43_v17 = vrot.slane %v42_v16, 4 }
  0x9a   :  { %v44_v18 = vadd.f32 %v43_v17, %v42_v16 }
  0x9c   :  { %v45_v19 = vrot.slane %v44_v18, 2 }
  0x9e   :  { %v46_v20 = vadd.f32 %v45_v19, %v44_v18 }
  0xa0   :  { %v47_v21 = vrot.slane %v46_v20, 1 }
  0xa2   :  { %v48_v22 = vadd.f32 %v47_v21, %v46_v20 }
  0xa4   :  { %72 = vpush %v48_v22 }
  0xd5   :  { %s73_s30 = spop %72 }
  0xd6   :  { %v50_v24 = vstv %s73_s30 }
  0xd7   :  { %v51_v25 = vadd.f32 %v50_v24, %v39_v23 }
  0xd9   :  { %53 = vst.msk [vmem:[#allocation2] sm:$0x1] %vm37_vm0, %v51_v25 }
  0xda   :  { %87 = shalt.err (!%p84_p4)
}
  0xdb   :  { %s88_s8 = scalar_lea.hbm %s169_s4, 16 }
  0xdc   :  { %p89_p5 = scmp.ne.s32.totalorder %s169_s4, %s88_s8  ;;  %p92_p6 = scmp.lt.u32.totalorder %s88_s8, %s169_s4 }
  0xde   :  { %p94_p7 = pnand %p92_p6, %p89_p5 }
  0xe0   :  { %97 = shalt.err (!%p94_p7)
}
  0xe1   :  { %65 = dma.vmem_to_hbm [thread:$0]  %s63_s29, 16, %s169_s4, [#allocation3]  }
  0xe2   :  { %98 = dma.done.wait [#allocation3], 16  }
  0xe3   :  { %99 = vsyncadd [#allocation3], 4294967280 }
  0xe4   :  { %71 = vsyncpa [#allocation3], 1 }

// kernel: cnn_model_forward.39
= control target key start
LH: loop header
LB: loop body
LE: loop exit
PB: predicated region body
PF: predicated region fallthrough
CT: control target
= control target key end

     0   :  { %s900_s12 = smov 0   ;;  %s902_s13 = smov 0   ;;  %s1043_s0 = inlined_call_operand.vmem [shape: bf16[8,81], index: 0, kind: input, shape index: {}]   ;;  %s1044_s1 = inlined_call_operand.vmem [shape: bf16[81,2048], index: 1, kind: input, shape index: {}]   ;;  %s1045_s2 = inlined_call_operand.vmem [shape: f32[8,1], index: 2, kind: input, shape index: {}]   ;;  %s1046_s3 = inlined_call_operand.vmem [shape: f32[8,2048], index: 3, kind: output, shape index: {}]  }
   0x1   :  { %s904_s14 = smov 0   ;;  %s906_s15 = smov 0  }
   0x2   :  { %s908_s16 = smov 0  }
   0x3 LB: > { %s28_s17 = sadd.s32 1, %s873_s15  ;;  %p76_p1 = scmp.ne.s32.totalorder %s865_s13, %s861_s12  ;;  %s877_s16 = sphi %s908_s16, %s13_s16   ;;  %s873_s15 = sphi %s906_s15, %s1050_s15   ;;  %s869_s14 = sphi %s904_s14, %s1049_s14   ;;  %s865_s13 = sphi %s902_s13, %s1048_s13   ;;  %s861_s12 = sphi %s900_s12, %s1047_s12  }
   0x4   : > { %p30_p0 = scmp.ge.s32.totalorder %s28_s17, 4  ;;  %p77_p2 = scmp.eq.s32.totalorder %s877_s16, 0 }
   0x5   : > { %s69_s19 = sadd.s32 1, %s865_s13  ;;  %p726_p5 = scmp.ge.s32.totalorder %s877_s16, 4 }
   0x6   : > { %s1052_s17 = smov (%p30_p0, %s28_s17), 0  ;;  %p78_p3 = por %p77_p2, %p76_p1 }
   0x7   : > { %s65_s18 = ssub.s32 %s873_s15, %s1052_s17  ;;  %173 = sbr.rel (%p726_p5) target bundleno = 29 (0x1d), region = 24 }
   0x8   : > { %p67_p4 = scmp.eq.s32.totalorder %s65_s18, 0 }
   0xa   : > { %s935_s20 = scalar_select %p67_p4, %s865_s13, %s69_s19  }
   0xe   : > { %176 = sbr.rel (!%p78_p3) target bundleno = 29 (0x1d), region = 28  ;;  %s178_s21 = sand.u32 (%p78_p3), 1, %s865_s13  }
   0xf   : > { %s760_s22 = sshll.u32 (%p78_p3), %s873_s15, 4  ;;  %s761_s23 = smul.u32 (%p78_p3), 176, %s178_s21 }
  0x10   : > { %s943_s26 = scalar_lea.vmem (%p78_p3), %s1044_s1, %s760_s22 }
  0x11   : > { %v199_v0 = vld [vmem:[%s943_s26] sm:$0xff] (%p78_p3)  ;;  %v201_v1 = vld [vmem:[%s943_s26 + $0x8] sm:$0xff] (%p78_p3)  ;;  %s951_s27 = scalar_lea.vmem (%p78_p3), [#allocation3], %s761_s23 }
  0x12   : > { %v203_v2 = vld [vmem:[%s943_s26 + $0x40] sm:$0xff] (%p78_p3)  ;;  %v205_v3 = vld [vmem:[%s943_s26 + $0x48] sm:$0xff] (%p78_p3)  ;;  %200 = vst [vmem:[%s951_s27] sm:$0xff] (%p78_p3), %v199_v0  ;;  %202 = vst [vmem:[%s951_s27 + $0x8] sm:$0xff] (%p78_p3), %v201_v1 }
  0x13   : > { %v207_v4 = vld [vmem:[%s943_s26 + $0x80] sm:$0xff] (%p78_p3)  ;;  %v209_v5 = vld [vmem:[%s943_s26 + $0x88] sm:$0xff] (%p78_p3)  ;;  %204 = vst [vmem:[%s951_s27 + $0x10] sm:$0xff] (%p78_p3), %v203_v2  ;;  %206 = vst [vmem:[%s951_s27 + $0x18] sm:$0xff] (%p78_p3), %v205_v3 }
  0x14   : > { %208 = vst [vmem:[%s951_s27 + $0x20] sm:$0xff] (%p78_p3), %v207_v4  ;;  %210 = vst [vmem:[%s951_s27 + $0x28] sm:$0xff] (%p78_p3), %v209_v5  ;;  %v211_v6 = vld [vmem:[%s943_s26 + $0xc0] sm:$0xff] (%p78_p3)  ;;  %v213_v7 = vld [vmem:[%s943_s26 + $0xc8] sm:$0xff] (%p78_p3) }
  0x15   : > { %v215_v8 = vld [vmem:[%s943_s26 + $0x100] sm:$0xff]  ;;  %212 = vst [vmem:[%s951_s27 + $0x30] sm:$0xff] %v211_v6  ;;  %214 = vst [vmem:[%s951_s27 + $0x38] sm:$0xff] %v213_v7  ;;  %v217_v9 = vld [vmem:[%s943_s26 + $0x108] sm:$0xff] }
  0x16   : > { %216 = vst [vmem:[%s951_s27 + $0x40] sm:$0xff] %v215_v8  ;;  %v219_v10 = vld [vmem:[%s943_s26 + $0x140] sm:$0xff]  ;;  %v221_v11 = vld [vmem:[%s943_s26 + $0x148] sm:$0xff]  ;;  %218 = vst [vmem:[%s951_s27 + $0x48] sm:$0xff] %v217_v9 }
  0x17   : > { %220 = vst [vmem:[%s951_s27 + $0x50] sm:$0xff] %v219_v10  ;;  %222 = vst [vmem:[%s951_s27 + $0x58] sm:$0xff] %v221_v11  ;;  %v223_v12 = vld [vmem:[%s943_s26 + $0x180] sm:$0xff]  ;;  %v225_v13 = vld [vmem:[%s943_s26 + $0x188] sm:$0xff] }
  0x18   : > { %v227_v14 = vld [vmem:[%s943_s26 + $0x1c0] sm:$0xff]  ;;  %224 = vst [vmem:[%s951_s27 + $0x60] sm:$0xff] %v223_v12  ;;  %226 = vst [vmem:[%s951_s27 + $0x68] sm:$0xff] %v225_v13  ;;  %v229_v15 = vld [vmem:[%s943_s26 + $0x1c8] sm:$0xff] }
  0x19   : > { %228 = vst [vmem:[%s951_s27 + $0x70] sm:$0xff] %v227_v14  ;;  %v231_v16 = vld [vmem:[%s943_s26 + $0x200] sm:$0xff]  ;;  %v233_v17 = vld [vmem:[%s943_s26 + $0x208] sm:$0xff]  ;;  %230 = vst [vmem:[%s951_s27 + $0x78] sm:$0xff] %v229_v15 }
  0x1a   : > { %232 = vst [vmem:[%s951_s27 + $0x80] sm:$0xff] %v231_v16  ;;  %234 = vst [vmem:[%s951_s27 + $0x88] sm:$0xff] %v233_v17  ;;  %v235_v18 = vld [vmem:[%s943_s26 + $0x240] sm:$0xff]  ;;  %v237_v19 = vld [vmem:[%s943_s26 + $0x248] sm:$0xff] }
  0x1b   : > { %v239_v20 = vld [vmem:[%s943_s26 + $0x280] sm:$0xff]  ;;  %236 = vst [vmem:[%s951_s27 + $0x90] sm:$0xff] %v235_v18  ;;  %238 = vst [vmem:[%s951_s27 + $0x98] sm:$0xff] %v237_v19  ;;  %v241_v21 = vld [vmem:[%s943_s26 + $0x288] sm:$0xff] }
  0x1c   : > { %240 = vst [vmem:[%s951_s27 + $0xa0] sm:$0xff] %v239_v20  ;;  %242 = vst [vmem:[%s951_s27 + $0xa8] sm:$0xff] %v241_v21 }
  0x1d PF: > { %p729_p6 = scmp.ge.s32.totalorder %s877_s16, 1  ;;  %p247_p7 = scmp.lt.s32.totalorder %s877_s16, 5 }
  0x1f   : > { %p248_p8 = pnand %p729_p6, %p247_p7 }
  0x20   : > { %s254_s28 = sand.u32 (!%p248_p8), 1, %s861_s12   ;;  %v879_v22 = vmov (!%p248_p8), 0   ;;  %v577_v23 = vld [vmem:[%s1045_s2] sm:$0xff] (!%p248_p8)  ;;  %vm465_vm0 = vcmask (!%p248_p8), 1040384   ;;  %vm461_vm1 = vcmask (!%p248_p8), 662528   ;;  %s730_s8 = sshll.u32 (!%p248_p8), %s869_s14, 2 }
  0x21   : > { %251 = sbr.rel (%p248_p8) target bundleno = 280 (0x118), region = 51  ;;  %512 = vmatprep.mubr.bf16.mxu0 (!%p248_p8), %v879_v22  ;;  %553 = vmatprep.mubr.bf16.mxu1 (!%p248_p8), %v879_v22  ;;  %v467_v45 = vsel (!%p248_p8), %vm465_vm0, 65535, %v879_v22  ;;  %v328_v55 = vld [vmem:[%s1043_s0] sm:$0xf] (!%p248_p8)  ;;  %p308_p9 = scmp.lt.s32.totalorder (!%p248_p8), %s730_s8, 15 }
  0x22   : > { %s762_s29 = smul.u32 (!%p248_p8), 176, %s254_s28  ;;  %804 = vset.pattern.permute.xlu0 (!%p248_p8), %v879_v22 }
  0x23   : > { %580 = vperm.xlu0 (!%p248_p8), %804, %v577_v23  }
  0x24   : > { %s997_s5 = scalar_lea.vmem (!%p248_p8), [#allocation3], %s762_s29 }
  0x25   : > { %v805_v24 = vld [vmem:[%s997_s5 + $0x4] ss:$16 sps:$4 sm:$0xff] (!%p248_p8)   ;;  %v807_v25 = vld [vmem:[%s997_s5 + $0xc] ss:$16 sps:$4 sm:$0xff] (!%p248_p8)   ;;  %v809_v26 = vld [vmem:[%s997_s5] ss:$16 sps:$4 sm:$0xff] (!%p248_p8)  }
  0x26   : > { %480 = vmatprep.subr.bf16.mxu0 (!%p248_p8), %v805_v24  ;;  %v810_v27 = vld [vmem:[%s997_s5 + $0x8] ss:$16 sps:$4 sm:$0xff] (!%p248_p8)   ;;  %521 = vmatprep.subr.bf16.mxu1 (!%p248_p8), %v807_v25  ;;  %v811_v28 = vld [vmem:[%s997_s5 + $0x24] ss:$16 sps:$4 sm:$0xff] (!%p248_p8)   ;;  %v813_v29 = vld [vmem:[%s997_s5 + $0x2c] ss:$16 sps:$4 sm:$0xff] (!%p248_p8)  }
  0x27   : > { %481 = vmatpush1.bf16.msra.mxu0 (!%p248_p8), %v809_v26  ;;  %522 = vmatpush1.bf16.msra.mxu1 (!%p248_p8), %v810_v27  ;;  %v815_v30 = vld [vmem:[%s997_s5 + $0x20] ss:$16 sps:$4 sm:$0xff] (!%p248_p8)   ;;  %v816_v31 = vld [vmem:[%s997_s5 + $0x28] ss:$16 sps:$4 sm:$0xff] (!%p248_p8)   ;;  %v817_v32 = vld [vmem:[%s997_s5 + $0x44] ss:$16 sps:$4 sm:$0xff] (!%p248_p8)  }
  0x28   : > { %482 = vmatprep.subr.bf16.mxu0 %v811_v28  ;;  %523 = vmatprep.subr.bf16.mxu1 %v813_v29  ;;  %v819_v33 = vld [vmem:[%s997_s5 + $0x4c] ss:$16 sps:$4 sm:$0xff]   ;;  %v821_v34 = vld [vmem:[%s997_s5 + $0x40] ss:$16 sps:$4 sm:$0xff]   ;;  %v822_v35 = vld [vmem:[%s997_s5 + $0x48] ss:$16 sps:$4 sm:$0xff]  }
  0x29   : > { %v823_v36 = vld [vmem:[%s997_s5 + $0x64] ss:$16 sps:$4 sm:$0xff]   ;;  %v825_v37 = vld [vmem:[%s997_s5 + $0x6c] ss:$16 sps:$4 sm:$0xff]   ;;  %v827_v38 = vld [vmem:[%s997_s5 + $0x60] ss:$16 sps:$4 sm:$0xff]  }
  0x2a   : > { %v828_v39 = vld [vmem:[%s997_s5 + $0x68] ss:$16 sps:$4 sm:$0xff]   ;;  %v829_v40 = vld [vmem:[%s997_s5 + $0x84] ss:$16 sps:$4 sm:$0xff]   ;;  %v831_v41 = vld [vmem:[%s997_s5 + $0x8c] ss:$16 sps:$4 sm:$0xff]  }
  0x2b   : > { %483 = vmatpush1.bf16.msra.mxu0 %v815_v30  ;;  %524 = vmatpush1.bf16.msra.mxu1 %v816_v31  ;;  %v349_v42 = vld [vmem:[%s997_s5 + $0xa0] sm:$0x11]  ;;  %v350_v43 = vld [vmem:[%s997_s5 + $0xa8] sm:$0x11]  ;;  %s1054_s8 = smov (!%p308_p9, %s730_s8), 15 }
  0x2c   : > { %484 = vmatprep.subr.bf16.mxu0 %v817_v32  ;;  %525 = vmatprep.subr.bf16.mxu1 %v819_v33  ;;  %v753_v44 = vcombine.high %v349_v42, %v349_v42  ;;  %v755_v46 = vcombine.high %v350_v43, %v350_v43  ;;  %v833_v47 = vld [vmem:[%s997_s5 + $0x80] ss:$16 sps:$4 sm:$0xff]   ;;  %v834_v48 = vld [vmem:[%s997_s5 + $0x88] ss:$16 sps:$4 sm:$0xff]   ;;  %v752_v49 = vcombine.low %v349_v42, %v349_v42  ;;  %s731_s9 = sshll.u32 %s1054_s8, 3 }
  0x2d   : > { %v754_v50 = vcombine.low %v350_v43, %v350_v43  ;;  %s313_s12 = scalar_lea.vmem %s1046_s3, %s731_s9 }
  0x2e   : > { %v472_v51 = vand.u32 %v753_v44, %v467_v45  ;;  %v478_v52 = vand.u32 %v755_v46, %v467_v45  ;;  %v469_v53 = vand.u32 %v752_v49, %v467_v45 }
  0x2f   : > { %485 = vmatpush1.bf16.msra.mxu0 %v821_v34  ;;  %526 = vmatpush1.bf16.msra.mxu1 %v822_v35  ;;  %v475_v54 = vand.u32 %v754_v50, %v467_v45 }
  0x30   : > { %486 = vmatprep.subr.bf16.mxu0 %v823_v36  ;;  %527 = vmatprep.subr.bf16.mxu1 %v825_v37 }
  0x33   : > { %487 = vmatpush1.bf16.msra.mxu0 %v827_v38  ;;  %528 = vmatpush1.bf16.msra.mxu1 %v828_v39 }
  0x34   : > { %488 = vmatprep.subr.bf16.mxu0 %v829_v40  ;;  %529 = vmatprep.subr.bf16.mxu1 %v831_v41 }
  0x37   : > { %489 = vmatpush1.bf16.msra.mxu0 %v833_v47  ;;  %530 = vmatpush1.bf16.msra.mxu1 %v834_v48 }
  0x38   : > { %490 = vmatprep.subr.bf16.mxu0 %v472_v51  ;;  %531 = vmatprep.subr.bf16.mxu1 %v478_v52 }
  0x3b   : > { %491 = vmatpush1.bf16.msra.mxu0 %v469_v53  ;;  %532 = vmatpush1.bf16.msra.mxu1 %v475_v54 }
  0x3e   : > { %756 = vmatmul.mubr.msk.bf16.vlgmr.msra.gmra.mrb[0].mxu0 %vm461_vm1, %v328_v55  ;;  %757 = vmatmul.mubr.msk.bf16.vlgmr.msra.gmra.mrb[0].mxu1 %vm461_vm1, %v328_v55 }
  0xa2   : > { %v581_v56 = vpop.permute.xlu0 %580 }
 0x111   : > { %v514_v57 = vpop.f32.mrb[0].mxu0  ;;  %v555_v58 = vpop.f32.mrb[0].mxu1 }
 0x112   : > { %v583_v59 = vadd.f32 %v581_v56, %v514_v57  ;;  %v585_v60 = vadd.f32 %v581_v56, %v555_v58  ;;  %v516_v61 = vpop.f32.mrb[1].mxu0  ;;  %v557_v62 = vpop.f32.mrb[1].mxu1 }
 0x113   : > { %v584_v63 = vadd.f32 %v581_v56, %v516_v61  ;;  %v586_v0 = vadd.f32 %v581_v56, %v557_v62  ;;  %v518_v1 = vpop.f32.mrb[2].mxu0  ;;  %v559_v2 = vpop.f32.mrb[2].mxu1 }
 0x114   : > { %v587_v3 = vmax.f32 %v583_v59, 0.0  ;;  %v589_v4 = vmax.f32 %v585_v60, 0.0  ;;  %v519_v5 = vpop.f32.mrb[3].mxu0  ;;  %v560_v6 = vpop.f32.mrb[3].mxu1 }
 0x115   : > { %v588_v7 = vmax.f32 %v584_v63, 0.0  ;;  %v590_v8 = vmax.f32 %v586_v0, 0.0 }
 0x116   : > { %591 = vst [vmem:[%s313_s12] sm:$0xff] %v587_v3  ;;  %593 = vst [vmem:[%s313_s12 + $0x10] sm:$0xff] %v589_v4 }
 0x117   : > { %592 = vst [vmem:[%s313_s12 + $0x8] sm:$0xff] %v588_v7  ;;  %594 = vst [vmem:[%s313_s12 + $0x18] sm:$0xff] %v590_v8 }
 0x118 PF: > { %s13_s16 = sadd.s32 1, %s877_s16   ;;  %s1047_s12 = smov %s865_s13 }
 0x119   : > { %p10_p10 = scmp.ge.s32.totalorder %s13_s16, 6   ;;  %s1048_s13 = smov %s935_s20 }
 0x11a   : > { %s1049_s14 = smov %s873_s15  ;;  %s1050_s15 = smov %s1052_s17 }
 0x11b   :  { %12 = sbr.rel (!%p10_p10) target bundleno = 3 (0x3), region = 104 }

// kernel: cnn_model_forward.44
= control target key start
LH: loop header
LB: loop body
LE: loop exit
PB: predicated region body
PF: predicated region fallthrough
CT: control target
= control target key end

     0   :  { %s956_s12 = smov 0   ;;  %s958_s13 = smov 0   ;;  %s1117_s0 = inlined_call_operand.vmem [shape: bf16[8,108], index: 0, kind: input, shape index: {}]   ;;  %s1118_s1 = inlined_call_operand.vmem [shape: bf16[108,2048], index: 1, kind: input, shape index: {}]   ;;  %s1119_s2 = inlined_call_operand.vmem [shape: f32[8,1], index: 2, kind: input, shape index: {}]   ;;  %s1120_s3 = inlined_call_operand.vmem [shape: f32[8,2048], index: 3, kind: output, shape index: {}]  }
   0x1   :  { %s960_s14 = smov 0   ;;  %s962_s15 = smov 0  }
   0x2   :  { %s964_s16 = smov 0  }
   0x3 LB: > { %s28_s17 = sadd.s32 1, %s929_s15  ;;  %p76_p1 = scmp.ne.s32.totalorder %s921_s13, %s917_s12  ;;  %s933_s16 = sphi %s964_s16, %s13_s16   ;;  %s929_s15 = sphi %s962_s15, %s1124_s15   ;;  %s925_s14 = sphi %s960_s14, %s1123_s14   ;;  %s921_s13 = sphi %s958_s13, %s1122_s13   ;;  %s917_s12 = sphi %s956_s12, %s1121_s12  }
   0x4   : > { %p30_p0 = scmp.ge.s32.totalorder %s28_s17, 4  ;;  %p77_p2 = scmp.eq.s32.totalorder %s933_s16, 0 }
   0x5   : > { %s69_s19 = sadd.s32 1, %s921_s13  ;;  %p768_p5 = scmp.ge.s32.totalorder %s933_s16, 4 }
   0x6   : > { %s1126_s17 = smov (%p30_p0, %s28_s17), 0  ;;  %p78_p3 = por %p77_p2, %p76_p1 }
   0x7   : > { %s65_s18 = ssub.s32 %s929_s15, %s1126_s17  ;;  %173 = sbr.rel (%p768_p5) target bundleno = 32 (0x20), region = 24 }
   0x8   : > { %p67_p4 = scmp.eq.s32.totalorder %s65_s18, 0 }
   0xa   : > { %s991_s20 = scalar_select %p67_p4, %s921_s13, %s69_s19  }
   0xe   : > { %176 = sbr.rel (!%p78_p3) target bundleno = 32 (0x20), region = 28  ;;  %s178_s21 = sand.u32 (%p78_p3), 1, %s921_s13  }
   0xf   : > { %s808_s22 = sshll.u32 (%p78_p3), %s929_s15, 4  ;;  %s809_s23 = smul.u32 (%p78_p3), 224, %s178_s21 }
  0x10   : > { %s999_s26 = scalar_lea.vmem (%p78_p3), %s1118_s1, %s808_s22 }
  0x11   : > { %v199_v0 = vld [vmem:[%s999_s26] sm:$0xff] (%p78_p3)  ;;  %v201_v1 = vld [vmem:[%s999_s26 + $0x8] sm:$0xff] (%p78_p3)  ;;  %s1007_s27 = scalar_lea.vmem (%p78_p3), [#allocation3], %s809_s23 }
  0x12   : > { %v203_v2 = vld [vmem:[%s999_s26 + $0x40] sm:$0xff] (%p78_p3)  ;;  %v205_v3 = vld [vmem:[%s999_s26 + $0x48] sm:$0xff] (%p78_p3)  ;;  %200 = vst [vmem:[%s1007_s27] sm:$0xff] (%p78_p3), %v199_v0  ;;  %202 = vst [vmem:[%s1007_s27 + $0x8] sm:$0xff] (%p78_p3), %v201_v1 }
  0x13   : > { %v207_v4 = vld [vmem:[%s999_s26 + $0x80] sm:$0xff] (%p78_p3)  ;;  %v209_v5 = vld [vmem:[%s999_s26 + $0x88] sm:$0xff] (%p78_p3)  ;;  %204 = vst [vmem:[%s1007_s27 + $0x10] sm:$0xff] (%p78_p3), %v203_v2  ;;  %206 = vst [vmem:[%s1007_s27 + $0x18] sm:$0xff] (%p78_p3), %v205_v3 }
  0x14   : > { %208 = vst [vmem:[%s1007_s27 + $0x20] sm:$0xff] (%p78_p3), %v207_v4  ;;  %210 = vst [vmem:[%s1007_s27 + $0x28] sm:$0xff] (%p78_p3), %v209_v5  ;;  %v211_v6 = vld [vmem:[%s999_s26 + $0xc0] sm:$0xff] (%p78_p3)  ;;  %v213_v7 = vld [vmem:[%s999_s26 + $0xc8] sm:$0xff] (%p78_p3) }
  0x15   : > { %v215_v8 = vld [vmem:[%s999_s26 + $0x100] sm:$0xff]  ;;  %212 = vst [vmem:[%s1007_s27 + $0x30] sm:$0xff] %v211_v6  ;;  %214 = vst [vmem:[%s1007_s27 + $0x38] sm:$0xff] %v213_v7  ;;  %v217_v9 = vld [vmem:[%s999_s26 + $0x108] sm:$0xff] }
  0x16   : > { %216 = vst [vmem:[%s1007_s27 + $0x40] sm:$0xff] %v215_v8  ;;  %v219_v10 = vld [vmem:[%s999_s26 + $0x140] sm:$0xff]  ;;  %v221_v11 = vld [vmem:[%s999_s26 + $0x148] sm:$0xff]  ;;  %218 = vst [vmem:[%s1007_s27 + $0x48] sm:$0xff] %v217_v9 }
  0x17   : > { %220 = vst [vmem:[%s1007_s27 + $0x50] sm:$0xff] %v219_v10  ;;  %222 = vst [vmem:[%s1007_s27 + $0x58] sm:$0xff] %v221_v11  ;;  %v223_v12 = vld [vmem:[%s999_s26 + $0x180] sm:$0xff]  ;;  %v225_v13 = vld [vmem:[%s999_s26 + $0x188] sm:$0xff] }
  0x18   : > { %v227_v14 = vld [vmem:[%s999_s26 + $0x1c0] sm:$0xff]  ;;  %224 = vst [vmem:[%s1007_s27 + $0x60] sm:$0xff] %v223_v12  ;;  %226 = vst [vmem:[%s1007_s27 + $0x68] sm:$0xff] %v225_v13  ;;  %v229_v15 = vld [vmem:[%s999_s26 + $0x1c8] sm:$0xff] }
  0x19   : > { %228 = vst [vmem:[%s1007_s27 + $0x70] sm:$0xff] %v227_v14  ;;  %v231_v16 = vld [vmem:[%s999_s26 + $0x200] sm:$0xff]  ;;  %v233_v17 = vld [vmem:[%s999_s26 + $0x208] sm:$0xff]  ;;  %230 = vst [vmem:[%s1007_s27 + $0x78] sm:$0xff] %v229_v15 }
  0x1a   : > { %232 = vst [vmem:[%s1007_s27 + $0x80] sm:$0xff] %v231_v16  ;;  %234 = vst [vmem:[%s1007_s27 + $0x88] sm:$0xff] %v233_v17  ;;  %v235_v18 = vld [vmem:[%s999_s26 + $0x240] sm:$0xff]  ;;  %v237_v19 = vld [vmem:[%s999_s26 + $0x248] sm:$0xff] }
  0x1b   : > { %v239_v20 = vld [vmem:[%s999_s26 + $0x280] sm:$0xff]  ;;  %236 = vst [vmem:[%s1007_s27 + $0x90] sm:$0xff] %v235_v18  ;;  %238 = vst [vmem:[%s1007_s27 + $0x98] sm:$0xff] %v237_v19  ;;  %v241_v21 = vld [vmem:[%s999_s26 + $0x288] sm:$0xff] }
  0x1c   : > { %240 = vst [vmem:[%s1007_s27 + $0xa0] sm:$0xff] %v239_v20  ;;  %v243_v22 = vld [vmem:[%s999_s26 + $0x2c0] sm:$0xff]  ;;  %v245_v23 = vld [vmem:[%s999_s26 + $0x2c8] sm:$0xff]  ;;  %242 = vst [vmem:[%s1007_s27 + $0xa8] sm:$0xff] %v241_v21 }
  0x1d   : > { %244 = vst [vmem:[%s1007_s27 + $0xb0] sm:$0xff] %v243_v22  ;;  %246 = vst [vmem:[%s1007_s27 + $0xb8] sm:$0xff] %v245_v23  ;;  %v247_v24 = vld [vmem:[%s999_s26 + $0x300] sm:$0xff]  ;;  %v249_v25 = vld [vmem:[%s999_s26 + $0x308] sm:$0xff] }
  0x1e   : > { %v251_v26 = vld [vmem:[%s999_s26 + $0x340] sm:$0xff]  ;;  %248 = vst [vmem:[%s1007_s27 + $0xc0] sm:$0xff] %v247_v24  ;;  %250 = vst [vmem:[%s1007_s27 + $0xc8] sm:$0xff] %v249_v25  ;;  %v253_v27 = vld [vmem:[%s999_s26 + $0x348] sm:$0xff] }
  0x1f   : > { %252 = vst [vmem:[%s1007_s27 + $0xd0] sm:$0xff] %v251_v26  ;;  %254 = vst [vmem:[%s1007_s27 + $0xd8] sm:$0xff] %v253_v27 }
  0x20 PF: > { %p771_p6 = scmp.ge.s32.totalorder %s933_s16, 1  ;;  %p259_p7 = scmp.lt.s32.totalorder %s933_s16, 5 }
  0x22   : > { %p260_p8 = pnand %p771_p6, %p259_p7 }
  0x23   : > { %s266_s28 = sand.u32 (!%p260_p8), 1, %s917_s12   ;;  %v935_v28 = vmov (!%p260_p8), 0   ;;  %v619_v29 = vld [vmem:[%s1119_s2] sm:$0xff] (!%p260_p8)  ;;  %vm509_vm0 = vcmask (!%p260_p8), 1045504   ;;  %vm505_vm1 = vcmask (!%p260_p8), 883712   ;;  %s772_s8 = sshll.u32 (!%p260_p8), %s925_s14, 2 }
  0x24   : > { %263 = sbr.rel (%p260_p8) target bundleno = 287 (0x11f), region = 51  ;;  %554 = vmatprep.mubr.bf16.mxu0 (!%p260_p8), %v935_v28  ;;  %595 = vmatprep.mubr.bf16.mxu1 (!%p260_p8), %v935_v28  ;;  %v340_v60 = vld [vmem:[%s1117_s0] sm:$0xf] (!%p260_p8)  ;;  %p320_p9 = scmp.lt.s32.totalorder (!%p260_p8), %s772_s8, 15 }
  0x25   : > { %s810_s29 = smul.u32 (!%p260_p8), 224, %s266_s28  ;;  %852 = vset.pattern.permute.xlu0 (!%p260_p8), %v935_v28 }
  0x26   : > { %622 = vperm.xlu0 (!%p260_p8), %852, %v619_v29  }
  0x27   : > { %s1065_s5 = scalar_lea.vmem (!%p260_p8), [#allocation3], %s810_s29 }
  0x28   : > { %v853_v30 = vld [vmem:[%s1065_s5 + $0x4] ss:$16 sps:$4 sm:$0xff] (!%p260_p8)   ;;  %v855_v31 = vld [vmem:[%s1065_s5 + $0xc] ss:$16 sps:$4 sm:$0xff] (!%p260_p8)   ;;  %v857_v32 = vld [vmem:[%s1065_s5] ss:$16 sps:$4 sm:$0xff] (!%p260_p8)  }
  0x29   : > { %522 = vmatprep.subr.bf16.mxu0 (!%p260_p8), %v853_v30  ;;  %v858_v33 = vld [vmem:[%s1065_s5 + $0x8] ss:$16 sps:$4 sm:$0xff] (!%p260_p8)   ;;  %563 = vmatprep.subr.bf16.mxu1 (!%p260_p8), %v855_v31  ;;  %v859_v34 = vld [vmem:[%s1065_s5 + $0x24] ss:$16 sps:$4 sm:$0xff] (!%p260_p8)   ;;  %v861_v35 = vld [vmem:[%s1065_s5 + $0x2c] ss:$16 sps:$4 sm:$0xff] (!%p260_p8)  }
  0x2a   : > { %523 = vmatpush1.bf16.msra.mxu0 (!%p260_p8), %v857_v32  ;;  %564 = vmatpush1.bf16.msra.mxu1 (!%p260_p8), %v858_v33  ;;  %v863_v36 = vld [vmem:[%s1065_s5 + $0x20] ss:$16 sps:$4 sm:$0xff] (!%p260_p8)   ;;  %v864_v37 = vld [vmem:[%s1065_s5 + $0x28] ss:$16 sps:$4 sm:$0xff] (!%p260_p8)   ;;  %v865_v38 = vld [vmem:[%s1065_s5 + $0x44] ss:$16 sps:$4 sm:$0xff] (!%p260_p8)  }
  0x2b   : > { %524 = vmatprep.subr.bf16.mxu0 %v859_v34  ;;  %565 = vmatprep.subr.bf16.mxu1 %v861_v35  ;;  %v867_v39 = vld [vmem:[%s1065_s5 + $0x4c] ss:$16 sps:$4 sm:$0xff]   ;;  %v869_v40 = vld [vmem:[%s1065_s5 + $0x40] ss:$16 sps:$4 sm:$0xff]   ;;  %v870_v41 = vld [vmem:[%s1065_s5 + $0x48] ss:$16 sps:$4 sm:$0xff]  }
  0x2c   : > { %v871_v42 = vld [vmem:[%s1065_s5 + $0x64] ss:$16 sps:$4 sm:$0xff]   ;;  %v873_v43 = vld [vmem:[%s1065_s5 + $0x6c] ss:$16 sps:$4 sm:$0xff]   ;;  %v875_v44 = vld [vmem:[%s1065_s5 + $0x60] ss:$16 sps:$4 sm:$0xff]  }
  0x2d   : > { %v876_v45 = vld [vmem:[%s1065_s5 + $0x68] ss:$16 sps:$4 sm:$0xff]   ;;  %v877_v46 = vld [vmem:[%s1065_s5 + $0x84] ss:$16 sps:$4 sm:$0xff]   ;;  %v879_v47 = vld [vmem:[%s1065_s5 + $0x8c] ss:$16 sps:$4 sm:$0xff]  }
  0x2e   : > { %525 = vmatpush1.bf16.msra.mxu0 %v863_v36  ;;  %566 = vmatpush1.bf16.msra.mxu1 %v864_v37  ;;  %v881_v48 = vld [vmem:[%s1065_s5 + $0x80] ss:$16 sps:$4 sm:$0xff]   ;;  %v882_v49 = vld [vmem:[%s1065_s5 + $0x88] ss:$16 sps:$4 sm:$0xff]   ;;  %v883_v50 = vld [vmem:[%s1065_s5 + $0xa4] ss:$16 sps:$4 sm:$0xff]  }
  0x2f   : > { %526 = vmatprep.subr.bf16.mxu0 %v865_v38  ;;  %567 = vmatprep.subr.bf16.mxu1 %v867_v39  ;;  %v885_v51 = vld [vmem:[%s1065_s5 + $0xac] ss:$16 sps:$4 sm:$0xff]   ;;  %v887_v52 = vld [vmem:[%s1065_s5 + $0xa0] ss:$16 sps:$4 sm:$0xff]   ;;  %v888_v53 = vld [vmem:[%s1065_s5 + $0xa8] ss:$16 sps:$4 sm:$0xff]  }
  0x30   : > { %v889_v54 = vld [vmem:[%s1065_s5 + $0xc4] ss:$16 sps:$4 sm:$0x3f]   ;;  %v891_v55 = vld [vmem:[%s1065_s5 + $0xcc] ss:$16 sps:$4 sm:$0x3f]  }
  0x31   : > { %v893_v56 = vld [vmem:[%s1065_s5 + $0xc0] ss:$16 sps:$4 sm:$0x3f]   ;;  %v894_v57 = vld [vmem:[%s1065_s5 + $0xc8] ss:$16 sps:$4 sm:$0x3f]  }
  0x32   : > { %527 = vmatpush1.bf16.msra.mxu0 %v869_v40  ;;  %568 = vmatpush1.bf16.msra.mxu1 %v870_v41  ;;  %v511_v58 = vsel %vm509_vm0, %v893_v56, 0  ;;  %v517_v59 = vsel %vm509_vm0, %v894_v57, 0  ;;  %s1128_s8 = smov (!%p320_p9, %s772_s8), 15 }
  0x33   : > { %528 = vmatprep.subr.bf16.mxu0 %v871_v42  ;;  %569 = vmatprep.subr.bf16.mxu1 %v873_v43  ;;  %s773_s9 = sshll.u32 %s1128_s8, 3 }
  0x34   : > { %s325_s12 = scalar_lea.vmem %s1120_s3, %s773_s9 }
  0x36   : > { %529 = vmatpush1.bf16.msra.mxu0 %v875_v44  ;;  %570 = vmatpush1.bf16.msra.mxu1 %v876_v45 }
  0x37   : > { %530 = vmatprep.subr.bf16.mxu0 %v877_v46  ;;  %571 = vmatprep.subr.bf16.mxu1 %v879_v47 }
  0x3a   : > { %531 = vmatpush1.bf16.msra.mxu0 %v881_v48  ;;  %572 = vmatpush1.bf16.msra.mxu1 %v882_v49 }
  0x3b   : > { %532 = vmatprep.subr.bf16.mxu0 %v883_v50  ;;  %573 = vmatprep.subr.bf16.mxu1 %v885_v51 }
  0x3e   : > { %533 = vmatpush1.bf16.msra.mxu0 %v887_v52  ;;  %574 = vmatpush1.bf16.msra.mxu1 %v888_v53 }
  0x3f   : > { %802 = vmatprep.subr.msk.bf16.mxu0 %vm509_vm0, %v889_v54  ;;  %804 = vmatprep.subr.msk.bf16.mxu1 %vm509_vm0, %v891_v55 }
  0x42   : > { %535 = vmatpush1.bf16.msra.mxu0 %v511_v58  ;;  %576 = vmatpush1.bf16.msra.mxu1 %v517_v59 }
  0x45   : > { %803 = vmatmul.mubr.msk.bf16.vlgmr.msra.gmra.mrb[0].mxu0 %vm505_vm1, %v340_v60  ;;  %805 = vmatmul.mubr.msk.bf16.vlgmr.msra.gmra.mrb[0].mxu1 %vm505_vm1, %v340_v60 }
  0xa5   : > { %v623_v61 = vpop.permute.xlu0 %622 }
 0x118   : > { %v556_v62 = vpop.f32.mrb[0].mxu0  ;;  %v597_v63 = vpop.f32.mrb[0].mxu1 }
 0x119   : > { %v625_v0 = vadd.f32 %v623_v61, %v556_v62  ;;  %v627_v1 = vadd.f32 %v623_v61, %v597_v63  ;;  %v558_v2 = vpop.f32.mrb[1].mxu0  ;;  %v599_v3 = vpop.f32.mrb[1].mxu1 }
 0x11a   : > { %v626_v4 = vadd.f32 %v623_v61, %v558_v2  ;;  %v628_v5 = vadd.f32 %v623_v61, %v599_v3  ;;  %v560_v6 = vpop.f32.mrb[2].mxu0  ;;  %v601_v7 = vpop.f32.mrb[2].mxu1 }
 0x11b   : > { %v629_v8 = vmax.f32 %v625_v0, 0.0  ;;  %v631_v9 = vmax.f32 %v627_v1, 0.0  ;;  %v561_v10 = vpop.f32.mrb[3].mxu0  ;;  %v602_v11 = vpop.f32.mrb[3].mxu1 }
 0x11c   : > { %v630_v12 = vmax.f32 %v626_v4, 0.0  ;;  %v632_v13 = vmax.f32 %v628_v5, 0.0 }
 0x11d   : > { %633 = vst [vmem:[%s325_s12] sm:$0xff] %v629_v8  ;;  %635 = vst [vmem:[%s325_s12 + $0x10] sm:$0xff] %v631_v9 }
 0x11e   : > { %634 = vst [vmem:[%s325_s12 + $0x8] sm:$0xff] %v630_v12  ;;  %636 = vst [vmem:[%s325_s12 + $0x18] sm:$0xff] %v632_v13 }
 0x11f PF: > { %s13_s16 = sadd.s32 1, %s933_s16   ;;  %s1121_s12 = smov %s921_s13 }
 0x120   : > { %p10_p10 = scmp.ge.s32.totalorder %s13_s16, 6   ;;  %s1122_s13 = smov %s991_s20 }
 0x121   : > { %s1123_s14 = smov %s929_s15  ;;  %s1124_s15 = smov %s1126_s17 }
 0x122   :  { %12 = sbr.rel (!%p10_p10) target bundleno = 3 (0x3), region = 104 }

// kernel: cnn_model_forward.49
= control target key start
LH: loop header
LB: loop body
LE: loop exit
PB: predicated region body
PF: predicated region fallthrough
CT: control target
= control target key end

     0   :  { %s1050_s12 = smov 0   ;;  %s1052_s13 = smov 0   ;;  %s1235_s0 = inlined_call_operand.vmem [shape: bf16[8,135], index: 0, kind: input, shape index: {}]   ;;  %s1236_s1 = inlined_call_operand.vmem [shape: bf16[135,2048], index: 1, kind: input, shape index: {}]   ;;  %s1237_s2 = inlined_call_operand.vmem [shape: f32[8,1], index: 2, kind: input, shape index: {}]   ;;  %s1238_s3 = inlined_call_operand.vmem [shape: f32[8,2048], index: 3, kind: output, shape index: {}]  }
   0x1   :  { %s1054_s14 = smov 0   ;;  %s1056_s15 = smov 0  }
   0x2   :  { %s1058_s16 = smov 0  }
   0x3 LB: > { %s28_s17 = sadd.s32 1, %s1022_s15  ;;  %p76_p1 = scmp.ne.s32.totalorder %s1014_s13, %s1010_s12  ;;  %s1026_s16 = sphi %s1058_s16, %s13_s16   ;;  %s1022_s15 = sphi %s1056_s15, %s1242_s15   ;;  %s1018_s14 = sphi %s1054_s14, %s1241_s14   ;;  %s1014_s13 = sphi %s1052_s13, %s1240_s13   ;;  %s1010_s12 = sphi %s1050_s12, %s1239_s12  }
   0x4   : > { %p30_p0 = scmp.ge.s32.totalorder %s28_s17, 4  ;;  %p77_p2 = scmp.eq.s32.totalorder %s1026_s16, 0 }
   0x5   : > { %s69_s19 = sadd.s32 1, %s1014_s13  ;;  %p840_p5 = scmp.ge.s32.totalorder %s1026_s16, 4 }
   0x6   : > { %s1244_s17 = smov (%p30_p0, %s28_s17), 0  ;;  %p78_p3 = por %p77_p2, %p76_p1 }
   0x7   : > { %s65_s18 = ssub.s32 %s1022_s15, %s1244_s17  ;;  %176 = sbr.rel (%p840_p5) target bundleno = 35 (0x23), region = 24 }
   0x8   : > { %p67_p4 = scmp.eq.s32.totalorder %s65_s18, 0 }
   0xa   : > { %s1085_s20 = scalar_select %p67_p4, %s1014_s13, %s69_s19  }
   0xe   : > { %179 = sbr.rel (!%p78_p3) target bundleno = 35 (0x23), region = 28  ;;  %s181_s21 = sand.u32 (%p78_p3), 1, %s1014_s13  }
   0xf   : > { %s888_s22 = sshll.u32 (%p78_p3), %s1022_s15, 4  ;;  %s889_s23 = smul.u32 (%p78_p3), 272, %s181_s21 }
  0x10   : > { %s1093_s26 = scalar_lea.vmem (%p78_p3), %s1236_s1, %s888_s22 }
  0x11   : > { %v202_v0 = vld [vmem:[%s1093_s26] sm:$0xff] (%p78_p3)  ;;  %v204_v1 = vld [vmem:[%s1093_s26 + $0x8] sm:$0xff] (%p78_p3)  ;;  %s1101_s27 = scalar_lea.vmem (%p78_p3), [#allocation3], %s889_s23 }
  0x12   : > { %v206_v2 = vld [vmem:[%s1093_s26 + $0x40] sm:$0xff] (%p78_p3)  ;;  %v208_v3 = vld [vmem:[%s1093_s26 + $0x48] sm:$0xff] (%p78_p3)  ;;  %203 = vst [vmem:[%s1101_s27] sm:$0xff] (%p78_p3), %v202_v0  ;;  %205 = vst [vmem:[%s1101_s27 + $0x8] sm:$0xff] (%p78_p3), %v204_v1 }
  0x13   : > { %v210_v4 = vld [vmem:[%s1093_s26 + $0x80] sm:$0xff] (%p78_p3)  ;;  %v212_v5 = vld [vmem:[%s1093_s26 + $0x88] sm:$0xff] (%p78_p3)  ;;  %207 = vst [vmem:[%s1101_s27 + $0x10] sm:$0xff] (%p78_p3), %v206_v2  ;;  %209 = vst [vmem:[%s1101_s27 + $0x18] sm:$0xff] (%p78_p3), %v208_v3 }
  0x14   : > { %211 = vst [vmem:[%s1101_s27 + $0x20] sm:$0xff] (%p78_p3), %v210_v4  ;;  %213 = vst [vmem:[%s1101_s27 + $0x28] sm:$0xff] (%p78_p3), %v212_v5  ;;  %v214_v6 = vld [vmem:[%s1093_s26 + $0xc0] sm:$0xff] (%p78_p3)  ;;  %v216_v7 = vld [vmem:[%s1093_s26 + $0xc8] sm:$0xff] (%p78_p3) }
  0x15   : > { %v218_v8 = vld [vmem:[%s1093_s26 + $0x100] sm:$0xff]  ;;  %215 = vst [vmem:[%s1101_s27 + $0x30] sm:$0xff] %v214_v6  ;;  %217 = vst [vmem:[%s1101_s27 + $0x38] sm:$0xff] %v216_v7  ;;  %v220_v9 = vld [vmem:[%s1093_s26 + $0x108] sm:$0xff] }
  0x16   : > { %219 = vst [vmem:[%s1101_s27 + $0x40] sm:$0xff] %v218_v8  ;;  %v222_v10 = vld [vmem:[%s1093_s26 + $0x140] sm:$0xff]  ;;  %v224_v11 = vld [vmem:[%s1093_s26 + $0x148] sm:$0xff]  ;;  %221 = vst [vmem:[%s1101_s27 + $0x48] sm:$0xff] %v220_v9 }
  0x17   : > { %223 = vst [vmem:[%s1101_s27 + $0x50] sm:$0xff] %v222_v10  ;;  %225 = vst [vmem:[%s1101_s27 + $0x58] sm:$0xff] %v224_v11  ;;  %v226_v12 = vld [vmem:[%s1093_s26 + $0x180] sm:$0xff]  ;;  %v228_v13 = vld [vmem:[%s1093_s26 + $0x188] sm:$0xff] }
  0x18   : > { %v230_v14 = vld [vmem:[%s1093_s26 + $0x1c0] sm:$0xff]  ;;  %227 = vst [vmem:[%s1101_s27 + $0x60] sm:$0xff] %v226_v12  ;;  %229 = vst [vmem:[%s1101_s27 + $0x68] sm:$0xff] %v228_v13  ;;  %v232_v15 = vld [vmem:[%s1093_s26 + $0x1c8] sm:$0xff] }
  0x19   : > { %231 = vst [vmem:[%s1101_s27 + $0x70] sm:$0xff] %v230_v14  ;;  %v234_v16 = vld [vmem:[%s1093_s26 + $0x200] sm:$0xff]  ;;  %v236_v17 = vld [vmem:[%s1093_s26 + $0x208] sm:$0xff]  ;;  %233 = vst [vmem:[%s1101_s27 + $0x78] sm:$0xff] %v232_v15 }
  0x1a   : > { %235 = vst [vmem:[%s1101_s27 + $0x80] sm:$0xff] %v234_v16  ;;  %237 = vst [vmem:[%s1101_s27 + $0x88] sm:$0xff] %v236_v17  ;;  %v238_v18 = vld [vmem:[%s1093_s26 + $0x240] sm:$0xff]  ;;  %v240_v19 = vld [vmem:[%s1093_s26 + $0x248] sm:$0xff] }
  0x1b   : > { %v242_v20 = vld [vmem:[%s1093_s26 + $0x280] sm:$0xff]  ;;  %239 = vst [vmem:[%s1101_s27 + $0x90] sm:$0xff] %v238_v18  ;;  %241 = vst [vmem:[%s1101_s27 + $0x98] sm:$0xff] %v240_v19  ;;  %v244_v21 = vld [vmem:[%s1093_s26 + $0x288] sm:$0xff] }
  0x1c   : > { %243 = vst [vmem:[%s1101_s27 + $0xa0] sm:$0xff] %v242_v20  ;;  %v246_v22 = vld [vmem:[%s1093_s26 + $0x2c0] sm:$0xff]  ;;  %v248_v23 = vld [vmem:[%s1093_s26 + $0x2c8] sm:$0xff]  ;;  %245 = vst [vmem:[%s1101_s27 + $0xa8] sm:$0xff] %v244_v21 }
  0x1d   : > { %247 = vst [vmem:[%s1101_s27 + $0xb0] sm:$0xff] %v246_v22  ;;  %249 = vst [vmem:[%s1101_s27 + $0xb8] sm:$0xff] %v248_v23  ;;  %v250_v24 = vld [vmem:[%s1093_s26 + $0x300] sm:$0xff]  ;;  %v252_v25 = vld [vmem:[%s1093_s26 + $0x308] sm:$0xff] }
  0x1e   : > { %v254_v26 = vld [vmem:[%s1093_s26 + $0x340] sm:$0xff]  ;;  %251 = vst [vmem:[%s1101_s27 + $0xc0] sm:$0xff] %v250_v24  ;;  %253 = vst [vmem:[%s1101_s27 + $0xc8] sm:$0xff] %v252_v25  ;;  %v256_v27 = vld [vmem:[%s1093_s26 + $0x348] sm:$0xff] }
  0x1f   : > { %255 = vst [vmem:[%s1101_s27 + $0xd0] sm:$0xff] %v254_v26  ;;  %v258_v28 = vld [vmem:[%s1093_s26 + $0x380] sm:$0xff]  ;;  %v260_v29 = vld [vmem:[%s1093_s26 + $0x388] sm:$0xff]  ;;  %257 = vst [vmem:[%s1101_s27 + $0xd8] sm:$0xff] %v256_v27 }
  0x20   : > { %259 = vst [vmem:[%s1101_s27 + $0xe0] sm:$0xff] %v258_v28  ;;  %261 = vst [vmem:[%s1101_s27 + $0xe8] sm:$0xff] %v260_v29  ;;  %v262_v30 = vld [vmem:[%s1093_s26 + $0x3c0] sm:$0xff]  ;;  %v264_v31 = vld [vmem:[%s1093_s26 + $0x3c8] sm:$0xff] }
  0x21   : > { %v266_v32 = vld [vmem:[%s1093_s26 + $0x400] sm:$0xff]  ;;  %263 = vst [vmem:[%s1101_s27 + $0xf0] sm:$0xff] %v262_v30  ;;  %265 = vst [vmem:[%s1101_s27 + $0xf8] sm:$0xff] %v264_v31  ;;  %v268_v33 = vld [vmem:[%s1093_s26 + $0x408] sm:$0xff] }
  0x22   : > { %267 = vst [vmem:[%s1101_s27 + $0x100] sm:$0xff] %v266_v32  ;;  %269 = vst [vmem:[%s1101_s27 + $0x108] sm:$0xff] %v268_v33 }
  0x23 PF: > { %p843_p6 = scmp.ge.s32.totalorder %s1026_s16, 1  ;;  %p274_p7 = scmp.lt.s32.totalorder %s1026_s16, 5 }
  0x25   : > { %p275_p8 = pnand %p843_p6, %p274_p7 }
  0x26   : > { %s281_s28 = sand.u32 (!%p275_p8), 1, %s1010_s12   ;;  %v1171_v34 = vld [vmem:[%s1235_s0] sm:$0xff] (!%p275_p8)  ;;  %vm571_vm0 = vcmask (!%p275_p8), 56320   ;;  %v1028_v37 = vmov (!%p275_p8), 0   ;;  %vm575_vm1 = vcmask (!%p275_p8), 1042432   ;;  %vm576_vm2 = vcmask (!%p275_p8), 1043456  }
  0x27   : > { %278 = sbr.rel (%p275_p8) target bundleno = 298 (0x12a), region = 51  ;;  %v847_v35 = vcombine.high (!%p275_p8), %v1171_v34, %v1171_v34  ;;  %v688_v36 = vld [vmem:[%s1237_s2] sm:$0xff] (!%p275_p8)  ;;  %933 = vset.pattern.permute.xlu0 (!%p275_p8), %v1028_v37  ;;  %v1029_v2 = vmov (!%p275_p8), 65535   ;;  %v846_v19 = vcombine.low (!%p275_p8), %v1171_v34, %v1171_v34  ;;  %s844_s8 = sshll.u32 (!%p275_p8), %s1018_s14, 2 }
  0x28   : > { %s890_s4 = smul.u32 (!%p275_p8), 272, %s281_s28  ;;  %691 = vperm.xlu0 (!%p275_p8), %933, %v688_v36   ;;  %v577_v3 = vsel (!%p275_p8), %vm575_vm1, 4294967295, %v1029_v2  ;;  %p340_p9 = scmp.lt.s32.totalorder (!%p275_p8), %s844_s8, 15 }
  0x29   : > { %884 = vmatprep.mubr.msk.bf16.mxu0 (!%p275_p8), %vm571_vm0, %v847_v35  ;;  %885 = vmatprep.mubr.msk.bf16.mxu1 (!%p275_p8), %vm571_vm0, %v847_v35  ;;  %v578_v10 = vsel (!%p275_p8), %vm576_vm2, %v577_v3, 0 }
  0x2a   : > { %s1178_s7 = scalar_lea.vmem (!%p275_p8), [#allocation3], %s890_s4 }
  0x2b   : > { %v934_v38 = vld [vmem:[%s1178_s7 + $0x4] ss:$16 sps:$4 sm:$0xff] (!%p275_p8)   ;;  %v936_v39 = vld [vmem:[%s1178_s7 + $0xc] ss:$16 sps:$4 sm:$0xff] (!%p275_p8)   ;;  %v938_v40 = vld [vmem:[%s1178_s7] ss:$16 sps:$4 sm:$0xff] (!%p275_p8)  }
  0x2c   : > { %591 = vmatprep.subr.bf16.mxu0 (!%p275_p8), %v934_v38  ;;  %v939_v41 = vld [vmem:[%s1178_s7 + $0x8] ss:$16 sps:$4 sm:$0xff] (!%p275_p8)   ;;  %632 = vmatprep.subr.bf16.mxu1 (!%p275_p8), %v936_v39  ;;  %v940_v42 = vld [vmem:[%s1178_s7 + $0x24] ss:$16 sps:$4 sm:$0xff] (!%p275_p8)   ;;  %v942_v43 = vld [vmem:[%s1178_s7 + $0x2c] ss:$16 sps:$4 sm:$0xff] (!%p275_p8)  }
  0x2d   : > { %592 = vmatpush1.bf16.msra.mxu0 (!%p275_p8), %v938_v40  ;;  %633 = vmatpush1.bf16.msra.mxu1 (!%p275_p8), %v939_v41  ;;  %v944_v44 = vld [vmem:[%s1178_s7 + $0x20] ss:$16 sps:$4 sm:$0xff] (!%p275_p8)   ;;  %v945_v45 = vld [vmem:[%s1178_s7 + $0x28] ss:$16 sps:$4 sm:$0xff] (!%p275_p8)   ;;  %v946_v46 = vld [vmem:[%s1178_s7 + $0x44] ss:$16 sps:$4 sm:$0xff] (!%p275_p8)  }
  0x2e   : > { %593 = vmatprep.subr.bf16.mxu0 %v940_v42  ;;  %634 = vmatprep.subr.bf16.mxu1 %v942_v43  ;;  %v948_v47 = vld [vmem:[%s1178_s7 + $0x4c] ss:$16 sps:$4 sm:$0xff]   ;;  %v950_v48 = vld [vmem:[%s1178_s7 + $0x40] ss:$16 sps:$4 sm:$0xff]   ;;  %v951_v49 = vld [vmem:[%s1178_s7 + $0x48] ss:$16 sps:$4 sm:$0xff]  }
  0x2f   : > { %v952_v50 = vld [vmem:[%s1178_s7 + $0x64] ss:$16 sps:$4 sm:$0xff]   ;;  %v954_v51 = vld [vmem:[%s1178_s7 + $0x6c] ss:$16 sps:$4 sm:$0xff]   ;;  %v956_v52 = vld [vmem:[%s1178_s7 + $0x60] ss:$16 sps:$4 sm:$0xff]  }
  0x30   : > { %v957_v53 = vld [vmem:[%s1178_s7 + $0x68] ss:$16 sps:$4 sm:$0xff]   ;;  %v958_v54 = vld [vmem:[%s1178_s7 + $0x84] ss:$16 sps:$4 sm:$0xff]   ;;  %v960_v55 = vld [vmem:[%s1178_s7 + $0x8c] ss:$16 sps:$4 sm:$0xff]  }
  0x31   : > { %594 = vmatpush1.bf16.msra.mxu0 %v944_v44  ;;  %635 = vmatpush1.bf16.msra.mxu1 %v945_v45  ;;  %v962_v56 = vld [vmem:[%s1178_s7 + $0x80] ss:$16 sps:$4 sm:$0xff]   ;;  %v963_v57 = vld [vmem:[%s1178_s7 + $0x88] ss:$16 sps:$4 sm:$0xff]   ;;  %v964_v58 = vld [vmem:[%s1178_s7 + $0xa4] ss:$16 sps:$4 sm:$0xff]  }
  0x32   : > { %595 = vmatprep.subr.bf16.mxu0 %v946_v46  ;;  %636 = vmatprep.subr.bf16.mxu1 %v948_v47  ;;  %v966_v59 = vld [vmem:[%s1178_s7 + $0xac] ss:$16 sps:$4 sm:$0xff]   ;;  %v968_v60 = vld [vmem:[%s1178_s7 + $0xa0] ss:$16 sps:$4 sm:$0xff]   ;;  %v969_v61 = vld [vmem:[%s1178_s7 + $0xa8] ss:$16 sps:$4 sm:$0xff]  }
  0x33   : > { %v970_v62 = vld [vmem:[%s1178_s7 + $0xc4] ss:$16 sps:$4 sm:$0xff]   ;;  %v972_v63 = vld [vmem:[%s1178_s7 + $0xcc] ss:$16 sps:$4 sm:$0xff]   ;;  %v974_v4 = vld [vmem:[%s1178_s7 + $0xc0] ss:$16 sps:$4 sm:$0xff]  }
  0x34   : > { %v393_v0 = vld [vmem:[%s1178_s7 + $0x100] sm:$0xff]  ;;  %v394_v1 = vld [vmem:[%s1178_s7 + $0x108] sm:$0xff]  ;;  %s1246_s8 = smov (!%p340_p9, %s844_s8), 15 }
  0x35   : > { %596 = vmatpush1.bf16.msra.mxu0 %v950_v48  ;;  %637 = vmatpush1.bf16.msra.mxu1 %v951_v49  ;;  %v975_v5 = vld [vmem:[%s1178_s7 + $0xc8] ss:$16 sps:$4 sm:$0xff]   ;;  %v976_v6 = vld [vmem:[%s1178_s7 + $0xe4] ss:$16 sps:$4 sm:$0xff]   ;;  %v978_v7 = vld [vmem:[%s1178_s7 + $0xec] ss:$16 sps:$4 sm:$0xff]   ;;  %v881_v8 = vcombine.high %v393_v0, %v393_v0  ;;  %v883_v9 = vcombine.high %v394_v1, %v394_v1  ;;  %v880_v13 = vcombine.low %v393_v0, %v393_v0 }
  0x36   : > { %597 = vmatprep.subr.bf16.mxu0 %v952_v50  ;;  %638 = vmatprep.subr.bf16.mxu1 %v954_v51  ;;  %v980_v11 = vld [vmem:[%s1178_s7 + $0xe0] ss:$16 sps:$4 sm:$0xff]   ;;  %v981_v12 = vld [vmem:[%s1178_s7 + $0xe8] ss:$16 sps:$4 sm:$0xff]   ;;  %v882_v14 = vcombine.low %v394_v1, %v394_v1  ;;  %s845_s9 = sshll.u32 %s1246_s8, 3 }
  0x37   : > { %v583_v15 = vand.u32 %v881_v8, %v578_v10  ;;  %v589_v16 = vand.u32 %v883_v9, %v578_v10  ;;  %v580_v17 = vand.u32 %v880_v13, %v578_v10  ;;  %s345_s12 = scalar_lea.vmem %s1238_s3, %s845_s9 }
  0x38   : > { %v586_v18 = vand.u32 %v882_v14, %v578_v10 }
  0x39   : > { %598 = vmatpush1.bf16.msra.mxu0 %v956_v52  ;;  %639 = vmatpush1.bf16.msra.mxu1 %v957_v53 }
  0x3a   : > { %599 = vmatprep.subr.bf16.mxu0 %v958_v54  ;;  %640 = vmatprep.subr.bf16.mxu1 %v960_v55 }
  0x3d   : > { %600 = vmatpush1.bf16.msra.mxu0 %v962_v56  ;;  %641 = vmatpush1.bf16.msra.mxu1 %v963_v57 }
  0x3e   : > { %601 = vmatprep.subr.bf16.mxu0 %v964_v58  ;;  %642 = vmatprep.subr.bf16.mxu1 %v966_v59 }
  0x41   : > { %602 = vmatpush1.bf16.msra.mxu0 %v968_v60  ;;  %643 = vmatpush1.bf16.msra.mxu1 %v969_v61 }
  0x42   : > { %603 = vmatprep.subr.bf16.mxu0 %v970_v62  ;;  %644 = vmatprep.subr.bf16.mxu1 %v972_v63 }
  0x45   : > { %604 = vmatpush1.bf16.msra.mxu0 %v974_v4  ;;  %645 = vmatpush1.bf16.msra.mxu1 %v975_v5 }
  0x46   : > { %605 = vmatprep.subr.bf16.mxu0 %v976_v6  ;;  %646 = vmatprep.subr.bf16.mxu1 %v978_v7 }
  0x49   : > { %606 = vmatpush1.bf16.msra.mxu0 %v980_v11  ;;  %647 = vmatpush1.bf16.msra.mxu1 %v981_v12 }
  0x4a   : > { %607 = vmatprep.subr.bf16.mxu0 %v583_v15  ;;  %648 = vmatprep.subr.bf16.mxu1 %v589_v16 }
  0x4d   : > { %608 = vmatpush1.bf16.msra.mxu0 %v580_v17  ;;  %649 = vmatpush1.bf16.msra.mxu1 %v586_v18 }
  0x50   : > { %624 = vmatmul.mubr.bf16.vlgmr.msra.gmra.mrb[0].mxu0 %v846_v19  ;;  %665 = vmatmul.mubr.bf16.vlgmr.msra.gmra.mrb[0].mxu1 %v846_v19 }
  0xa7   : > { %v692_v20 = vpop.permute.xlu0 %691 }
 0x123   : > { %v625_v21 = vpop.f32.mrb[0].mxu0  ;;  %v666_v22 = vpop.f32.mrb[0].mxu1 }
 0x124   : > { %v694_v23 = vadd.f32 %v692_v20, %v625_v21  ;;  %v696_v24 = vadd.f32 %v692_v20, %v666_v22  ;;  %v627_v25 = vpop.f32.mrb[1].mxu0  ;;  %v668_v26 = vpop.f32.mrb[1].mxu1 }
 0x125   : > { %v695_v27 = vadd.f32 %v692_v20, %v627_v25  ;;  %v697_v28 = vadd.f32 %v692_v20, %v668_v26  ;;  %v629_v29 = vpop.f32.mrb[2].mxu0  ;;  %v670_v30 = vpop.f32.mrb[2].mxu1 }
 0x126   : > { %v698_v31 = vmax.f32 %v694_v23, 0.0  ;;  %v700_v32 = vmax.f32 %v696_v24, 0.0  ;;  %v630_v33 = vpop.f32.mrb[3].mxu0  ;;  %v671_v34 = vpop.f32.mrb[3].mxu1 }
 0x127   : > { %v699_v35 = vmax.f32 %v695_v27, 0.0  ;;  %v701_v36 = vmax.f32 %v697_v28, 0.0 }
 0x128   : > { %702 = vst [vmem:[%s345_s12] sm:$0xff] %v698_v31  ;;  %704 = vst [vmem:[%s345_s12 + $0x10] sm:$0xff] %v700_v32 }
 0x129   : > { %703 = vst [vmem:[%s345_s12 + $0x8] sm:$0xff] %v699_v35  ;;  %705 = vst [vmem:[%s345_s12 + $0x18] sm:$0xff] %v701_v36 }
 0x12a PF: > { %s13_s16 = sadd.s32 1, %s1026_s16   ;;  %s1239_s12 = smov %s1014_s13 }
 0x12b   : > { %p10_p10 = scmp.ge.s32.totalorder %s13_s16, 6   ;;  %s1240_s13 = smov %s1085_s20 }
 0x12c   : > { %s1241_s14 = smov %s1022_s15  ;;  %s1242_s15 = smov %s1244_s17 }
 0x12d   :  { %12 = sbr.rel (!%p10_p10) target bundleno = 3 (0x3), region = 104 }

// kernel: cnn_model_forward.52
= control target key start
LH: loop header
LB: loop body
LE: loop exit
PB: predicated region body
PF: predicated region fallthrough
CT: control target
= control target key end

     0   :  { %s1131_s12 = smov 0   ;;  %s1133_s13 = smov 0   ;;  %s1340_s0 = inlined_call_operand.vmem [shape: bf16[8,162], index: 0, kind: input, shape index: {}]   ;;  %s1341_s1 = inlined_call_operand.vmem [shape: bf16[162,2048], index: 1, kind: input, shape index: {}]   ;;  %s1342_s2 = inlined_call_operand.vmem [shape: f32[8,1], index: 2, kind: input, shape index: {}]   ;;  %s1343_s3 = inlined_call_operand.vmem [shape: f32[8,2048], index: 3, kind: output, shape index: {}]  }
   0x1   :  { %s1135_s14 = smov 0   ;;  %s1137_s15 = smov 0  }
   0x2   :  { %s1139_s16 = smov 0  }
   0x3 LB: > { %s28_s17 = sadd.s32 1, %s1104_s15  ;;  %p76_p1 = scmp.ne.s32.totalorder %s1096_s13, %s1092_s12  ;;  %s1108_s16 = sphi %s1139_s16, %s13_s16   ;;  %s1104_s15 = sphi %s1137_s15, %s1347_s15   ;;  %s1100_s14 = sphi %s1135_s14, %s1346_s14   ;;  %s1096_s13 = sphi %s1133_s13, %s1345_s13   ;;  %s1092_s12 = sphi %s1131_s12, %s1344_s12  }
   0x4   : > { %p30_p0 = scmp.ge.s32.totalorder %s28_s17, 4  ;;  %p77_p2 = scmp.eq.s32.totalorder %s1108_s16, 0 }
   0x5   : > { %s69_s19 = sadd.s32 1, %s1096_s13  ;;  %p901_p5 = scmp.ge.s32.totalorder %s1108_s16, 4 }
   0x6   : > { %s1349_s17 = smov (%p30_p0, %s28_s17), 0  ;;  %p78_p3 = por %p77_p2, %p76_p1 }
   0x7   : > { %s65_s18 = ssub.s32 %s1104_s15, %s1349_s17  ;;  %176 = sbr.rel (%p901_p5) target bundleno = 39 (0x27), region = 24 }
   0x8   : > { %p67_p4 = scmp.eq.s32.totalorder %s65_s18, 0 }
   0xa   : > { %s1166_s20 = scalar_select %p67_p4, %s1096_s13, %s69_s19  }
   0xe   : > { %179 = sbr.rel (!%p78_p3) target bundleno = 39 (0x27), region = 28  ;;  %s181_s21 = sand.u32 (%p78_p3), 1, %s1096_s13  }
   0xf   : > { %s959_s22 = sshll.u32 (%p78_p3), %s1104_s15, 4  ;;  %s960_s23 = smul.u32 (%p78_p3), 336, %s181_s21 }
  0x10   : > { %s1174_s26 = scalar_lea.vmem (%p78_p3), %s1341_s1, %s959_s22 }
  0x11   : > { %v202_v0 = vld [vmem:[%s1174_s26] sm:$0xff] (%p78_p3)  ;;  %v204_v1 = vld [vmem:[%s1174_s26 + $0x8] sm:$0xff] (%p78_p3)  ;;  %s1182_s27 = scalar_lea.vmem (%p78_p3), [#allocation3], %s960_s23 }
  0x12   : > { %v206_v2 = vld [vmem:[%s1174_s26 + $0x40] sm:$0xff] (%p78_p3)  ;;  %v208_v3 = vld [vmem:[%s1174_s26 + $0x48] sm:$0xff] (%p78_p3)  ;;  %203 = vst [vmem:[%s1182_s27] sm:$0xff] (%p78_p3), %v202_v0  ;;  %205 = vst [vmem:[%s1182_s27 + $0x8] sm:$0xff] (%p78_p3), %v204_v1 }
  0x13   : > { %v210_v4 = vld [vmem:[%s1174_s26 + $0x80] sm:$0xff] (%p78_p3)  ;;  %v212_v5 = vld [vmem:[%s1174_s26 + $0x88] sm:$0xff] (%p78_p3)  ;;  %207 = vst [vmem:[%s1182_s27 + $0x10] sm:$0xff] (%p78_p3), %v206_v2  ;;  %209 = vst [vmem:[%s1182_s27 + $0x18] sm:$0xff] (%p78_p3), %v208_v3 }
  0x14   : > { %211 = vst [vmem:[%s1182_s27 + $0x20] sm:$0xff] (%p78_p3), %v210_v4  ;;  %213 = vst [vmem:[%s1182_s27 + $0x28] sm:$0xff] (%p78_p3), %v212_v5  ;;  %v214_v6 = vld [vmem:[%s1174_s26 + $0xc0] sm:$0xff] (%p78_p3)  ;;  %v216_v7 = vld [vmem:[%s1174_s26 + $0xc8] sm:$0xff] (%p78_p3) }
  0x15   : > { %v218_v8 = vld [vmem:[%s1174_s26 + $0x100] sm:$0xff]  ;;  %215 = vst [vmem:[%s1182_s27 + $0x30] sm:$0xff] %v214_v6  ;;  %217 = vst [vmem:[%s1182_s27 + $0x38] sm:$0xff] %v216_v7  ;;  %v220_v9 = vld [vmem:[%s1174_s26 + $0x108] sm:$0xff] }
  0x16   : > { %219 = vst [vmem:[%s1182_s27 + $0x40] sm:$0xff] %v218_v8  ;;  %v222_v10 = vld [vmem:[%s1174_s26 + $0x140] sm:$0xff]  ;;  %v224_v11 = vld [vmem:[%s1174_s26 + $0x148] sm:$0xff]  ;;  %221 = vst [vmem:[%s1182_s27 + $0x48] sm:$0xff] %v220_v9 }
  0x17   : > { %223 = vst [vmem:[%s1182_s27 + $0x50] sm:$0xff] %v222_v10  ;;  %225 = vst [vmem:[%s1182_s27 + $0x58] sm:$0xff] %v224_v11  ;;  %v226_v12 = vld [vmem:[%s1174_s26 + $0x180] sm:$0xff]  ;;  %v228_v13 = vld [vmem:[%s1174_s26 + $0x188] sm:$0xff] }
  0x18   : > { %v230_v14 = vld [vmem:[%s1174_s26 + $0x1c0] sm:$0xff]  ;;  %227 = vst [vmem:[%s1182_s27 + $0x60] sm:$0xff] %v226_v12  ;;  %229 = vst [vmem:[%s1182_s27 + $0x68] sm:$0xff] %v228_v13  ;;  %v232_v15 = vld [vmem:[%s1174_s26 + $0x1c8] sm:$0xff] }
  0x19   : > { %231 = vst [vmem:[%s1182_s27 + $0x70] sm:$0xff] %v230_v14  ;;  %v234_v16 = vld [vmem:[%s1174_s26 + $0x200] sm:$0xff]  ;;  %v236_v17 = vld [vmem:[%s1174_s26 + $0x208] sm:$0xff]  ;;  %233 = vst [vmem:[%s1182_s27 + $0x78] sm:$0xff] %v232_v15 }
  0x1a   : > { %235 = vst [vmem:[%s1182_s27 + $0x80] sm:$0xff] %v234_v16  ;;  %237 = vst [vmem:[%s1182_s27 + $0x88] sm:$0xff] %v236_v17  ;;  %v238_v18 = vld [vmem:[%s1174_s26 + $0x240] sm:$0xff]  ;;  %v240_v19 = vld [vmem:[%s1174_s26 + $0x248] sm:$0xff] }
  0x1b   : > { %v242_v20 = vld [vmem:[%s1174_s26 + $0x280] sm:$0xff]  ;;  %239 = vst [vmem:[%s1182_s27 + $0x90] sm:$0xff] %v238_v18  ;;  %241 = vst [vmem:[%s1182_s27 + $0x98] sm:$0xff] %v240_v19  ;;  %v244_v21 = vld [vmem:[%s1174_s26 + $0x288] sm:$0xff] }
  0x1c   : > { %243 = vst [vmem:[%s1182_s27 + $0xa0] sm:$0xff] %v242_v20  ;;  %v246_v22 = vld [vmem:[%s1174_s26 + $0x2c0] sm:$0xff]  ;;  %v248_v23 = vld [vmem:[%s1174_s26 + $0x2c8] sm:$0xff]  ;;  %245 = vst [vmem:[%s1182_s27 + $0xa8] sm:$0xff] %v244_v21 }
  0x1d   : > { %247 = vst [vmem:[%s1182_s27 + $0xb0] sm:$0xff] %v246_v22  ;;  %249 = vst [vmem:[%s1182_s27 + $0xb8] sm:$0xff] %v248_v23  ;;  %v250_v24 = vld [vmem:[%s1174_s26 + $0x300] sm:$0xff]  ;;  %v252_v25 = vld [vmem:[%s1174_s26 + $0x308] sm:$0xff] }
  0x1e   : > { %v254_v26 = vld [vmem:[%s1174_s26 + $0x340] sm:$0xff]  ;;  %251 = vst [vmem:[%s1182_s27 + $0xc0] sm:$0xff] %v250_v24  ;;  %253 = vst [vmem:[%s1182_s27 + $0xc8] sm:$0xff] %v252_v25  ;;  %v256_v27 = vld [vmem:[%s1174_s26 + $0x348] sm:$0xff] }
  0x1f   : > { %255 = vst [vmem:[%s1182_s27 + $0xd0] sm:$0xff] %v254_v26  ;;  %v258_v28 = vld [vmem:[%s1174_s26 + $0x380] sm:$0xff]  ;;  %v260_v29 = vld [vmem:[%s1174_s26 + $0x388] sm:$0xff]  ;;  %257 = vst [vmem:[%s1182_s27 + $0xd8] sm:$0xff] %v256_v27 }
  0x20   : > { %259 = vst [vmem:[%s1182_s27 + $0xe0] sm:$0xff] %v258_v28  ;;  %261 = vst [vmem:[%s1182_s27 + $0xe8] sm:$0xff] %v260_v29  ;;  %v262_v30 = vld [vmem:[%s1174_s26 + $0x3c0] sm:$0xff]  ;;  %v264_v31 = vld [vmem:[%s1174_s26 + $0x3c8] sm:$0xff] }
  0x21   : > { %v266_v32 = vld [vmem:[%s1174_s26 + $0x400] sm:$0xff]  ;;  %263 = vst [vmem:[%s1182_s27 + $0xf0] sm:$0xff] %v262_v30  ;;  %265 = vst [vmem:[%s1182_s27 + $0xf8] sm:$0xff] %v264_v31  ;;  %v268_v33 = vld [vmem:[%s1174_s26 + $0x408] sm:$0xff] }
  0x22   : > { %267 = vst [vmem:[%s1182_s27 + $0x100] sm:$0xff] %v266_v32  ;;  %v270_v34 = vld [vmem:[%s1174_s26 + $0x440] sm:$0xff]  ;;  %v272_v35 = vld [vmem:[%s1174_s26 + $0x448] sm:$0xff]  ;;  %269 = vst [vmem:[%s1182_s27 + $0x108] sm:$0xff] %v268_v33 }
  0x23   : > { %271 = vst [vmem:[%s1182_s27 + $0x110] sm:$0xff] %v270_v34  ;;  %273 = vst [vmem:[%s1182_s27 + $0x118] sm:$0xff] %v272_v35  ;;  %v274_v36 = vld [vmem:[%s1174_s26 + $0x480] sm:$0xff]  ;;  %v276_v37 = vld [vmem:[%s1174_s26 + $0x488] sm:$0xff] }
  0x24   : > { %v278_v38 = vld [vmem:[%s1174_s26 + $0x4c0] sm:$0xff]  ;;  %275 = vst [vmem:[%s1182_s27 + $0x120] sm:$0xff] %v274_v36  ;;  %277 = vst [vmem:[%s1182_s27 + $0x128] sm:$0xff] %v276_v37  ;;  %v280_v39 = vld [vmem:[%s1174_s26 + $0x4c8] sm:$0xff] }
  0x25   : > { %279 = vst [vmem:[%s1182_s27 + $0x130] sm:$0xff] %v278_v38  ;;  %v282_v40 = vld [vmem:[%s1174_s26 + $0x500] sm:$0xff]  ;;  %v284_v41 = vld [vmem:[%s1174_s26 + $0x508] sm:$0xff]  ;;  %281 = vst [vmem:[%s1182_s27 + $0x138] sm:$0xff] %v280_v39 }
  0x26   : > { %283 = vst [vmem:[%s1182_s27 + $0x140] sm:$0xff] %v282_v40  ;;  %285 = vst [vmem:[%s1182_s27 + $0x148] sm:$0xff] %v284_v41 }
  0x27 PF: > { %p904_p6 = scmp.ge.s32.totalorder %s1108_s16, 1  ;;  %p290_p7 = scmp.lt.s32.totalorder %s1108_s16, 5 }
  0x29   : > { %p291_p8 = pnand %p904_p6, %p290_p7 }
  0x2a   : > { %s297_s28 = sand.u32 (!%p291_p8), 1, %s1092_s12   ;;  %v1268_v42 = vld [vmem:[%s1340_s0] sm:$0xff] (!%p291_p8)  ;;  %vm635_vm0 = vcmask (!%p291_p8), 277504   ;;  %v1110_v45 = vmov (!%p291_p8), 0   ;;  %vm639_vm1 = vcmask (!%p291_p8), 1040384   ;;  %s905_s8 = sshll.u32 (!%p291_p8), %s1100_s14, 2 }
  0x2b   : > { %294 = sbr.rel (%p291_p8) target bundleno = 310 (0x136), region = 51  ;;  %v749_v43 = vld [vmem:[%s1342_s2] sm:$0xff] (!%p291_p8)  ;;  %v908_v44 = vcombine.high (!%p291_p8), %v1268_v42, %v1268_v42  ;;  %1003 = vset.pattern.permute.xlu0 (!%p291_p8), %v1110_v45  ;;  %v907_v30 = vcombine.low (!%p291_p8), %v1268_v42, %v1268_v42  ;;  %p356_p9 = scmp.lt.s32.totalorder (!%p291_p8), %s905_s8, 15 }
  0x2c   : > { %s961_s6 = smul.u32 (!%p291_p8), 336, %s297_s28  ;;  %752 = vperm.xlu0 (!%p291_p8), %1003, %v749_v43  }
  0x2d   : > { %954 = vmatprep.mubr.msk.bf16.mxu0 (!%p291_p8), %vm635_vm0, %v908_v44  ;;  %956 = vmatprep.mubr.msk.bf16.mxu1 (!%p291_p8), %vm635_vm0, %v908_v44 }
  0x2e   : > { %s1275_s7 = scalar_lea.vmem (!%p291_p8), [#allocation3], %s961_s6 }
  0x2f   : > { %v1004_v46 = vld [vmem:[%s1275_s7 + $0x4] ss:$16 sps:$4 sm:$0xff] (!%p291_p8)   ;;  %v1006_v47 = vld [vmem:[%s1275_s7 + $0xc] ss:$16 sps:$4 sm:$0xff] (!%p291_p8)   ;;  %v1008_v48 = vld [vmem:[%s1275_s7] ss:$16 sps:$4 sm:$0xff] (!%p291_p8)  }
  0x30   : > { %652 = vmatprep.subr.bf16.mxu0 (!%p291_p8), %v1004_v46  ;;  %v1009_v49 = vld [vmem:[%s1275_s7 + $0x8] ss:$16 sps:$4 sm:$0xff] (!%p291_p8)   ;;  %693 = vmatprep.subr.bf16.mxu1 (!%p291_p8), %v1006_v47  ;;  %v1010_v50 = vld [vmem:[%s1275_s7 + $0x24] ss:$16 sps:$4 sm:$0xff] (!%p291_p8)   ;;  %v1012_v51 = vld [vmem:[%s1275_s7 + $0x2c] ss:$16 sps:$4 sm:$0xff] (!%p291_p8)  }
  0x31   : > { %653 = vmatpush1.bf16.msra.mxu0 (!%p291_p8), %v1008_v48  ;;  %694 = vmatpush1.bf16.msra.mxu1 (!%p291_p8), %v1009_v49  ;;  %v1014_v52 = vld [vmem:[%s1275_s7 + $0x20] ss:$16 sps:$4 sm:$0xff] (!%p291_p8)   ;;  %v1015_v53 = vld [vmem:[%s1275_s7 + $0x28] ss:$16 sps:$4 sm:$0xff] (!%p291_p8)   ;;  %v1016_v54 = vld [vmem:[%s1275_s7 + $0x44] ss:$16 sps:$4 sm:$0xff] (!%p291_p8)  }
  0x32   : > { %654 = vmatprep.subr.bf16.mxu0 %v1010_v50  ;;  %695 = vmatprep.subr.bf16.mxu1 %v1012_v51  ;;  %v1018_v55 = vld [vmem:[%s1275_s7 + $0x4c] ss:$16 sps:$4 sm:$0xff]   ;;  %v1020_v56 = vld [vmem:[%s1275_s7 + $0x40] ss:$16 sps:$4 sm:$0xff]   ;;  %v1021_v57 = vld [vmem:[%s1275_s7 + $0x48] ss:$16 sps:$4 sm:$0xff]  }
  0x33   : > { %v1022_v58 = vld [vmem:[%s1275_s7 + $0x64] ss:$16 sps:$4 sm:$0xff]   ;;  %v1024_v59 = vld [vmem:[%s1275_s7 + $0x6c] ss:$16 sps:$4 sm:$0xff]   ;;  %v1026_v60 = vld [vmem:[%s1275_s7 + $0x60] ss:$16 sps:$4 sm:$0xff]  }
  0x34   : > { %v1027_v61 = vld [vmem:[%s1275_s7 + $0x68] ss:$16 sps:$4 sm:$0xff]   ;;  %v1028_v62 = vld [vmem:[%s1275_s7 + $0x84] ss:$16 sps:$4 sm:$0xff]   ;;  %v1030_v63 = vld [vmem:[%s1275_s7 + $0x8c] ss:$16 sps:$4 sm:$0xff]  }
  0x35   : > { %655 = vmatpush1.bf16.msra.mxu0 %v1014_v52  ;;  %696 = vmatpush1.bf16.msra.mxu1 %v1015_v53  ;;  %v1032_v0 = vld [vmem:[%s1275_s7 + $0x80] ss:$16 sps:$4 sm:$0xff]   ;;  %v1033_v1 = vld [vmem:[%s1275_s7 + $0x88] ss:$16 sps:$4 sm:$0xff]   ;;  %v1034_v2 = vld [vmem:[%s1275_s7 + $0xa4] ss:$16 sps:$4 sm:$0xff]  }
  0x36   : > { %656 = vmatprep.subr.bf16.mxu0 %v1016_v54  ;;  %697 = vmatprep.subr.bf16.mxu1 %v1018_v55  ;;  %v1036_v3 = vld [vmem:[%s1275_s7 + $0xac] ss:$16 sps:$4 sm:$0xff]   ;;  %v1038_v4 = vld [vmem:[%s1275_s7 + $0xa0] ss:$16 sps:$4 sm:$0xff]   ;;  %v1039_v5 = vld [vmem:[%s1275_s7 + $0xa8] ss:$16 sps:$4 sm:$0xff]  }
  0x37   : > { %v1040_v6 = vld [vmem:[%s1275_s7 + $0xc4] ss:$16 sps:$4 sm:$0xff]   ;;  %v1042_v7 = vld [vmem:[%s1275_s7 + $0xcc] ss:$16 sps:$4 sm:$0xff]   ;;  %v1044_v8 = vld [vmem:[%s1275_s7 + $0xc0] ss:$16 sps:$4 sm:$0xff]  }
  0x38   : > { %v1045_v9 = vld [vmem:[%s1275_s7 + $0xc8] ss:$16 sps:$4 sm:$0xff]   ;;  %v1046_v10 = vld [vmem:[%s1275_s7 + $0xe4] ss:$16 sps:$4 sm:$0xff]   ;;  %v1048_v11 = vld [vmem:[%s1275_s7 + $0xec] ss:$16 sps:$4 sm:$0xff]  }
  0x39   : > { %657 = vmatpush1.bf16.msra.mxu0 %v1020_v56  ;;  %698 = vmatpush1.bf16.msra.mxu1 %v1021_v57  ;;  %v1050_v12 = vld [vmem:[%s1275_s7 + $0xe0] ss:$16 sps:$4 sm:$0xff]   ;;  %v1051_v13 = vld [vmem:[%s1275_s7 + $0xe8] ss:$16 sps:$4 sm:$0xff]   ;;  %v1052_v14 = vld [vmem:[%s1275_s7 + $0x104] ss:$16 sps:$4 sm:$0xff]  }
  0x3a   : > { %658 = vmatprep.subr.bf16.mxu0 %v1022_v58  ;;  %699 = vmatprep.subr.bf16.mxu1 %v1024_v59  ;;  %v1054_v15 = vld [vmem:[%s1275_s7 + $0x10c] ss:$16 sps:$4 sm:$0xff]   ;;  %v1056_v16 = vld [vmem:[%s1275_s7 + $0x100] ss:$16 sps:$4 sm:$0xff]   ;;  %v1057_v17 = vld [vmem:[%s1275_s7 + $0x108] ss:$16 sps:$4 sm:$0xff]  }
  0x3b   : > { %v1058_v18 = vld [vmem:[%s1275_s7 + $0x124] ss:$16 sps:$4 sm:$0xff]   ;;  %v1060_v19 = vld [vmem:[%s1275_s7 + $0x12c] ss:$16 sps:$4 sm:$0xff]   ;;  %v1062_v22 = vld [vmem:[%s1275_s7 + $0x120] ss:$16 sps:$4 sm:$0xff]  }
  0x3c   : > { %v417_v20 = vld [vmem:[%s1275_s7 + $0x140] sm:$0x11]  ;;  %v418_v21 = vld [vmem:[%s1275_s7 + $0x148] sm:$0x11]  ;;  %s1351_s8 = smov (!%p356_p9, %s905_s8), 15 }
  0x3d   : > { %659 = vmatpush1.bf16.msra.mxu0 %v1026_v60  ;;  %700 = vmatpush1.bf16.msra.mxu1 %v1027_v61  ;;  %v1063_v23 = vld [vmem:[%s1275_s7 + $0x128] ss:$16 sps:$4 sm:$0xff]   ;;  %v950_v24 = vcombine.high %v417_v20, %v417_v20  ;;  %v952_v25 = vcombine.high %v418_v21, %v418_v21  ;;  %v949_v26 = vcombine.low %v417_v20, %v417_v20  ;;  %s906_s9 = sshll.u32 %s1351_s8, 3 }
  0x3e   : > { %660 = vmatprep.subr.bf16.mxu0 %v1028_v62  ;;  %701 = vmatprep.subr.bf16.mxu1 %v1030_v63  ;;  %v951_v27 = vcombine.low %v418_v21, %v418_v21  ;;  %s361_s12 = scalar_lea.vmem %s1343_s3, %s906_s9 }
  0x3f   : > { %v641_v28 = vsel %vm639_vm1, %v949_v26, 0 }
  0x40   : > { %v647_v29 = vsel %vm639_vm1, %v951_v27, 0 }
  0x41   : > { %661 = vmatpush1.bf16.msra.mxu0 %v1032_v0  ;;  %702 = vmatpush1.bf16.msra.mxu1 %v1033_v1 }
  0x42   : > { %662 = vmatprep.subr.bf16.mxu0 %v1034_v2  ;;  %703 = vmatprep.subr.bf16.mxu1 %v1036_v3 }
  0x45   : > { %663 = vmatpush1.bf16.msra.mxu0 %v1038_v4  ;;  %704 = vmatpush1.bf16.msra.mxu1 %v1039_v5 }
  0x46   : > { %664 = vmatprep.subr.bf16.mxu0 %v1040_v6  ;;  %705 = vmatprep.subr.bf16.mxu1 %v1042_v7 }
  0x49   : > { %665 = vmatpush1.bf16.msra.mxu0 %v1044_v8  ;;  %706 = vmatpush1.bf16.msra.mxu1 %v1045_v9 }
  0x4a   : > { %666 = vmatprep.subr.bf16.mxu0 %v1046_v10  ;;  %707 = vmatprep.subr.bf16.mxu1 %v1048_v11 }
  0x4d   : > { %667 = vmatpush1.bf16.msra.mxu0 %v1050_v12  ;;  %708 = vmatpush1.bf16.msra.mxu1 %v1051_v13 }
  0x4e   : > { %668 = vmatprep.subr.bf16.mxu0 %v1052_v14  ;;  %709 = vmatprep.subr.bf16.mxu1 %v1054_v15 }
  0x51   : > { %669 = vmatpush1.bf16.msra.mxu0 %v1056_v16  ;;  %710 = vmatpush1.bf16.msra.mxu1 %v1057_v17 }
  0x52   : > { %670 = vmatprep.subr.bf16.mxu0 %v1058_v18  ;;  %711 = vmatprep.subr.bf16.mxu1 %v1060_v19 }
  0x55   : > { %671 = vmatpush1.bf16.msra.mxu0 %v1062_v22  ;;  %712 = vmatpush1.bf16.msra.mxu1 %v1063_v23 }
  0x56   : > { %953 = vmatprep.subr.msk.bf16.mxu0 %vm639_vm1, %v950_v24  ;;  %955 = vmatprep.subr.msk.bf16.mxu1 %vm639_vm1, %v952_v25 }
  0x59   : > { %673 = vmatpush1.bf16.msra.mxu0 %v641_v28  ;;  %714 = vmatpush1.bf16.msra.mxu1 %v647_v29 }
  0x5c   : > { %685 = vmatmul.mubr.bf16.vlgmr.msra.gmra.mrb[0].mxu0 %v907_v30  ;;  %726 = vmatmul.mubr.bf16.vlgmr.msra.gmra.mrb[0].mxu1 %v907_v30 }
  0xab   : > { %v753_v31 = vpop.permute.xlu0 %752 }
 0x12f   : > { %v686_v32 = vpop.f32.mrb[0].mxu0  ;;  %v727_v33 = vpop.f32.mrb[0].mxu1 }
 0x130   : > { %v755_v34 = vadd.f32 %v753_v31, %v686_v32  ;;  %v757_v35 = vadd.f32 %v753_v31, %v727_v33  ;;  %v688_v36 = vpop.f32.mrb[1].mxu0  ;;  %v729_v37 = vpop.f32.mrb[1].mxu1 }
 0x131   : > { %v756_v38 = vadd.f32 %v753_v31, %v688_v36  ;;  %v758_v39 = vadd.f32 %v753_v31, %v729_v37  ;;  %v690_v40 = vpop.f32.mrb[2].mxu0  ;;  %v731_v41 = vpop.f32.mrb[2].mxu1 }
 0x132   : > { %v759_v42 = vmax.f32 %v755_v34, 0.0  ;;  %v761_v43 = vmax.f32 %v757_v35, 0.0  ;;  %v691_v44 = vpop.f32.mrb[3].mxu0  ;;  %v732_v45 = vpop.f32.mrb[3].mxu1 }
 0x133   : > { %v760_v46 = vmax.f32 %v756_v38, 0.0  ;;  %v762_v47 = vmax.f32 %v758_v39, 0.0 }
 0x134   : > { %763 = vst [vmem:[%s361_s12] sm:$0xff] %v759_v42  ;;  %765 = vst [vmem:[%s361_s12 + $0x10] sm:$0xff] %v761_v43 }
 0x135   : > { %764 = vst [vmem:[%s361_s12 + $0x8] sm:$0xff] %v760_v46  ;;  %766 = vst [vmem:[%s361_s12 + $0x18] sm:$0xff] %v762_v47 }
 0x136 PF: > { %s13_s16 = sadd.s32 1, %s1108_s16   ;;  %s1344_s12 = smov %s1096_s13 }
 0x137   : > { %p10_p10 = scmp.ge.s32.totalorder %s13_s16, 6   ;;  %s1345_s13 = smov %s1166_s20 }
 0x138   : > { %s1346_s14 = smov %s1104_s15  ;;  %s1347_s15 = smov %s1349_s17 }
 0x139   :  { %12 = sbr.rel (!%p10_p10) target bundleno = 3 (0x3), region = 104 }

</bundles_post_ra>
